<compile_context>
chip_gen: v6e
topology: v6e:2x2x1
jax: 0.10.0
libtpu: 0.0.40
codegen_flags: <defaults>
</compile_context>

<pallas_src>
import math
import numpy as np
import jax
import jax.numpy as jnp
from jax.experimental import pallas as pl
from jax.experimental.pallas import tpu as pltpu


def _conv_out(n):
    # output size of a 3x3 / stride-2 / pad-1 conv along one spatial dim
    return (n + 2 - 3) // 2 + 1


def _round_up(n, m):
    return ((n + m - 1) // m) * m


def _gather_stack_np(H, W, OH, OW, blk):
    """Stacked one-hot gather matrix of shape (9*blk, OH*OW).

    Rows [t*blk, t*blk + H*W) hold the tap-t one-hot gather (an all-zero
    column implements the conv zero padding); rows [t*blk + H*W, (t+1)*blk)
    are zero lane-padding so per-tap scratch writes land at 128-aligned lane
    offsets.
    """
    M = OH * OW
    G = np.zeros((9 * blk, M), np.float32)
    for kh in range(3):
        for kw in range(3):
            t = kh * 3 + kw
            for oh in range(OH):
                ih = 2 * oh + kh - 1
                if not (0 <= ih < H):
                    continue
                for ow in range(OW):
                    iw = 2 * ow + kw - 1
                    if 0 <= iw < W:
                        G[t * blk + ih * W + iw, oh * OW + ow] = 1.0
    return G


def _block_diag_taps(w_taps, b_blk):
    """(9, Co, Ci) f32 -> (9, b_blk*Co, b_blk*Ci) bf16, block-diag over batch."""
    t, co, ci = w_taps.shape
    eye_b = jnp.eye(b_blk, dtype=jnp.float32)
    out = jnp.einsum("ij,tab->tiajb", eye_b, w_taps)
    return out.reshape(t, b_blk * co, b_blk * ci).astype(jnp.bfloat16)


# ------------------------------ Pallas kernel -------------------------------

def mmc_fused_kernel(x_ref, w1_ref, g1_ref, b1_ref, w2_ref, g2_ref, b2_ref,
                     fcw_ref, fcb_ref, o_ref, s1_ref, s2_ref):
    # x_ref  : (1, b_blk*Cin, HW)        one batch block, NCHW flattened
    # w1_ref : (9, b_blk*C1, b_blk*Cin)  bf16 block-diag per-tap conv1 weights
    # g1_ref : (9*BLK1, M1)              bf16 stacked one-hot gather (conv1)
    # b1_ref : (b_blk*C1, 1)             f32 conv1 bias (batch-tiled)
    # w2_ref : (9, b_blk*C2, b_blk*C1)   bf16 block-diag per-tap conv2 weights
    # g2_ref : (9*BLK2, M2)              bf16 stacked one-hot gather (conv2)
    # b2_ref : (b_blk*C2, 1)             f32 conv2 bias (batch-tiled)
    # fcw_ref: (M2, M2*hidden)           bf16 block-diag expansion of fc.weight
    # fcb_ref: (1, M2*hidden)            f32 fc bias tiled along lanes
    # o_ref  : (1, b_blk*C2, M2*hidden)  lane-dense output block
    # s1_ref : (b_blk*C1, 9*BLK1)        bf16 VMEM scratch (conv1 tap stack)
    # s2_ref : (b_blk*C2, 9*BLK2)        bf16 VMEM scratch (conv2 tap stack)
    x = x_ref[0].astype(jnp.bfloat16)                       # (b_blk*Cin, HW)
    hw = x.shape[1]
    m1 = g1_ref.shape[1]
    blk1 = s1_ref.shape[1] // 9
    blk2 = s2_ref.shape[1] // 9

    # Zero padded scratch lanes (their one-hot rows are zero, but stale VMEM
    # could hold NaNs and NaN * 0 = NaN).  Static Python conds: traced away.
    if blk1 != hw:
        s1_ref[...] = jnp.zeros(s1_ref.shape, s1_ref.dtype)
    if blk2 != m1:
        s2_ref[...] = jnp.zeros(s2_ref.shape, s2_ref.dtype)

    # ---- conv1 + ReLU: small channel matmul per tap, then one big-K gather ----
    for t in range(9):
        p = jnp.dot(w1_ref[t], x, preferred_element_type=jnp.float32)
        s1_ref[:, t * blk1:t * blk1 + hw] = p.astype(jnp.bfloat16)
    acc1 = jnp.dot(s1_ref[...], g1_ref[...], preferred_element_type=jnp.float32)
    act1 = jnp.maximum(acc1 + b1_ref[...], 0.0).astype(jnp.bfloat16)  # (b_blk*C1, M1)

    # ---- conv2 + ReLU, same scheme ----
    for t in range(9):
        q = jnp.dot(w2_ref[t], act1, preferred_element_type=jnp.float32)
        s2_ref[:, t * blk2:t * blk2 + m1] = q.astype(jnp.bfloat16)
    acc2 = jnp.dot(s2_ref[...], g2_ref[...], preferred_element_type=jnp.float32)
    act2 = jnp.maximum(acc2 + b2_ref[...], 0.0).astype(jnp.bfloat16)  # (b_blk*C2, M2)

    # ---- fc == Linear(1, hidden), folded into one lane-dense matmul ----
    # out[c, o*hidden + h] = act2[c, o] * fc_w[h] + fc_b[h]
    out = jnp.dot(act2, fcw_ref[...], preferred_element_type=jnp.float32) + fcb_ref[...]
    o_ref[0] = out.astype(o_ref.dtype)                      # (b_blk*C2, M2*hidden)


# --------------------------------- wrapper -----------------------------------

class MultimodalConnectorPallas:
    def __init__(self, input_channel=8, hidden_size=32, key=None):
        assert input_channel % 4 == 0
        c1 = input_channel // 2
        c2 = input_channel // 4
        self.cin, self.c1, self.c2, self.hidden = input_channel, c1, c2, hidden_size
        ks = jax.random.split(key, 6)

        def u(k, shape, fan_in):
            bound = 1.0 / math.sqrt(fan_in)
            return jax.random.uniform(k, shape, jnp.float32, -bound, bound)

        # PyTorch-style parameter shapes (OIHW conv weights, Linear(1, H)).
        self.w1 = u(ks[0], (c1, input_channel, 3, 3), input_channel * 9)
        self.b1 = u(ks[1], (c1,), input_channel * 9)
        self.w2 = u(ks[2], (c2, c1, 3, 3), c1 * 9)
        self.b2 = u(ks[3], (c2,), c1 * 9)
        self.fc_w = u(ks[4], (hidden_size,), 1)     # Linear(1, H).weight[:, 0]
        self.fc_b = u(ks[5], (hidden_size,), 1)

        # Per-tap weight stacks (tap index t = kh*3 + kw), f32 master copies.
        self.w1_taps = jnp.transpose(self.w1, (2, 3, 0, 1)).reshape(9, c1, input_channel)
        self.w2_taps = jnp.transpose(self.w2, (2, 3, 0, 1)).reshape(9, c2, c1)

        self._const_cache = {}     # (H, W, b_blk) -> kernel constants
        self._use_optimized = None  # does this JAX accept Buffered(1)/vmem limit?

    # -------------------------- batch blocking choice --------------------------
    def _pick_b_blk(self, B):
        """How many batch elements to fuse per grid step."""
        cap = max(1, 64 // self.c2)            # keep blocks a sane size
        # Prefer >= 2 grid steps (both v7x TensorCores get work) with
        # 8-aligned output rows (unmasked HBM stores).
        for b in range(min(B // 2, cap), 0, -1):
            if B % b == 0 and (b * self.c2) % 8 == 0:
                return b
        # Otherwise run (most of) the batch in one step: best for small B on
        # the single-TensorCore v5e/v6e (no per-step overhead for tiny work).
        b = min(B, cap)
        while B % b:
            b -= 1
        return b

    # ------------------------------ constants ---------------------------------
    def _constants(self, H, W, b_blk):
        key = (H, W, b_blk)
        if key in self._const_cache:
            return self._const_cache[key]
        OH1, OW1 = _conv_out(H), _conv_out(W)
        OH2, OW2 = _conv_out(OH1), _conv_out(OW1)
        m1, m2 = OH1 * OW1, OH2 * OW2
        hw = H * W
        blk1, blk2 = _round_up(hw, 128), _round_up(m1, 128)

        # bf16 constants: one-hot gathers stay exact; weights lose ~2^-9 rel.
        g1 = jnp.asarray(_gather_stack_np(H, W, OH1, OW1, blk1), jnp.bfloat16)
        g2 = jnp.asarray(_gather_stack_np(OH1, OW1, OH2, OW2, blk2), jnp.bfloat16)

        w1bd = _block_diag_taps(self.w1_taps, b_blk)   # (9, b*C1, b*Cin) bf16
        w2bd = _block_diag_taps(self.w2_taps, b_blk)   # (9, b*C2, b*C1)  bf16
        b1t = jnp.tile(self.b1.reshape(self.c1, 1), (b_blk, 1))   # f32
        b2t = jnp.tile(self.b2.reshape(self.c2, 1), (b_blk, 1))   # f32

        # fc expansion: fcw[o2, o*hid + h] = (o2 == o) * fc_w[h]
        eye_m2 = jnp.eye(m2, dtype=jnp.float32)
        fcw = jnp.einsum("ij,h->ijh", eye_m2, self.fc_w)
        fcw = fcw.reshape(m2, m2 * self.hidden).astype(jnp.bfloat16)
        fcb = jnp.tile(self.fc_b, (m2,))[None, :]                  # f32 (1, M2*hid)

        consts = dict(m1=m1, m2=m2, blk1=blk1, blk2=blk2, hw=hw,
                      g1=g1, g2=g2, w1bd=w1bd, w2bd=w2bd,
                      b1t=b1t, b2t=b2t, fcw=fcw, fcb=fcb)
        self._const_cache[key] = consts
        return consts

    # ------------------------------- pallas call -------------------------------
    def _pallas_forward(self, args, b_blk, c, n_blocks, *, optimized):
        Cin, c1, c2, hid = self.cin, self.c1, self.c2, self.hidden
        hw, m1, m2 = c["hw"], c["m1"], c["m2"]
        blk1, blk2 = c["blk1"], c["blk2"]
        x_blocks = args[0]

        def const_spec(shape):
            idx = (lambda i: (0, 0)) if len(shape) == 2 else (lambda i: (0, 0, 0))
            if optimized:
                # Constant index_map -> single-buffer (saves VMEM, esp. v7x 64 MiB).
                return pl.BlockSpec(shape, idx, pipeline_mode=pl.Buffered(1))
            return pl.BlockSpec(shape, idx)

        in_specs = [
            pl.BlockSpec((1, b_blk * Cin, hw), lambda i: (i, 0, 0)),
            const_spec((9, b_blk * c1, b_blk * Cin)),
            const_spec((9 * blk1, m1)),
            const_spec((b_blk * c1, 1)),
            const_spec((9, b_blk * c2, b_blk * c1)),
            const_spec((9 * blk2, m2)),
            const_spec((b_blk * c2, 1)),
            const_spec((m2, m2 * hid)),
            const_spec((1, m2 * hid)),
        ]
        out_spec = pl.BlockSpec((1, b_blk * c2, m2 * hid), lambda i: (i, 0, 0))

        if optimized:
            cparams = pltpu.CompilerParams(
                dimension_semantics=("parallel",),
                vmem_limit_bytes=64 * 1024 * 1024)
        else:
            cparams = pltpu.CompilerParams(dimension_semantics=("parallel",))

        return pl.pallas_call(
            mmc_fused_kernel,
            out_shape=jax.ShapeDtypeStruct((n_blocks, b_blk * c2, m2 * hid),
                                           x_blocks.dtype),
            grid=(n_blocks,),
            in_specs=in_specs,
            out_specs=out_spec,
            scratch_shapes=[
                pltpu.VMEM((b_blk * c1, 9 * blk1), jnp.bfloat16),
                pltpu.VMEM((b_blk * c2, 9 * blk2), jnp.bfloat16),
            ],
            compiler_params=cparams,
        )(*args)

    # --------------------------------- forward ---------------------------------
    def __call__(self, x_nchw, target_len):
        # x_nchw: (B, Cin, H, W) -- PyTorch NCHW convention.
        B, Cin, H, W = x_nchw.shape
        assert Cin == self.cin
        b_blk = self._pick_b_blk(B)
        assert B % b_blk == 0
        c = self._constants(H, W, b_blk)
        n_blocks = B // b_blk
        total = self.c2 * c["m2"] * self.hidden
        assert total % target_len == 0, "target_len must divide C2*OH2*OW2*hidden"

        # Contiguous reshape only (no transpose): batch-major, NCHW kept.
        x_blocks = x_nchw.reshape(n_blocks, b_blk * Cin, c["hw"])

        args = (x_blocks, c["w1bd"], c["g1"], c["b1t"],
                c["w2bd"], c["g2"], c["b2t"], c["fcw"], c["fcb"])

        if self._use_optimized is None:
            try:
                out = jax.block_until_ready(
                    self._pallas_forward(args, b_blk, c, n_blocks, optimized=True))
                self._use_optimized = True
            except Exception:
                # Older JAX without pipeline_mode / Buffered(1): fall back.
                self._use_optimized = False
                out = self._pallas_forward(args, b_blk, c, n_blocks, optimized=False)
        else:
            out = self._pallas_forward(args, b_blk, c, n_blocks,
                                       optimized=self._use_optimized)

        # Row-major flatten of (..., C2, M2*hidden) == channel-major (NCHW)
        # flatten followed by fc, exactly matching torch's view semantics.
        return out.reshape(B, target_len, -1)


# ----------------------- pure-JAX reference (for checking) -------------------

def reference_forward(x_nchw, m, target_len):
    def conv(x, w, b):
        y = jax.lax.conv_general_dilated(
            x, w, window_strides=(2, 2), padding=((1, 1), (1, 1)),
            dimension_numbers=("NCHW", "OIHW", "NCHW"))
        return jax.nn.relu(y + b[None, :, None, None])

    y = conv(x_nchw, m.w1, m.b1)
    y = conv(y, m.w2, m.b2)
    B = y.shape[0]
    flat = y.reshape(B, -1, 1)
    out = flat * m.fc_w.reshape(1, 1, -1) + m.fc_b.reshape(1, 1, -1)
    return out.reshape(B, target_len, -1)


if __name__ == "__main__":
    key = jax.random.PRNGKey(0)
    k_param, k_x = jax.random.split(key)

    B, Cin, H, W = 2, 8, 16, 16
    hidden = 32
    target_len = 8       # (Cin//4) * (H//4) * (W//4) * hidden = 1024, divisible by 8

    model = MultimodalConnectorPallas(input_channel=Cin, hidden_size=hidden, key=k_param)
    x = jax.random.normal(k_x, (B, Cin, H, W), jnp.float32)

    out = jax.block_until_ready(model(x, target_len))
    ref = jax.block_until_ready(reference_forward(x, model, target_len))

    expected_last = (Cin // 4) * (H // 4) * (W // 4) * hidden // target_len
    assert out.shape == (B, target_len, expected_last)
    # bf16 MXU operands with f32 accumulation -> looser tolerance than pure f32.
    assert jnp.max(jnp.abs(out - ref)) < 3e-2
    print("KERNEL_OK")
</pallas_src>

<mosaic_0001>
module attributes {stable_mosaic.version = 11 : i64} {
  func.func @mmc_fused_kernel(%arg0: i32, %arg1: memref<1x16x256xf32, #tpu.memory_space<vmem>>, %arg2: memref<9x8x16xbf16, #tpu.memory_space<vmem>>, %arg3: memref<2304x64xbf16, #tpu.memory_space<vmem>>, %arg4: memref<8x1xf32, #tpu.memory_space<vmem>>, %arg5: memref<9x4x8xbf16, #tpu.memory_space<vmem>>, %arg6: memref<1152x16xbf16, #tpu.memory_space<vmem>>, %arg7: memref<4x1xf32, #tpu.memory_space<vmem>>, %arg8: memref<16x512xbf16, #tpu.memory_space<vmem>>, %arg9: memref<1x512xf32, #tpu.memory_space<vmem>>, %arg10: memref<1x4x512xf32, #tpu.memory_space<vmem>>, %arg11: memref<8x2304xbf16, #tpu.memory_space<vmem>>, %arg12: memref<4x1152xbf16, #tpu.memory_space<vmem>>) attributes {dimension_semantics = [#tpu.dimension_semantics<parallel>], iteration_bounds = array<i64: 1>, scalar_prefetch = 0 : i64, scratch_operands = 2 : i64, tpu.core_type = #tpu.core_type<tc>, window_params = [{transform_indices = @transform_0, window_bounds = array<i64: 1, 16, 256>}, {pipeline_mode = #tpu.pipeline_mode<synchronous>, transform_indices = @transform_1, window_bounds = array<i64: 9, 8, 16>}, {pipeline_mode = #tpu.pipeline_mode<synchronous>, transform_indices = @transform_2, window_bounds = array<i64: 2304, 64>}, {pipeline_mode = #tpu.pipeline_mode<synchronous>, transform_indices = @transform_3, window_bounds = array<i64: 8, 1>}, {pipeline_mode = #tpu.pipeline_mode<synchronous>, transform_indices = @transform_4, window_bounds = array<i64: 9, 4, 8>}, {pipeline_mode = #tpu.pipeline_mode<synchronous>, transform_indices = @transform_5, window_bounds = array<i64: 1152, 16>}, {pipeline_mode = #tpu.pipeline_mode<synchronous>, transform_indices = @transform_6, window_bounds = array<i64: 4, 1>}, {pipeline_mode = #tpu.pipeline_mode<synchronous>, transform_indices = @transform_7, window_bounds = array<i64: 16, 512>}, {pipeline_mode = #tpu.pipeline_mode<synchronous>, transform_indices = @transform_8, window_bounds = array<i64: 1, 512>}, {transform_indices = @transform_9, window_bounds = array<i64: 1, 4, 512>}]} {
    %c0 = arith.constant 0 : index
    %c0_0 = arith.constant 0 : index
    %c0_1 = arith.constant 0 : index
    %0 = vector.load %arg1[%c0, %c0_0, %c0_1] : memref<1x16x256xf32, #tpu.memory_space<vmem>>, vector<1x16x256xf32>
    %1 = vector.shape_cast %0 : vector<1x16x256xf32> to vector<16x256xf32>
    %2 = arith.truncf %1 : vector<16x256xf32> to vector<16x256xbf16>
    %cst = arith.constant 0.000000e+00 : bf16
    %3 = vector.broadcast %cst : bf16 to vector<4x1152xbf16>
    %c0_2 = arith.constant 0 : index
    %c0_3 = arith.constant 0 : index
    %4 = vector.load %arg12[%c0_2, %c0_3] : memref<4x1152xbf16, #tpu.memory_space<vmem>>, vector<4x1152xbf16>
    tpu.vector_store %arg12[%c0_2, %c0_3], %3 {strides = array<i32>} : memref<4x1152xbf16, #tpu.memory_space<vmem>>, vector<4x1152xbf16>,
    %c0_4 = arith.constant 0 : index
    %c0_5 = arith.constant 0 : index
    %c0_6 = arith.constant 0 : index
    %5 = vector.load %arg2[%c0_4, %c0_5, %c0_6] : memref<9x8x16xbf16, #tpu.memory_space<vmem>>, vector<1x8x16xbf16>
    %6 = vector.shape_cast %5 : vector<1x8x16xbf16> to vector<8x16xbf16>
    %cst_7 = arith.constant dense<0.000000e+00> : vector<8x256xf32>
    %7 = tpu.matmul %6, %2, %cst_7 {dimension_numbers = #tpu.dot_dimension_numbers<[1], [0], [0], [1], [0, 0, 1, 1], [], []>} : vector<8x16xbf16>, vector<16x256xbf16>, vector<8x256xf32> -> vector<8x256xf32>
    %8 = arith.truncf %7 : vector<8x256xf32> to vector<8x256xbf16>
    %c0_8 = arith.constant 0 : index
    %c0_9 = arith.constant 0 : index
    %9 = vector.load %arg11[%c0_8, %c0_9] : memref<8x2304xbf16, #tpu.memory_space<vmem>>, vector<8x256xbf16>
    tpu.vector_store %arg11[%c0_8, %c0_9], %8 {strides = array<i32>} : memref<8x2304xbf16, #tpu.memory_space<vmem>>, vector<8x256xbf16>,
    %c1 = arith.constant 1 : index
    %c0_10 = arith.constant 0 : index
    %c0_11 = arith.constant 0 : index
    %10 = vector.load %arg2[%c1, %c0_10, %c0_11] : memref<9x8x16xbf16, #tpu.memory_space<vmem>>, vector<1x8x16xbf16>
    %11 = vector.shape_cast %10 : vector<1x8x16xbf16> to vector<8x16xbf16>
    %cst_12 = arith.constant dense<0.000000e+00> : vector<8x256xf32>
    %12 = tpu.matmul %11, %2, %cst_12 {dimension_numbers = #tpu.dot_dimension_numbers<[1], [0], [0], [1], [0, 0, 1, 1], [], []>} : vector<8x16xbf16>, vector<16x256xbf16>, vector<8x256xf32> -> vector<8x256xf32>
    %13 = arith.truncf %12 : vector<8x256xf32> to vector<8x256xbf16>
    %c0_13 = arith.constant 0 : index
    %c256 = arith.constant 256 : index
    %14 = vector.load %arg11[%c0_13, %c256] : memref<8x2304xbf16, #tpu.memory_space<vmem>>, vector<8x256xbf16>
    tpu.vector_store %arg11[%c0_13, %c256], %13 {strides = array<i32>} : memref<8x2304xbf16, #tpu.memory_space<vmem>>, vector<8x256xbf16>,
    %c2 = arith.constant 2 : index
    %c0_14 = arith.constant 0 : index
    %c0_15 = arith.constant 0 : index
    %15 = vector.load %arg2[%c2, %c0_14, %c0_15] : memref<9x8x16xbf16, #tpu.memory_space<vmem>>, vector<1x8x16xbf16>
    %16 = vector.shape_cast %15 : vector<1x8x16xbf16> to vector<8x16xbf16>
    %cst_16 = arith.constant dense<0.000000e+00> : vector<8x256xf32>
    %17 = tpu.matmul %16, %2, %cst_16 {dimension_numbers = #tpu.dot_dimension_numbers<[1], [0], [0], [1], [0, 0, 1, 1], [], []>} : vector<8x16xbf16>, vector<16x256xbf16>, vector<8x256xf32> -> vector<8x256xf32>
    %18 = arith.truncf %17 : vector<8x256xf32> to vector<8x256xbf16>
    %c0_17 = arith.constant 0 : index
    %c512 = arith.constant 512 : index
    %19 = vector.load %arg11[%c0_17, %c512] : memref<8x2304xbf16, #tpu.memory_space<vmem>>, vector<8x256xbf16>
    tpu.vector_store %arg11[%c0_17, %c512], %18 {strides = array<i32>} : memref<8x2304xbf16, #tpu.memory_space<vmem>>, vector<8x256xbf16>,
    %c3 = arith.constant 3 : index
    %c0_18 = arith.constant 0 : index
    %c0_19 = arith.constant 0 : index
    %20 = vector.load %arg2[%c3, %c0_18, %c0_19] : memref<9x8x16xbf16, #tpu.memory_space<vmem>>, vector<1x8x16xbf16>
    %21 = vector.shape_cast %20 : vector<1x8x16xbf16> to vector<8x16xbf16>
    %cst_20 = arith.constant dense<0.000000e+00> : vector<8x256xf32>
    %22 = tpu.matmul %21, %2, %cst_20 {dimension_numbers = #tpu.dot_dimension_numbers<[1], [0], [0], [1], [0, 0, 1, 1], [], []>} : vector<8x16xbf16>, vector<16x256xbf16>, vector<8x256xf32> -> vector<8x256xf32>
    %23 = arith.truncf %22 : vector<8x256xf32> to vector<8x256xbf16>
    %c0_21 = arith.constant 0 : index
    %c768 = arith.constant 768 : index
    %24 = vector.load %arg11[%c0_21, %c768] : memref<8x2304xbf16, #tpu.memory_space<vmem>>, vector<8x256xbf16>
    tpu.vector_store %arg11[%c0_21, %c768], %23 {strides = array<i32>} : memref<8x2304xbf16, #tpu.memory_space<vmem>>, vector<8x256xbf16>,
    %c4 = arith.constant 4 : index
    %c0_22 = arith.constant 0 : index
    %c0_23 = arith.constant 0 : index
    %25 = vector.load %arg2[%c4, %c0_22, %c0_23] : memref<9x8x16xbf16, #tpu.memory_space<vmem>>, vector<1x8x16xbf16>
    %26 = vector.shape_cast %25 : vector<1x8x16xbf16> to vector<8x16xbf16>
    %cst_24 = arith.constant dense<0.000000e+00> : vector<8x256xf32>
    %27 = tpu.matmul %26, %2, %cst_24 {dimension_numbers = #tpu.dot_dimension_numbers<[1], [0], [0], [1], [0, 0, 1, 1], [], []>} : vector<8x16xbf16>, vector<16x256xbf16>, vector<8x256xf32> -> vector<8x256xf32>
    %28 = arith.truncf %27 : vector<8x256xf32> to vector<8x256xbf16>
    %c0_25 = arith.constant 0 : index
    %c1024 = arith.constant 1024 : index
    %29 = vector.load %arg11[%c0_25, %c1024] : memref<8x2304xbf16, #tpu.memory_space<vmem>>, vector<8x256xbf16>
    tpu.vector_store %arg11[%c0_25, %c1024], %28 {strides = array<i32>} : memref<8x2304xbf16, #tpu.memory_space<vmem>>, vector<8x256xbf16>,
    %c5 = arith.constant 5 : index
    %c0_26 = arith.constant 0 : index
    %c0_27 = arith.constant 0 : index
    %30 = vector.load %arg2[%c5, %c0_26, %c0_27] : memref<9x8x16xbf16, #tpu.memory_space<vmem>>, vector<1x8x16xbf16>
    %31 = vector.shape_cast %30 : vector<1x8x16xbf16> to vector<8x16xbf16>
    %cst_28 = arith.constant dense<0.000000e+00> : vector<8x256xf32>
    %32 = tpu.matmul %31, %2, %cst_28 {dimension_numbers = #tpu.dot_dimension_numbers<[1], [0], [0], [1], [0, 0, 1, 1], [], []>} : vector<8x16xbf16>, vector<16x256xbf16>, vector<8x256xf32> -> vector<8x256xf32>
    %33 = arith.truncf %32 : vector<8x256xf32> to vector<8x256xbf16>
    %c0_29 = arith.constant 0 : index
    %c1280 = arith.constant 1280 : index
    %34 = vector.load %arg11[%c0_29, %c1280] : memref<8x2304xbf16, #tpu.memory_space<vmem>>, vector<8x256xbf16>
    tpu.vector_store %arg11[%c0_29, %c1280], %33 {strides = array<i32>} : memref<8x2304xbf16, #tpu.memory_space<vmem>>, vector<8x256xbf16>,
    %c6 = arith.constant 6 : index
    %c0_30 = arith.constant 0 : index
    %c0_31 = arith.constant 0 : index
    %35 = vector.load %arg2[%c6, %c0_30, %c0_31] : memref<9x8x16xbf16, #tpu.memory_space<vmem>>, vector<1x8x16xbf16>
    %36 = vector.shape_cast %35 : vector<1x8x16xbf16> to vector<8x16xbf16>
    %cst_32 = arith.constant dense<0.000000e+00> : vector<8x256xf32>
    %37 = tpu.matmul %36, %2, %cst_32 {dimension_numbers = #tpu.dot_dimension_numbers<[1], [0], [0], [1], [0, 0, 1, 1], [], []>} : vector<8x16xbf16>, vector<16x256xbf16>, vector<8x256xf32> -> vector<8x256xf32>
    %38 = arith.truncf %37 : vector<8x256xf32> to vector<8x256xbf16>
    %c0_33 = arith.constant 0 : index
    %c1536 = arith.constant 1536 : index
    %39 = vector.load %arg11[%c0_33, %c1536] : memref<8x2304xbf16, #tpu.memory_space<vmem>>, vector<8x256xbf16>
    tpu.vector_store %arg11[%c0_33, %c1536], %38 {strides = array<i32>} : memref<8x2304xbf16, #tpu.memory_space<vmem>>, vector<8x256xbf16>,
    %c7 = arith.constant 7 : index
    %c0_34 = arith.constant 0 : index
    %c0_35 = arith.constant 0 : index
    %40 = vector.load %arg2[%c7, %c0_34, %c0_35] : memref<9x8x16xbf16, #tpu.memory_space<vmem>>, vector<1x8x16xbf16>
    %41 = vector.shape_cast %40 : vector<1x8x16xbf16> to vector<8x16xbf16>
    %cst_36 = arith.constant dense<0.000000e+00> : vector<8x256xf32>
    %42 = tpu.matmul %41, %2, %cst_36 {dimension_numbers = #tpu.dot_dimension_numbers<[1], [0], [0], [1], [0, 0, 1, 1], [], []>} : vector<8x16xbf16>, vector<16x256xbf16>, vector<8x256xf32> -> vector<8x256xf32>
    %43 = arith.truncf %42 : vector<8x256xf32> to vector<8x256xbf16>
    %c0_37 = arith.constant 0 : index
    %c1792 = arith.constant 1792 : index
    %44 = vector.load %arg11[%c0_37, %c1792] : memref<8x2304xbf16, #tpu.memory_space<vmem>>, vector<8x256xbf16>
    tpu.vector_store %arg11[%c0_37, %c1792], %43 {strides = array<i32>} : memref<8x2304xbf16, #tpu.memory_space<vmem>>, vector<8x256xbf16>,
    %c8 = arith.constant 8 : index
    %c0_38 = arith.constant 0 : index
    %c0_39 = arith.constant 0 : index
    %45 = vector.load %arg2[%c8, %c0_38, %c0_39] : memref<9x8x16xbf16, #tpu.memory_space<vmem>>, vector<1x8x16xbf16>
    %46 = vector.shape_cast %45 : vector<1x8x16xbf16> to vector<8x16xbf16>
    %cst_40 = arith.constant dense<0.000000e+00> : vector<8x256xf32>
    %47 = tpu.matmul %46, %2, %cst_40 {dimension_numbers = #tpu.dot_dimension_numbers<[1], [0], [0], [1], [0, 0, 1, 1], [], []>} : vector<8x16xbf16>, vector<16x256xbf16>, vector<8x256xf32> -> vector<8x256xf32>
    %48 = arith.truncf %47 : vector<8x256xf32> to vector<8x256xbf16>
    %c0_41 = arith.constant 0 : index
    %c2048 = arith.constant 2048 : index
    %49 = vector.load %arg11[%c0_41, %c2048] : memref<8x2304xbf16, #tpu.memory_space<vmem>>, vector<8x256xbf16>
    tpu.vector_store %arg11[%c0_41, %c2048], %48 {strides = array<i32>} : memref<8x2304xbf16, #tpu.memory_space<vmem>>, vector<8x256xbf16>,
    %c0_42 = arith.constant 0 : index
    %c0_43 = arith.constant 0 : index
    %50 = vector.load %arg11[%c0_42, %c0_43] : memref<8x2304xbf16, #tpu.memory_space<vmem>>, vector<8x2304xbf16>
    %c0_44 = arith.constant 0 : index
    %c0_45 = arith.constant 0 : index
    %51 = vector.load %arg3[%c0_44, %c0_45] : memref<2304x64xbf16, #tpu.memory_space<vmem>>, vector<2304x64xbf16>
    %cst_46 = arith.constant dense<0.000000e+00> : vector<8x64xf32>
    %52 = tpu.matmul %50, %51, %cst_46 {dimension_numbers = #tpu.dot_dimension_numbers<[1], [0], [0], [1], [0, 0, 1, 1], [], []>} : vector<8x2304xbf16>, vector<2304x64xbf16>, vector<8x64xf32> -> vector<8x64xf32>
    %c0_47 = arith.constant 0 : index
    %c0_48 = arith.constant 0 : index
    %53 = vector.load %arg4[%c0_47, %c0_48] : memref<8x1xf32, #tpu.memory_space<vmem>>, vector<8x1xf32>
    %54 = vector.broadcast %53 : vector<8x1xf32> to vector<8x64xf32>
    %55 = arith.addf %52, %54 : vector<8x64xf32>
    %cst_49 = arith.constant 0.000000e+00 : f32
    %56 = vector.broadcast %cst_49 : f32 to vector<8x64xf32>
    %57 = arith.maximumf %55, %56 : vector<8x64xf32>
    %58 = arith.truncf %57 : vector<8x64xf32> to vector<8x64xbf16>
    %c0_50 = arith.constant 0 : index
    %c0_51 = arith.constant 0 : index
    %c0_52 = arith.constant 0 : index
    %59 = vector.load %arg5[%c0_50, %c0_51, %c0_52] : memref<9x4x8xbf16, #tpu.memory_space<vmem>>, vector<1x4x8xbf16>
    %60 = vector.shape_cast %59 : vector<1x4x8xbf16> to vector<4x8xbf16>
    %cst_53 = arith.constant dense<0.000000e+00> : vector<4x64xf32>
    %61 = tpu.matmul %60, %58, %cst_53 {dimension_numbers = #tpu.dot_dimension_numbers<[1], [0], [0], [1], [0, 0, 1, 1], [], []>} : vector<4x8xbf16>, vector<8x64xbf16>, vector<4x64xf32> -> vector<4x64xf32>
    %62 = arith.truncf %61 : vector<4x64xf32> to vector<4x64xbf16>
    %c0_54 = arith.constant 0 : index
    %c0_55 = arith.constant 0 : index
    %63 = vector.load %arg12[%c0_54, %c0_55] : memref<4x1152xbf16, #tpu.memory_space<vmem>>, vector<4x64xbf16>
    tpu.vector_store %arg12[%c0_54, %c0_55], %62 {strides = array<i32>} : memref<4x1152xbf16, #tpu.memory_space<vmem>>, vector<4x64xbf16>,
    %c1_56 = arith.constant 1 : index
    %c0_57 = arith.constant 0 : index
    %c0_58 = arith.constant 0 : index
    %64 = vector.load %arg5[%c1_56, %c0_57, %c0_58] : memref<9x4x8xbf16, #tpu.memory_space<vmem>>, vector<1x4x8xbf16>
    %65 = vector.shape_cast %64 : vector<1x4x8xbf16> to vector<4x8xbf16>
    %cst_59 = arith.constant dense<0.000000e+00> : vector<4x64xf32>
    %66 = tpu.matmul %65, %58, %cst_59 {dimension_numbers = #tpu.dot_dimension_numbers<[1], [0], [0], [1], [0, 0, 1, 1], [], []>} : vector<4x8xbf16>, vector<8x64xbf16>, vector<4x64xf32> -> vector<4x64xf32>
    %67 = arith.truncf %66 : vector<4x64xf32> to vector<4x64xbf16>
    %c0_60 = arith.constant 0 : index
    %c128 = arith.constant 128 : index
    %68 = vector.load %arg12[%c0_60, %c128] : memref<4x1152xbf16, #tpu.memory_space<vmem>>, vector<4x64xbf16>
    tpu.vector_store %arg12[%c0_60, %c128], %67 {strides = array<i32>} : memref<4x1152xbf16, #tpu.memory_space<vmem>>, vector<4x64xbf16>,
    %c2_61 = arith.constant 2 : index
    %c0_62 = arith.constant 0 : index
    %c0_63 = arith.constant 0 : index
    %69 = vector.load %arg5[%c2_61, %c0_62, %c0_63] : memref<9x4x8xbf16, #tpu.memory_space<vmem>>, vector<1x4x8xbf16>
    %70 = vector.shape_cast %69 : vector<1x4x8xbf16> to vector<4x8xbf16>
    %cst_64 = arith.constant dense<0.000000e+00> : vector<4x64xf32>
    %71 = tpu.matmul %70, %58, %cst_64 {dimension_numbers = #tpu.dot_dimension_numbers<[1], [0], [0], [1], [0, 0, 1, 1], [], []>} : vector<4x8xbf16>, vector<8x64xbf16>, vector<4x64xf32> -> vector<4x64xf32>
    %72 = arith.truncf %71 : vector<4x64xf32> to vector<4x64xbf16>
    %c0_65 = arith.constant 0 : index
    %c256_66 = arith.constant 256 : index
    %73 = vector.load %arg12[%c0_65, %c256_66] : memref<4x1152xbf16, #tpu.memory_space<vmem>>, vector<4x64xbf16>
    tpu.vector_store %arg12[%c0_65, %c256_66], %72 {strides = array<i32>} : memref<4x1152xbf16, #tpu.memory_space<vmem>>, vector<4x64xbf16>,
    %c3_67 = arith.constant 3 : index
    %c0_68 = arith.constant 0 : index
    %c0_69 = arith.constant 0 : index
    %74 = vector.load %arg5[%c3_67, %c0_68, %c0_69] : memref<9x4x8xbf16, #tpu.memory_space<vmem>>, vector<1x4x8xbf16>
    %75 = vector.shape_cast %74 : vector<1x4x8xbf16> to vector<4x8xbf16>
    %cst_70 = arith.constant dense<0.000000e+00> : vector<4x64xf32>
    %76 = tpu.matmul %75, %58, %cst_70 {dimension_numbers = #tpu.dot_dimension_numbers<[1], [0], [0], [1], [0, 0, 1, 1], [], []>} : vector<4x8xbf16>, vector<8x64xbf16>, vector<4x64xf32> -> vector<4x64xf32>
    %77 = arith.truncf %76 : vector<4x64xf32> to vector<4x64xbf16>
    %c0_71 = arith.constant 0 : index
    %c384 = arith.constant 384 : index
    %78 = vector.load %arg12[%c0_71, %c384] : memref<4x1152xbf16, #tpu.memory_space<vmem>>, vector<4x64xbf16>
    tpu.vector_store %arg12[%c0_71, %c384], %77 {strides = array<i32>} : memref<4x1152xbf16, #tpu.memory_space<vmem>>, vector<4x64xbf16>,
    %c4_72 = arith.constant 4 : index
    %c0_73 = arith.constant 0 : index
    %c0_74 = arith.constant 0 : index
    %79 = vector.load %arg5[%c4_72, %c0_73, %c0_74] : memref<9x4x8xbf16, #tpu.memory_space<vmem>>, vector<1x4x8xbf16>
    %80 = vector.shape_cast %79 : vector<1x4x8xbf16> to vector<4x8xbf16>
    %cst_75 = arith.constant dense<0.000000e+00> : vector<4x64xf32>
    %81 = tpu.matmul %80, %58, %cst_75 {dimension_numbers = #tpu.dot_dimension_numbers<[1], [0], [0], [1], [0, 0, 1, 1], [], []>} : vector<4x8xbf16>, vector<8x64xbf16>, vector<4x64xf32> -> vector<4x64xf32>
    %82 = arith.truncf %81 : vector<4x64xf32> to vector<4x64xbf16>
    %c0_76 = arith.constant 0 : index
    %c512_77 = arith.constant 512 : index
    %83 = vector.load %arg12[%c0_76, %c512_77] : memref<4x1152xbf16, #tpu.memory_space<vmem>>, vector<4x64xbf16>
    tpu.vector_store %arg12[%c0_76, %c512_77], %82 {strides = array<i32>} : memref<4x1152xbf16, #tpu.memory_space<vmem>>, vector<4x64xbf16>,
    %c5_78 = arith.constant 5 : index
    %c0_79 = arith.constant 0 : index
    %c0_80 = arith.constant 0 : index
    %84 = vector.load %arg5[%c5_78, %c0_79, %c0_80] : memref<9x4x8xbf16, #tpu.memory_space<vmem>>, vector<1x4x8xbf16>
    %85 = vector.shape_cast %84 : vector<1x4x8xbf16> to vector<4x8xbf16>
    %cst_81 = arith.constant dense<0.000000e+00> : vector<4x64xf32>
    %86 = tpu.matmul %85, %58, %cst_81 {dimension_numbers = #tpu.dot_dimension_numbers<[1], [0], [0], [1], [0, 0, 1, 1], [], []>} : vector<4x8xbf16>, vector<8x64xbf16>, vector<4x64xf32> -> vector<4x64xf32>
    %87 = arith.truncf %86 : vector<4x64xf32> to vector<4x64xbf16>
    %c0_82 = arith.constant 0 : index
    %c640 = arith.constant 640 : index
    %88 = vector.load %arg12[%c0_82, %c640] : memref<4x1152xbf16, #tpu.memory_space<vmem>>, vector<4x64xbf16>
    tpu.vector_store %arg12[%c0_82, %c640], %87 {strides = array<i32>} : memref<4x1152xbf16, #tpu.memory_space<vmem>>, vector<4x64xbf16>,
    %c6_83 = arith.constant 6 : index
    %c0_84 = arith.constant 0 : index
    %c0_85 = arith.constant 0 : index
    %89 = vector.load %arg5[%c6_83, %c0_84, %c0_85] : memref<9x4x8xbf16, #tpu.memory_space<vmem>>, vector<1x4x8xbf16>
    %90 = vector.shape_cast %89 : vector<1x4x8xbf16> to vector<4x8xbf16>
    %cst_86 = arith.constant dense<0.000000e+00> : vector<4x64xf32>
    %91 = tpu.matmul %90, %58, %cst_86 {dimension_numbers = #tpu.dot_dimension_numbers<[1], [0], [0], [1], [0, 0, 1, 1], [], []>} : vector<4x8xbf16>, vector<8x64xbf16>, vector<4x64xf32> -> vector<4x64xf32>
    %92 = arith.truncf %91 : vector<4x64xf32> to vector<4x64xbf16>
    %c0_87 = arith.constant 0 : index
    %c768_88 = arith.constant 768 : index
    %93 = vector.load %arg12[%c0_87, %c768_88] : memref<4x1152xbf16, #tpu.memory_space<vmem>>, vector<4x64xbf16>
    tpu.vector_store %arg12[%c0_87, %c768_88], %92 {strides = array<i32>} : memref<4x1152xbf16, #tpu.memory_space<vmem>>, vector<4x64xbf16>,
    %c7_89 = arith.constant 7 : index
    %c0_90 = arith.constant 0 : index
    %c0_91 = arith.constant 0 : index
    %94 = vector.load %arg5[%c7_89, %c0_90, %c0_91] : memref<9x4x8xbf16, #tpu.memory_space<vmem>>, vector<1x4x8xbf16>
    %95 = vector.shape_cast %94 : vector<1x4x8xbf16> to vector<4x8xbf16>
    %cst_92 = arith.constant dense<0.000000e+00> : vector<4x64xf32>
    %96 = tpu.matmul %95, %58, %cst_92 {dimension_numbers = #tpu.dot_dimension_numbers<[1], [0], [0], [1], [0, 0, 1, 1], [], []>} : vector<4x8xbf16>, vector<8x64xbf16>, vector<4x64xf32> -> vector<4x64xf32>
    %97 = arith.truncf %96 : vector<4x64xf32> to vector<4x64xbf16>
    %c0_93 = arith.constant 0 : index
    %c896 = arith.constant 896 : index
    %98 = vector.load %arg12[%c0_93, %c896] : memref<4x1152xbf16, #tpu.memory_space<vmem>>, vector<4x64xbf16>
    tpu.vector_store %arg12[%c0_93, %c896], %97 {strides = array<i32>} : memref<4x1152xbf16, #tpu.memory_space<vmem>>, vector<4x64xbf16>,
    %c8_94 = arith.constant 8 : index
    %c0_95 = arith.constant 0 : index
    %c0_96 = arith.constant 0 : index
    %99 = vector.load %arg5[%c8_94, %c0_95, %c0_96] : memref<9x4x8xbf16, #tpu.memory_space<vmem>>, vector<1x4x8xbf16>
    %100 = vector.shape_cast %99 : vector<1x4x8xbf16> to vector<4x8xbf16>
    %cst_97 = arith.constant dense<0.000000e+00> : vector<4x64xf32>
    %101 = tpu.matmul %100, %58, %cst_97 {dimension_numbers = #tpu.dot_dimension_numbers<[1], [0], [0], [1], [0, 0, 1, 1], [], []>} : vector<4x8xbf16>, vector<8x64xbf16>, vector<4x64xf32> -> vector<4x64xf32>
    %102 = arith.truncf %101 : vector<4x64xf32> to vector<4x64xbf16>
    %c0_98 = arith.constant 0 : index
    %c1024_99 = arith.constant 1024 : index
    %103 = vector.load %arg12[%c0_98, %c1024_99] : memref<4x1152xbf16, #tpu.memory_space<vmem>>, vector<4x64xbf16>
    tpu.vector_store %arg12[%c0_98, %c1024_99], %102 {strides = array<i32>} : memref<4x1152xbf16, #tpu.memory_space<vmem>>, vector<4x64xbf16>,
    %c0_100 = arith.constant 0 : index
    %c0_101 = arith.constant 0 : index
    %104 = vector.load %arg12[%c0_100, %c0_101] : memref<4x1152xbf16, #tpu.memory_space<vmem>>, vector<4x1152xbf16>
    %c0_102 = arith.constant 0 : index
    %c0_103 = arith.constant 0 : index
    %105 = vector.load %arg6[%c0_102, %c0_103] : memref<1152x16xbf16, #tpu.memory_space<vmem>>, vector<1152x16xbf16>
    %cst_104 = arith.constant dense<0.000000e+00> : vector<4x16xf32>
    %106 = tpu.matmul %104, %105, %cst_104 {dimension_numbers = #tpu.dot_dimension_numbers<[1], [0], [0], [1], [0, 0, 1, 1], [], []>} : vector<4x1152xbf16>, vector<1152x16xbf16>, vector<4x16xf32> -> vector<4x16xf32>
    %c0_105 = arith.constant 0 : index
    %c0_106 = arith.constant 0 : index
    %107 = vector.load %arg7[%c0_105, %c0_106] : memref<4x1xf32, #tpu.memory_space<vmem>>, vector<4x1xf32>
    %108 = vector.broadcast %107 : vector<4x1xf32> to vector<4x16xf32>
    %109 = arith.addf %106, %108 : vector<4x16xf32>
    %cst_107 = arith.constant 0.000000e+00 : f32
    %110 = vector.broadcast %cst_107 : f32 to vector<4x16xf32>
    %111 = arith.maximumf %109, %110 : vector<4x16xf32>
    %112 = arith.truncf %111 : vector<4x16xf32> to vector<4x16xbf16>
    %c0_108 = arith.constant 0 : index
    %c0_109 = arith.constant 0 : index
    %113 = vector.load %arg8[%c0_108, %c0_109] : memref<16x512xbf16, #tpu.memory_space<vmem>>, vector<16x512xbf16>
    %cst_110 = arith.constant dense<0.000000e+00> : vector<4x512xf32>
    %114 = tpu.matmul %112, %113, %cst_110 {dimension_numbers = #tpu.dot_dimension_numbers<[1], [0], [0], [1], [0, 0, 1, 1], [], []>} : vector<4x16xbf16>, vector<16x512xbf16>, vector<4x512xf32> -> vector<4x512xf32>
    %c0_111 = arith.constant 0 : index
    %c0_112 = arith.constant 0 : index
    %115 = vector.load %arg9[%c0_111, %c0_112] : memref<1x512xf32, #tpu.memory_space<vmem>>, vector<1x512xf32>
    %116 = vector.broadcast %115 : vector<1x512xf32> to vector<4x512xf32>
    %117 = arith.addf %114, %116 : vector<4x512xf32>
    %c0_113 = arith.constant 0 : index
    %c0_114 = arith.constant 0 : index
    %c0_115 = arith.constant 0 : index
    %118 = vector.load %arg10[%c0_113, %c0_114, %c0_115] : memref<1x4x512xf32, #tpu.memory_space<vmem>>, vector<1x4x512xf32>
    %119 = vector.shape_cast %118 : vector<1x4x512xf32> to vector<4x512xf32>
    %120 = vector.shape_cast %117 : vector<4x512xf32> to vector<1x4x512xf32>
    tpu.vector_store %arg10[%c0_113, %c0_114, %c0_115], %120 {strides = array<i32>} : memref<1x4x512xf32, #tpu.memory_space<vmem>>, vector<1x4x512xf32>,
    return
  }
  func.func @transform_0(%arg0: i32) -> (i32, i32, i32) {
    %c0_i32 = arith.constant 0 : i32
    %c0_i32_0 = arith.constant 0 : i32
    %c0_i32_1 = arith.constant 0 : i32
    return %arg0, %c0_i32, %c0_i32_0 : i32, i32, i32
  }
  func.func @transform_1(%arg0: i32) -> (i32, i32, i32) {
    %c0_i32 = arith.constant 0 : i32
    %c0_i32_0 = arith.constant 0 : i32
    %c0_i32_1 = arith.constant 0 : i32
    %c0_i32_2 = arith.constant 0 : i32
    return %c0_i32, %c0_i32_0, %c0_i32_1 : i32, i32, i32
  }
  func.func @transform_2(%arg0: i32) -> (i32, i32) {
    %c0_i32 = arith.constant 0 : i32
    %c0_i32_0 = arith.constant 0 : i32
    %c0_i32_1 = arith.constant 0 : i32
    return %c0_i32, %c0_i32_0 : i32, i32
  }
  func.func @transform_3(%arg0: i32) -> (i32, i32) {
    %c0_i32 = arith.constant 0 : i32
    %c0_i32_0 = arith.constant 0 : i32
    %c0_i32_1 = arith.constant 0 : i32
    return %c0_i32, %c0_i32_0 : i32, i32
  }
  func.func @transform_4(%arg0: i32) -> (i32, i32, i32) {
    %c0_i32 = arith.constant 0 : i32
    %c0_i32_0 = arith.constant 0 : i32
    %c0_i32_1 = arith.constant 0 : i32
    %c0_i32_2 = arith.constant 0 : i32
    return %c0_i32, %c0_i32_0, %c0_i32_1 : i32, i32, i32
  }
  func.func @transform_5(%arg0: i32) -> (i32, i32) {
    %c0_i32 = arith.constant 0 : i32
    %c0_i32_0 = arith.constant 0 : i32
    %c0_i32_1 = arith.constant 0 : i32
    return %c0_i32, %c0_i32_0 : i32, i32
  }
  func.func @transform_6(%arg0: i32) -> (i32, i32) {
    %c0_i32 = arith.constant 0 : i32
    %c0_i32_0 = arith.constant 0 : i32
    %c0_i32_1 = arith.constant 0 : i32
    return %c0_i32, %c0_i32_0 : i32, i32
  }
  func.func @transform_7(%arg0: i32) -> (i32, i32) {
    %c0_i32 = arith.constant 0 : i32
    %c0_i32_0 = arith.constant 0 : i32
    %c0_i32_1 = arith.constant 0 : i32
    return %c0_i32, %c0_i32_0 : i32, i32
  }
  func.func @transform_8(%arg0: i32) -> (i32, i32) {
    %c0_i32 = arith.constant 0 : i32
    %c0_i32_0 = arith.constant 0 : i32
    %c0_i32_1 = arith.constant 0 : i32
    return %c0_i32, %c0_i32_0 : i32, i32
  }
  func.func @transform_9(%arg0: i32) -> (i32, i32, i32) {
    %c0_i32 = arith.constant 0 : i32
    %c0_i32_0 = arith.constant 0 : i32
    %c0_i32_1 = arith.constant 0 : i32
    return %arg0, %c0_i32, %c0_i32_0 : i32, i32, i32
  }
}

module attributes {stable_mosaic.version = 11 : i64} {
  func.func @mmc_fused_kernel(%arg0: i32, %arg1: memref<1x16x256xf32, #tpu.memory_space<vmem>>, %arg2: memref<9x8x16xbf16, #tpu.memory_space<vmem>>, %arg3: memref<2304x64xbf16, #tpu.memory_space<vmem>>, %arg4: memref<8x1xf32, #tpu.memory_space<vmem>>, %arg5: memref<9x4x8xbf16, #tpu.memory_space<vmem>>, %arg6: memref<1152x16xbf16, #tpu.memory_space<vmem>>, %arg7: memref<4x1xf32, #tpu.memory_space<vmem>>, %arg8: memref<16x512xbf16, #tpu.memory_space<vmem>>, %arg9: memref<1x512xf32, #tpu.memory_space<vmem>>, %arg10: memref<1x4x512xf32, #tpu.memory_space<vmem>>, %arg11: memref<8x2304xbf16, #tpu.memory_space<vmem>>, %arg12: memref<4x1152xbf16, #tpu.memory_space<vmem>>) attributes {dimension_semantics = [#tpu.dimension_semantics<parallel>], iteration_bounds = array<i64: 1>, scalar_prefetch = 0 : i64, scratch_operands = 2 : i64, tpu.core_type = #tpu.core_type<tc>, window_params = [{transform_indices = @transform_0, window_bounds = array<i64: 1, 16, 256>}, {pipeline_mode = #tpu.pipeline_mode<synchronous>, transform_indices = @transform_1, window_bounds = array<i64: 9, 8, 16>}, {pipeline_mode = #tpu.pipeline_mode<synchronous>, transform_indices = @transform_2, window_bounds = array<i64: 2304, 64>}, {pipeline_mode = #tpu.pipeline_mode<synchronous>, transform_indices = @transform_3, window_bounds = array<i64: 8, 1>}, {pipeline_mode = #tpu.pipeline_mode<synchronous>, transform_indices = @transform_4, window_bounds = array<i64: 9, 4, 8>}, {pipeline_mode = #tpu.pipeline_mode<synchronous>, transform_indices = @transform_5, window_bounds = array<i64: 1152, 16>}, {pipeline_mode = #tpu.pipeline_mode<synchronous>, transform_indices = @transform_6, window_bounds = array<i64: 4, 1>}, {pipeline_mode = #tpu.pipeline_mode<synchronous>, transform_indices = @transform_7, window_bounds = array<i64: 16, 512>}, {pipeline_mode = #tpu.pipeline_mode<synchronous>, transform_indices = @transform_8, window_bounds = array<i64: 1, 512>}, {transform_indices = @transform_9, window_bounds = array<i64: 1, 4, 512>}]} {
    %c0 = arith.constant 0 : index
    %c0_0 = arith.constant 0 : index
    %c0_1 = arith.constant 0 : index
    %0 = vector.load %arg1[%c0, %c0_0, %c0_1] : memref<1x16x256xf32, #tpu.memory_space<vmem>>, vector<1x16x256xf32>
    %1 = vector.shape_cast %0 : vector<1x16x256xf32> to vector<16x256xf32>
    %2 = arith.truncf %1 : vector<16x256xf32> to vector<16x256xbf16>
    %cst = arith.constant 0.000000e+00 : bf16
    %3 = vector.broadcast %cst : bf16 to vector<4x1152xbf16>
    %c0_2 = arith.constant 0 : index
    %c0_3 = arith.constant 0 : index
    %4 = vector.load %arg12[%c0_2, %c0_3] : memref<4x1152xbf16, #tpu.memory_space<vmem>>, vector<4x1152xbf16>
    tpu.vector_store %arg12[%c0_2, %c0_3], %3 {strides = array<i32>} : memref<4x1152xbf16, #tpu.memory_space<vmem>>, vector<4x1152xbf16>,
    %c0_4 = arith.constant 0 : index
    %c0_5 = arith.constant 0 : index
    %c0_6 = arith.constant 0 : index
    %5 = vector.load %arg2[%c0_4, %c0_5, %c0_6] : memref<9x8x16xbf16, #tpu.memory_space<vmem>>, vector<1x8x16xbf16>
    %6 = vector.shape_cast %5 : vector<1x8x16xbf16> to vector<8x16xbf16>
    %cst_7 = arith.constant dense<0.000000e+00> : vector<8x256xf32>
    %7 = tpu.matmul %6, %2, %cst_7 {dimension_numbers = #tpu.dot_dimension_numbers<[1], [0], [0], [1], [0, 0, 1, 1], [], []>} : vector<8x16xbf16>, vector<16x256xbf16>, vector<8x256xf32> -> vector<8x256xf32>
    %8 = arith.truncf %7 : vector<8x256xf32> to vector<8x256xbf16>
    %c0_8 = arith.constant 0 : index
    %c0_9 = arith.constant 0 : index
    %9 = vector.load %arg11[%c0_8, %c0_9] : memref<8x2304xbf16, #tpu.memory_space<vmem>>, vector<8x256xbf16>
    tpu.vector_store %arg11[%c0_8, %c0_9], %8 {strides = array<i32>} : memref<8x2304xbf16, #tpu.memory_space<vmem>>, vector<8x256xbf16>,
    %c1 = arith.constant 1 : index
    %c0_10 = arith.constant 0 : index
    %c0_11 = arith.constant 0 : index
    %10 = vector.load %arg2[%c1, %c0_10, %c0_11] : memref<9x8x16xbf16, #tpu.memory_space<vmem>>, vector<1x8x16xbf16>
    %11 = vector.shape_cast %10 : vector<1x8x16xbf16> to vector<8x16xbf16>
    %cst_12 = arith.constant dense<0.000000e+00> : vector<8x256xf32>
    %12 = tpu.matmul %11, %2, %cst_12 {dimension_numbers = #tpu.dot_dimension_numbers<[1], [0], [0], [1], [0, 0, 1, 1], [], []>} : vector<8x16xbf16>, vector<16x256xbf16>, vector<8x256xf32> -> vector<8x256xf32>
    %13 = arith.truncf %12 : vector<8x256xf32> to vector<8x256xbf16>
    %c0_13 = arith.constant 0 : index
    %c256 = arith.constant 256 : index
    %14 = vector.load %arg11[%c0_13, %c256] : memref<8x2304xbf16, #tpu.memory_space<vmem>>, vector<8x256xbf16>
    tpu.vector_store %arg11[%c0_13, %c256], %13 {strides = array<i32>} : memref<8x2304xbf16, #tpu.memory_space<vmem>>, vector<8x256xbf16>,
    %c2 = arith.constant 2 : index
    %c0_14 = arith.constant 0 : index
    %c0_15 = arith.constant 0 : index
    %15 = vector.load %arg2[%c2, %c0_14, %c0_15] : memref<9x8x16xbf16, #tpu.memory_space<vmem>>, vector<1x8x16xbf16>
    %16 = vector.shape_cast %15 : vector<1x8x16xbf16> to vector<8x16xbf16>
    %cst_16 = arith.constant dense<0.000000e+00> : vector<8x256xf32>
    %17 = tpu.matmul %16, %2, %cst_16 {dimension_numbers = #tpu.dot_dimension_numbers<[1], [0], [0], [1], [0, 0, 1, 1], [], []>} : vector<8x16xbf16>, vector<16x256xbf16>, vector<8x256xf32> -> vector<8x256xf32>
    %18 = arith.truncf %17 : vector<8x256xf32> to vector<8x256xbf16>
    %c0_17 = arith.constant 0 : index
    %c512 = arith.constant 512 : index
    %19 = vector.load %arg11[%c0_17, %c512] : memref<8x2304xbf16, #tpu.memory_space<vmem>>, vector<8x256xbf16>
    tpu.vector_store %arg11[%c0_17, %c512], %18 {strides = array<i32>} : memref<8x2304xbf16, #tpu.memory_space<vmem>>, vector<8x256xbf16>,
    %c3 = arith.constant 3 : index
    %c0_18 = arith.constant 0 : index
    %c0_19 = arith.constant 0 : index
    %20 = vector.load %arg2[%c3, %c0_18, %c0_19] : memref<9x8x16xbf16, #tpu.memory_space<vmem>>, vector<1x8x16xbf16>
    %21 = vector.shape_cast %20 : vector<1x8x16xbf16> to vector<8x16xbf16>
    %cst_20 = arith.constant dense<0.000000e+00> : vector<8x256xf32>
    %22 = tpu.matmul %21, %2, %cst_20 {dimension_numbers = #tpu.dot_dimension_numbers<[1], [0], [0], [1], [0, 0, 1, 1], [], []>} : vector<8x16xbf16>, vector<16x256xbf16>, vector<8x256xf32> -> vector<8x256xf32>
    %23 = arith.truncf %22 : vector<8x256xf32> to vector<8x256xbf16>
    %c0_21 = arith.constant 0 : index
    %c768 = arith.constant 768 : index
    %24 = vector.load %arg11[%c0_21, %c768] : memref<8x2304xbf16, #tpu.memory_space<vmem>>, vector<8x256xbf16>
    tpu.vector_store %arg11[%c0_21, %c768], %23 {strides = array<i32>} : memref<8x2304xbf16, #tpu.memory_space<vmem>>, vector<8x256xbf16>,
    %c4 = arith.constant 4 : index
    %c0_22 = arith.constant 0 : index
    %c0_23 = arith.constant 0 : index
    %25 = vector.load %arg2[%c4, %c0_22, %c0_23] : memref<9x8x16xbf16, #tpu.memory_space<vmem>>, vector<1x8x16xbf16>
    %26 = vector.shape_cast %25 : vector<1x8x16xbf16> to vector<8x16xbf16>
    %cst_24 = arith.constant dense<0.000000e+00> : vector<8x256xf32>
    %27 = tpu.matmul %26, %2, %cst_24 {dimension_numbers = #tpu.dot_dimension_numbers<[1], [0], [0], [1], [0, 0, 1, 1], [], []>} : vector<8x16xbf16>, vector<16x256xbf16>, vector<8x256xf32> -> vector<8x256xf32>
    %28 = arith.truncf %27 : vector<8x256xf32> to vector<8x256xbf16>
    %c0_25 = arith.constant 0 : index
    %c1024 = arith.constant 1024 : index
    %29 = vector.load %arg11[%c0_25, %c1024] : memref<8x2304xbf16, #tpu.memory_space<vmem>>, vector<8x256xbf16>
    tpu.vector_store %arg11[%c0_25, %c1024], %28 {strides = array<i32>} : memref<8x2304xbf16, #tpu.memory_space<vmem>>, vector<8x256xbf16>,
    %c5 = arith.constant 5 : index
    %c0_26 = arith.constant 0 : index
    %c0_27 = arith.constant 0 : index
    %30 = vector.load %arg2[%c5, %c0_26, %c0_27] : memref<9x8x16xbf16, #tpu.memory_space<vmem>>, vector<1x8x16xbf16>
    %31 = vector.shape_cast %30 : vector<1x8x16xbf16> to vector<8x16xbf16>
    %cst_28 = arith.constant dense<0.000000e+00> : vector<8x256xf32>
    %32 = tpu.matmul %31, %2, %cst_28 {dimension_numbers = #tpu.dot_dimension_numbers<[1], [0], [0], [1], [0, 0, 1, 1], [], []>} : vector<8x16xbf16>, vector<16x256xbf16>, vector<8x256xf32> -> vector<8x256xf32>
    %33 = arith.truncf %32 : vector<8x256xf32> to vector<8x256xbf16>
    %c0_29 = arith.constant 0 : index
    %c1280 = arith.constant 1280 : index
    %34 = vector.load %arg11[%c0_29, %c1280] : memref<8x2304xbf16, #tpu.memory_space<vmem>>, vector<8x256xbf16>
    tpu.vector_store %arg11[%c0_29, %c1280], %33 {strides = array<i32>} : memref<8x2304xbf16, #tpu.memory_space<vmem>>, vector<8x256xbf16>,
    %c6 = arith.constant 6 : index
    %c0_30 = arith.constant 0 : index
    %c0_31 = arith.constant 0 : index
    %35 = vector.load %arg2[%c6, %c0_30, %c0_31] : memref<9x8x16xbf16, #tpu.memory_space<vmem>>, vector<1x8x16xbf16>
    %36 = vector.shape_cast %35 : vector<1x8x16xbf16> to vector<8x16xbf16>
    %cst_32 = arith.constant dense<0.000000e+00> : vector<8x256xf32>
    %37 = tpu.matmul %36, %2, %cst_32 {dimension_numbers = #tpu.dot_dimension_numbers<[1], [0], [0], [1], [0, 0, 1, 1], [], []>} : vector<8x16xbf16>, vector<16x256xbf16>, vector<8x256xf32> -> vector<8x256xf32>
    %38 = arith.truncf %37 : vector<8x256xf32> to vector<8x256xbf16>
    %c0_33 = arith.constant 0 : index
    %c1536 = arith.constant 1536 : index
    %39 = vector.load %arg11[%c0_33, %c1536] : memref<8x2304xbf16, #tpu.memory_space<vmem>>, vector<8x256xbf16>
    tpu.vector_store %arg11[%c0_33, %c1536], %38 {strides = array<i32>} : memref<8x2304xbf16, #tpu.memory_space<vmem>>, vector<8x256xbf16>,
    %c7 = arith.constant 7 : index
    %c0_34 = arith.constant 0 : index
    %c0_35 = arith.constant 0 : index
    %40 = vector.load %arg2[%c7, %c0_34, %c0_35] : memref<9x8x16xbf16, #tpu.memory_space<vmem>>, vector<1x8x16xbf16>
    %41 = vector.shape_cast %40 : vector<1x8x16xbf16> to vector<8x16xbf16>
    %cst_36 = arith.constant dense<0.000000e+00> : vector<8x256xf32>
    %42 = tpu.matmul %41, %2, %cst_36 {dimension_numbers = #tpu.dot_dimension_numbers<[1], [0], [0], [1], [0, 0, 1, 1], [], []>} : vector<8x16xbf16>, vector<16x256xbf16>, vector<8x256xf32> -> vector<8x256xf32>
    %43 = arith.truncf %42 : vector<8x256xf32> to vector<8x256xbf16>
    %c0_37 = arith.constant 0 : index
    %c1792 = arith.constant 1792 : index
    %44 = vector.load %arg11[%c0_37, %c1792] : memref<8x2304xbf16, #tpu.memory_space<vmem>>, vector<8x256xbf16>
    tpu.vector_store %arg11[%c0_37, %c1792], %43 {strides = array<i32>} : memref<8x2304xbf16, #tpu.memory_space<vmem>>, vector<8x256xbf16>,
    %c8 = arith.constant 8 : index
    %c0_38 = arith.constant 0 : index
    %c0_39 = arith.constant 0 : index
    %45 = vector.load %arg2[%c8, %c0_38, %c0_39] : memref<9x8x16xbf16, #tpu.memory_space<vmem>>, vector<1x8x16xbf16>
    %46 = vector.shape_cast %45 : vector<1x8x16xbf16> to vector<8x16xbf16>
    %cst_40 = arith.constant dense<0.000000e+00> : vector<8x256xf32>
    %47 = tpu.matmul %46, %2, %cst_40 {dimension_numbers = #tpu.dot_dimension_numbers<[1], [0], [0], [1], [0, 0, 1, 1], [], []>} : vector<8x16xbf16>, vector<16x256xbf16>, vector<8x256xf32> -> vector<8x256xf32>
    %48 = arith.truncf %47 : vector<8x256xf32> to vector<8x256xbf16>
    %c0_41 = arith.constant 0 : index
    %c2048 = arith.constant 2048 : index
    %49 = vector.load %arg11[%c0_41, %c2048] : memref<8x2304xbf16, #tpu.memory_space<vmem>>, vector<8x256xbf16>
    tpu.vector_store %arg11[%c0_41, %c2048], %48 {strides = array<i32>} : memref<8x2304xbf16, #tpu.memory_space<vmem>>, vector<8x256xbf16>,
    %c0_42 = arith.constant 0 : index
    %c0_43 = arith.constant 0 : index
    %50 = vector.load %arg11[%c0_42, %c0_43] : memref<8x2304xbf16, #tpu.memory_space<vmem>>, vector<8x2304xbf16>
    %c0_44 = arith.constant 0 : index
    %c0_45 = arith.constant 0 : index
    %51 = vector.load %arg3[%c0_44, %c0_45] : memref<2304x64xbf16, #tpu.memory_space<vmem>>, vector<2304x64xbf16>
    %cst_46 = arith.constant dense<0.000000e+00> : vector<8x64xf32>
    %52 = tpu.matmul %50, %51, %cst_46 {dimension_numbers = #tpu.dot_dimension_numbers<[1], [0], [0], [1], [0, 0, 1, 1], [], []>} : vector<8x2304xbf16>, vector<2304x64xbf16>, vector<8x64xf32> -> vector<8x64xf32>
    %c0_47 = arith.constant 0 : index
    %c0_48 = arith.constant 0 : index
    %53 = vector.load %arg4[%c0_47, %c0_48] : memref<8x1xf32, #tpu.memory_space<vmem>>, vector<8x1xf32>
    %54 = vector.broadcast %53 : vector<8x1xf32> to vector<8x64xf32>
    %55 = arith.addf %52, %54 : vector<8x64xf32>
    %cst_49 = arith.constant 0.000000e+00 : f32
    %56 = vector.broadcast %cst_49 : f32 to vector<8x64xf32>
    %57 = arith.maximumf %55, %56 : vector<8x64xf32>
    %58 = arith.truncf %57 : vector<8x64xf32> to vector<8x64xbf16>
    %c0_50 = arith.constant 0 : index
    %c0_51 = arith.constant 0 : index
    %c0_52 = arith.constant 0 : index
    %59 = vector.load %arg5[%c0_50, %c0_51, %c0_52] : memref<9x4x8xbf16, #tpu.memory_space<vmem>>, vector<1x4x8xbf16>
    %60 = vector.shape_cast %59 : vector<1x4x8xbf16> to vector<4x8xbf16>
    %cst_53 = arith.constant dense<0.000000e+00> : vector<4x64xf32>
    %61 = tpu.matmul %60, %58, %cst_53 {dimension_numbers = #tpu.dot_dimension_numbers<[1], [0], [0], [1], [0, 0, 1, 1], [], []>} : vector<4x8xbf16>, vector<8x64xbf16>, vector<4x64xf32> -> vector<4x64xf32>
    %62 = arith.truncf %61 : vector<4x64xf32> to vector<4x64xbf16>
    %c0_54 = arith.constant 0 : index
    %c0_55 = arith.constant 0 : index
    %63 = vector.load %arg12[%c0_54, %c0_55] : memref<4x1152xbf16, #tpu.memory_space<vmem>>, vector<4x64xbf16>
    tpu.vector_store %arg12[%c0_54, %c0_55], %62 {strides = array<i32>} : memref<4x1152xbf16, #tpu.memory_space<vmem>>, vector<4x64xbf16>,
    %c1_56 = arith.constant 1 : index
    %c0_57 = arith.constant 0 : index
    %c0_58 = arith.constant 0 : index
    %64 = vector.load %arg5[%c1_56, %c0_57, %c0_58] : memref<9x4x8xbf16, #tpu.memory_space<vmem>>, vector<1x4x8xbf16>
    %65 = vector.shape_cast %64 : vector<1x4x8xbf16> to vector<4x8xbf16>
    %cst_59 = arith.constant dense<0.000000e+00> : vector<4x64xf32>
    %66 = tpu.matmul %65, %58, %cst_59 {dimension_numbers = #tpu.dot_dimension_numbers<[1], [0], [0], [1], [0, 0, 1, 1], [], []>} : vector<4x8xbf16>, vector<8x64xbf16>, vector<4x64xf32> -> vector<4x64xf32>
    %67 = arith.truncf %66 : vector<4x64xf32> to vector<4x64xbf16>
    %c0_60 = arith.constant 0 : index
    %c128 = arith.constant 128 : index
    %68 = vector.load %arg12[%c0_60, %c128] : memref<4x1152xbf16, #tpu.memory_space<vmem>>, vector<4x64xbf16>
    tpu.vector_store %arg12[%c0_60, %c128], %67 {strides = array<i32>} : memref<4x1152xbf16, #tpu.memory_space<vmem>>, vector<4x64xbf16>,
    %c2_61 = arith.constant 2 : index
    %c0_62 = arith.constant 0 : index
    %c0_63 = arith.constant 0 : index
    %69 = vector.load %arg5[%c2_61, %c0_62, %c0_63] : memref<9x4x8xbf16, #tpu.memory_space<vmem>>, vector<1x4x8xbf16>
    %70 = vector.shape_cast %69 : vector<1x4x8xbf16> to vector<4x8xbf16>
    %cst_64 = arith.constant dense<0.000000e+00> : vector<4x64xf32>
    %71 = tpu.matmul %70, %58, %cst_64 {dimension_numbers = #tpu.dot_dimension_numbers<[1], [0], [0], [1], [0, 0, 1, 1], [], []>} : vector<4x8xbf16>, vector<8x64xbf16>, vector<4x64xf32> -> vector<4x64xf32>
    %72 = arith.truncf %71 : vector<4x64xf32> to vector<4x64xbf16>
    %c0_65 = arith.constant 0 : index
    %c256_66 = arith.constant 256 : index
    %73 = vector.load %arg12[%c0_65, %c256_66] : memref<4x1152xbf16, #tpu.memory_space<vmem>>, vector<4x64xbf16>
    tpu.vector_store %arg12[%c0_65, %c256_66], %72 {strides = array<i32>} : memref<4x1152xbf16, #tpu.memory_space<vmem>>, vector<4x64xbf16>,
    %c3_67 = arith.constant 3 : index
    %c0_68 = arith.constant 0 : index
    %c0_69 = arith.constant 0 : index
    %74 = vector.load %arg5[%c3_67, %c0_68, %c0_69] : memref<9x4x8xbf16, #tpu.memory_space<vmem>>, vector<1x4x8xbf16>
    %75 = vector.shape_cast %74 : vector<1x4x8xbf16> to vector<4x8xbf16>
    %cst_70 = arith.constant dense<0.000000e+00> : vector<4x64xf32>
    %76 = tpu.matmul %75, %58, %cst_70 {dimension_numbers = #tpu.dot_dimension_numbers<[1], [0], [0], [1], [0, 0, 1, 1], [], []>} : vector<4x8xbf16>, vector<8x64xbf16>, vector<4x64xf32> -> vector<4x64xf32>
    %77 = arith.truncf %76 : vector<4x64xf32> to vector<4x64xbf16>
    %c0_71 = arith.constant 0 : index
    %c384 = arith.constant 384 : index
    %78 = vector.load %arg12[%c0_71, %c384] : memref<4x1152xbf16, #tpu.memory_space<vmem>>, vector<4x64xbf16>
    tpu.vector_store %arg12[%c0_71, %c384], %77 {strides = array<i32>} : memref<4x1152xbf16, #tpu.memory_space<vmem>>, vector<4x64xbf16>,
    %c4_72 = arith.constant 4 : index
    %c0_73 = arith.constant 0 : index
    %c0_74 = arith.constant 0 : index
    %79 = vector.load %arg5[%c4_72, %c0_73, %c0_74] : memref<9x4x8xbf16, #tpu.memory_space<vmem>>, vector<1x4x8xbf16>
    %80 = vector.shape_cast %79 : vector<1x4x8xbf16> to vector<4x8xbf16>
    %cst_75 = arith.constant dense<0.000000e+00> : vector<4x64xf32>
    %81 = tpu.matmul %80, %58, %cst_75 {dimension_numbers = #tpu.dot_dimension_numbers<[1], [0], [0], [1], [0, 0, 1, 1], [], []>} : vector<4x8xbf16>, vector<8x64xbf16>, vector<4x64xf32> -> vector<4x64xf32>
    %82 = arith.truncf %81 : vector<4x64xf32> to vector<4x64xbf16>
    %c0_76 = arith.constant 0 : index
    %c512_77 = arith.constant 512 : index
    %83 = vector.load %arg12[%c0_76, %c512_77] : memref<4x1152xbf16, #tpu.memory_space<vmem>>, vector<4x64xbf16>
    tpu.vector_store %arg12[%c0_76, %c512_77], %82 {strides = array<i32>} : memref<4x1152xbf16, #tpu.memory_space<vmem>>, vector<4x64xbf16>,
    %c5_78 = arith.constant 5 : index
    %c0_79 = arith.constant 0 : index
    %c0_80 = arith.constant 0 : index
    %84 = vector.load %arg5[%c5_78, %c0_79, %c0_80] : memref<9x4x8xbf16, #tpu.memory_space<vmem>>, vector<1x4x8xbf16>
    %85 = vector.shape_cast %84 : vector<1x4x8xbf16> to vector<4x8xbf16>
    %cst_81 = arith.constant dense<0.000000e+00> : vector<4x64xf32>
    %86 = tpu.matmul %85, %58, %cst_81 {dimension_numbers = #tpu.dot_dimension_numbers<[1], [0], [0], [1], [0, 0, 1, 1], [], []>} : vector<4x8xbf16>, vector<8x64xbf16>, vector<4x64xf32> -> vector<4x64xf32>
    %87 = arith.truncf %86 : vector<4x64xf32> to vector<4x64xbf16>
    %c0_82 = arith.constant 0 : index
    %c640 = arith.constant 640 : index
    %88 = vector.load %arg12[%c0_82, %c640] : memref<4x1152xbf16, #tpu.memory_space<vmem>>, vector<4x64xbf16>
    tpu.vector_store %arg12[%c0_82, %c640], %87 {strides = array<i32>} : memref<4x1152xbf16, #tpu.memory_space<vmem>>, vector<4x64xbf16>,
    %c6_83 = arith.constant 6 : index
    %c0_84 = arith.constant 0 : index
    %c0_85 = arith.constant 0 : index
    %89 = vector.load %arg5[%c6_83, %c0_84, %c0_85] : memref<9x4x8xbf16, #tpu.memory_space<vmem>>, vector<1x4x8xbf16>
    %90 = vector.shape_cast %89 : vector<1x4x8xbf16> to vector<4x8xbf16>
    %cst_86 = arith.constant dense<0.000000e+00> : vector<4x64xf32>
    %91 = tpu.matmul %90, %58, %cst_86 {dimension_numbers = #tpu.dot_dimension_numbers<[1], [0], [0], [1], [0, 0, 1, 1], [], []>} : vector<4x8xbf16>, vector<8x64xbf16>, vector<4x64xf32> -> vector<4x64xf32>
    %92 = arith.truncf %91 : vector<4x64xf32> to vector<4x64xbf16>
    %c0_87 = arith.constant 0 : index
    %c768_88 = arith.constant 768 : index
    %93 = vector.load %arg12[%c0_87, %c768_88] : memref<4x1152xbf16, #tpu.memory_space<vmem>>, vector<4x64xbf16>
    tpu.vector_store %arg12[%c0_87, %c768_88], %92 {strides = array<i32>} : memref<4x1152xbf16, #tpu.memory_space<vmem>>, vector<4x64xbf16>,
    %c7_89 = arith.constant 7 : index
    %c0_90 = arith.constant 0 : index
    %c0_91 = arith.constant 0 : index
    %94 = vector.load %arg5[%c7_89, %c0_90, %c0_91] : memref<9x4x8xbf16, #tpu.memory_space<vmem>>, vector<1x4x8xbf16>
    %95 = vector.shape_cast %94 : vector<1x4x8xbf16> to vector<4x8xbf16>
    %cst_92 = arith.constant dense<0.000000e+00> : vector<4x64xf32>
    %96 = tpu.matmul %95, %58, %cst_92 {dimension_numbers = #tpu.dot_dimension_numbers<[1], [0], [0], [1], [0, 0, 1, 1], [], []>} : vector<4x8xbf16>, vector<8x64xbf16>, vector<4x64xf32> -> vector<4x64xf32>
    %97 = arith.truncf %96 : vector<4x64xf32> to vector<4x64xbf16>
    %c0_93 = arith.constant 0 : index
    %c896 = arith.constant 896 : index
    %98 = vector.load %arg12[%c0_93, %c896] : memref<4x1152xbf16, #tpu.memory_space<vmem>>, vector<4x64xbf16>
    tpu.vector_store %arg12[%c0_93, %c896], %97 {strides = array<i32>} : memref<4x1152xbf16, #tpu.memory_space<vmem>>, vector<4x64xbf16>,
    %c8_94 = arith.constant 8 : index
    %c0_95 = arith.constant 0 : index
    %c0_96 = arith.constant 0 : index
    %99 = vector.load %arg5[%c8_94, %c0_95, %c0_96] : memref<9x4x8xbf16, #tpu.memory_space<vmem>>, vector<1x4x8xbf16>
    %100 = vector.shape_cast %99 : vector<1x4x8xbf16> to vector<4x8xbf16>
    %cst_97 = arith.constant dense<0.000000e+00> : vector<4x64xf32>
    %101 = tpu.matmul %100, %58, %cst_97 {dimension_numbers = #tpu.dot_dimension_numbers<[1], [0], [0], [1], [0, 0, 1, 1], [], []>} : vector<4x8xbf16>, vector<8x64xbf16>, vector<4x64xf32> -> vector<4x64xf32>
    %102 = arith.truncf %101 : vector<4x64xf32> to vector<4x64xbf16>
    %c0_98 = arith.constant 0 : index
    %c1024_99 = arith.constant 1024 : index
    %103 = vector.load %arg12[%c0_98, %c1024_99] : memref<4x1152xbf16, #tpu.memory_space<vmem>>, vector<4x64xbf16>
    tpu.vector_store %arg12[%c0_98, %c1024_99], %102 {strides = array<i32>} : memref<4x1152xbf16, #tpu.memory_space<vmem>>, vector<4x64xbf16>,
    %c0_100 = arith.constant 0 : index
    %c0_101 = arith.constant 0 : index
    %104 = vector.load %arg12[%c0_100, %c0_101] : memref<4x1152xbf16, #tpu.memory_space<vmem>>, vector<4x1152xbf16>
    %c0_102 = arith.constant 0 : index
    %c0_103 = arith.constant 0 : index
    %105 = vector.load %arg6[%c0_102, %c0_103] : memref<1152x16xbf16, #tpu.memory_space<vmem>>, vector<1152x16xbf16>
    %cst_104 = arith.constant dense<0.000000e+00> : vector<4x16xf32>
    %106 = tpu.matmul %104, %105, %cst_104 {dimension_numbers = #tpu.dot_dimension_numbers<[1], [0], [0], [1], [0, 0, 1, 1], [], []>} : vector<4x1152xbf16>, vector<1152x16xbf16>, vector<4x16xf32> -> vector<4x16xf32>
    %c0_105 = arith.constant 0 : index
    %c0_106 = arith.constant 0 : index
    %107 = vector.load %arg7[%c0_105, %c0_106] : memref<4x1xf32, #tpu.memory_space<vmem>>, vector<4x1xf32>
    %108 = vector.broadcast %107 : vector<4x1xf32> to vector<4x16xf32>
    %109 = arith.addf %106, %108 : vector<4x16xf32>
    %cst_107 = arith.constant 0.000000e+00 : f32
    %110 = vector.broadcast %cst_107 : f32 to vector<4x16xf32>
    %111 = arith.maximumf %109, %110 : vector<4x16xf32>
    %112 = arith.truncf %111 : vector<4x16xf32> to vector<4x16xbf16>
    %c0_108 = arith.constant 0 : index
    %c0_109 = arith.constant 0 : index
    %113 = vector.load %arg8[%c0_108, %c0_109] : memref<16x512xbf16, #tpu.memory_space<vmem>>, vector<16x512xbf16>
    %cst_110 = arith.constant dense<0.000000e+00> : vector<4x512xf32>
    %114 = tpu.matmul %112, %113, %cst_110 {dimension_numbers = #tpu.dot_dimension_numbers<[1], [0], [0], [1], [0, 0, 1, 1], [], []>} : vector<4x16xbf16>, vector<16x512xbf16>, vector<4x512xf32> -> vector<4x512xf32>
    %c0_111 = arith.constant 0 : index
    %c0_112 = arith.constant 0 : index
    %115 = vector.load %arg9[%c0_111, %c0_112] : memref<1x512xf32, #tpu.memory_space<vmem>>, vector<1x512xf32>
    %116 = vector.broadcast %115 : vector<1x512xf32> to vector<4x512xf32>
    %117 = arith.addf %114, %116 : vector<4x512xf32>
    %c0_113 = arith.constant 0 : index
    %c0_114 = arith.constant 0 : index
    %c0_115 = arith.constant 0 : index
    %118 = vector.load %arg10[%c0_113, %c0_114, %c0_115] : memref<1x4x512xf32, #tpu.memory_space<vmem>>, vector<1x4x512xf32>
    %119 = vector.shape_cast %118 : vector<1x4x512xf32> to vector<4x512xf32>
    %120 = vector.shape_cast %117 : vector<4x512xf32> to vector<1x4x512xf32>
    tpu.vector_store %arg10[%c0_113, %c0_114, %c0_115], %120 {strides = array<i32>} : memref<1x4x512xf32, #tpu.memory_space<vmem>>, vector<1x4x512xf32>,
    return
  }
  func.func @transform_0(%arg0: i32) -> (i32, i32, i32) {
    %c0_i32 = arith.constant 0 : i32
    %c0_i32_0 = arith.constant 0 : i32
    %c0_i32_1 = arith.constant 0 : i32
    return %arg0, %c0_i32, %c0_i32_0 : i32, i32, i32
  }
  func.func @transform_1(%arg0: i32) -> (i32, i32, i32) {
    %c0_i32 = arith.constant 0 : i32
    %c0_i32_0 = arith.constant 0 : i32
    %c0_i32_1 = arith.constant 0 : i32
    %c0_i32_2 = arith.constant 0 : i32
    return %c0_i32, %c0_i32_0, %c0_i32_1 : i32, i32, i32
  }
  func.func @transform_2(%arg0: i32) -> (i32, i32) {
    %c0_i32 = arith.constant 0 : i32
    %c0_i32_0 = arith.constant 0 : i32
    %c0_i32_1 = arith.constant 0 : i32
    return %c0_i32, %c0_i32_0 : i32, i32
  }
  func.func @transform_3(%arg0: i32) -> (i32, i32) {
    %c0_i32 = arith.constant 0 : i32
    %c0_i32_0 = arith.constant 0 : i32
    %c0_i32_1 = arith.constant 0 : i32
    return %c0_i32, %c0_i32_0 : i32, i32
  }
  func.func @transform_4(%arg0: i32) -> (i32, i32, i32) {
    %c0_i32 = arith.constant 0 : i32
    %c0_i32_0 = arith.constant 0 : i32
    %c0_i32_1 = arith.constant 0 : i32
    %c0_i32_2 = arith.constant 0 : i32
    return %c0_i32, %c0_i32_0, %c0_i32_1 : i32, i32, i32
  }
  func.func @transform_5(%arg0: i32) -> (i32, i32) {
    %c0_i32 = arith.constant 0 : i32
    %c0_i32_0 = arith.constant 0 : i32
    %c0_i32_1 = arith.constant 0 : i32
    return %c0_i32, %c0_i32_0 : i32, i32
  }
  func.func @transform_6(%arg0: i32) -> (i32, i32) {
    %c0_i32 = arith.constant 0 : i32
    %c0_i32_0 = arith.constant 0 : i32
    %c0_i32_1 = arith.constant 0 : i32
    return %c0_i32, %c0_i32_0 : i32, i32
  }
  func.func @transform_7(%arg0: i32) -> (i32, i32) {
    %c0_i32 = arith.constant 0 : i32
    %c0_i32_0 = arith.constant 0 : i32
    %c0_i32_1 = arith.constant 0 : i32
    return %c0_i32, %c0_i32_0 : i32, i32
  }
  func.func @transform_8(%arg0: i32) -> (i32, i32) {
    %c0_i32 = arith.constant 0 : i32
    %c0_i32_0 = arith.constant 0 : i32
    %c0_i32_1 = arith.constant 0 : i32
    return %c0_i32, %c0_i32_0 : i32, i32
  }
  func.func @transform_9(%arg0: i32) -> (i32, i32, i32) {
    %c0_i32 = arith.constant 0 : i32
    %c0_i32_0 = arith.constant 0 : i32
    %c0_i32_1 = arith.constant 0 : i32
    return %arg0, %c0_i32, %c0_i32_0 : i32, i32, i32
  }
}

</mosaic_0001>

<bundles_post_ra>
// kernel: tpu_custom_call.1
= control target key start
LH: loop header
LB: loop body
LE: loop exit
PB: predicated region body
PF: predicated region fallthrough
CT: control target
= control target key end

     0   :  { %v4503_v5 = vmov 0   ;;  %vm44_vm0 = vcmask 130048   ;;  %s5432_s0 = inlined_call_operand.vmem [shape: f32[1,16,256], index: 0, kind: input, shape index: {}]   ;;  %s5433_s1 = inlined_call_operand.vmem [shape: bf16[9,8,16], index: 1, kind: input, shape index: {}]   ;;  %s5434_s2 = inlined_call_operand.vmem [shape: bf16[2304,64], index: 2, kind: input, shape index: {}]   ;;  %s5435_s3 = inlined_call_operand.vmem [shape: f32[8,1], index: 3, kind: input, shape index: {}]   ;;  %s5436_s4 = inlined_call_operand.vmem [shape: bf16[9,4,8], index: 4, kind: input, shape index: {}]   ;;  %s5437_s5 = inlined_call_operand.vmem [shape: bf16[1152,16], index: 5, kind: input, shape index: {}]   ;;  %s5438_s6 = inlined_call_operand.vmem [shape: f32[4,1], index: 6, kind: input, shape index: {}]   ;;  %s5439_s7 = inlined_call_operand.vmem [shape: bf16[16,512], index: 7, kind: input, shape index: {}]   ;;  %s5440_s8 = inlined_call_operand.vmem [shape: f32[1,512], index: 8, kind: input, shape index: {}]   ;;  %s5441_s9 = inlined_call_operand.hbm [shape: f32[1,4,512], index: 9, kind: output, shape index: {}]  }
   0x1   :  { %v35_v0 = vld [vmem:[%s5432_s0 + $0x8] sm:$0xff]  ;;  %v37_v1 = vld [vmem:[%s5432_s0 + $0x18] sm:$0xff]  ;;  %v34_v2 = vld [vmem:[%s5432_s0] sm:$0xff]  ;;  %80 = vmatprep.mubr.bf16.mxu1 %v4503_v5  ;;  %40 = vst [vmem:[#allocation3] sm:$0xff] %v4503_v5  ;;  %190 = vmatprep.mubr.bf16.mxu0 %v4503_v5 }
   0x2   :  { %v39_v3 = vpack.c.bf16 %v37_v1, %v35_v0  ;;  %v36_v4 = vld [vmem:[%s5432_s0 + $0x10] sm:$0xff]  ;;  %41 = vst [vmem:[#allocation3 + $0x8] sm:$0xff] %v4503_v5  ;;  %42 = vst [vmem:[#allocation3 + $0x10] sm:$0x3] %v4503_v5  ;;  %4256 = vset.pattern.permute.xlu0 %v4503_v5  ;;  %v43_v7 = vld [vmem:[%s5433_s1] sm:$0xf] }
   0x3   :  { %v38_v6 = vpack.c.bf16 %v36_v4, %v34_v2  ;;  %v3558_v8 = vld [vmem:[%s5433_s1 + $0x8] sm:$0xf]  ;;  %v3555_v9 = vld [vmem:[%s5433_s1 + $0x4] sm:$0xf]  ;;  %v3564_v10 = vld [vmem:[%s5433_s1 + $0x10] sm:$0xf] }
   0x4   :  { %62 = vmatprep.subr.bf16.mxu1 %v39_v3  ;;  %172 = vmatprep.subr.bf16.mxu0 %v39_v3  ;;  %v3561_v11 = vld [vmem:[%s5433_s1 + $0xc] sm:$0xf]  ;;  %v3570_v12 = vld [vmem:[%s5433_s1 + $0x18] sm:$0xf]  ;;  %v3567_v14 = vld [vmem:[%s5433_s1 + $0x14] sm:$0xf] }
   0x5   :  { %63 = vmatpush1.bf16.msra.mxu1 %v38_v6  ;;  %173 = vmatpush1.bf16.msra.mxu0 %v38_v6  ;;  %v4262_v13 = vld [vmem:[%s5434_s2 + $0xf8] sm:$0xff]   ;;  %v3576_v15 = vld [vmem:[%s5433_s1 + $0x20] sm:$0xf]  ;;  %v4266_v18 = vld [vmem:[%s5434_s2 + $0xf0] sm:$0xff]  }
   0x6   :  { %117 = vmatprep.subr.bf16.mxu1 %v39_v3  ;;  %282 = vmatprep.subr.bf16.mxu0 %v39_v3  ;;  %v4257_v16 = vld [vmem:[%s5434_s2 + $0x78] sm:$0xff]   ;;  %v4268_v19 = vld [vmem:[%s5434_s2 + $0xb0] sm:$0xff]   ;;  %v4270_v20 = vld [vmem:[%s5434_s2 + $0xe8] sm:$0xff]  }
   0x7   :  { %v4264_v17 = vld [vmem:[%s5434_s2 + $0xb8] sm:$0xff]   ;;  %v4259_v23 = vld [vmem:[%s5434_s2 + $0x70] sm:$0xff]   ;;  %v4272_v24 = vld [vmem:[%s5434_s2 + $0xa8] sm:$0xff]  }
   0x8   :  { %3553 = vmatmul.mubr.msk.bf16.vlgmr.msra.gmra.mxu1 %vm44_vm0, %v43_v7  ;;  %3559 = vmatmul.mubr.msk.bf16.vlgmr.msra.gmra.mxu0 %vm44_vm0, %v3558_v8  ;;  %v3573_v21 = vld [vmem:[%s5433_s1 + $0x1c] sm:$0xf]  ;;  %v4274_v25 = vld [vmem:[%s5434_s2 + $0xe0] sm:$0xff]   ;;  %v4260_v26 = vld [vmem:[%s5434_s2 + $0x30] sm:$0xff]  }
   0x9   :  { %118 = vmatpush1.bf16.msra.mxu1 %v38_v6  ;;  %135 = vmatprep.mubr.bf16.mxu1 %v4503_v5  ;;  %v4258_v22 = vld [vmem:[%s5434_s2 + $0x38] sm:$0xff]   ;;  %v4261_v27 = vld [vmem:[%s5434_s2 + $0x68] sm:$0xff]   ;;  %v4276_v28 = vld [vmem:[%s5434_s2 + $0xa0] sm:$0xff]  }
   0xa   :  { %227 = vmatprep.subr.bf16.mxu1 %v39_v3  ;;  %283 = vmatpush1.bf16.msra.mxu0 %v38_v6  ;;  %v4278_v29 = vld [vmem:[%s5434_s2 + $0xd8] sm:$0xff]   ;;  %v4263_v30 = vld [vmem:[%s5434_s2 + $0x28] sm:$0xff]   ;;  %v4265_v31 = vld [vmem:[%s5434_s2 + $0x60] sm:$0xff]  }
   0xb   :  { %300 = vmatprep.mubr.bf16.mxu0 %v4503_v5  ;;  %392 = vmatprep.subr.bf16.mxu0 %v39_v3  ;;  %v4280_v32 = vld [vmem:[%s5434_s2 + $0x98] sm:$0xff]   ;;  %v4267_v33 = vld [vmem:[%s5434_s2 + $0x20] sm:$0xff]   ;;  %v4273_v36 = vld [vmem:[%s5434_s2 + $0x50] sm:$0xff]  }
   0xc   :  { %v4269_v34 = vld [vmem:[%s5434_s2 + $0x58] sm:$0xff]   ;;  %v4275_v37 = vld [vmem:[%s5434_s2 + $0x10] sm:$0xff]   ;;  %v4277_v38 = vld [vmem:[%s5434_s2 + $0x48] sm:$0xff]  }
   0xd   :  { %v4271_v35 = vld [vmem:[%s5434_s2 + $0x18] sm:$0xff]   ;;  %v4279_v39 = vld [vmem:[%s5434_s2 + $0x8] sm:$0xff]   ;;  %v4281_v40 = vld [vmem:[%s5434_s2 + $0x40] sm:$0xff]  }
   0xe   :  { %v4282_v41 = vld [vmem:[%s5434_s2 + $0xd0] sm:$0xff]   ;;  %v4283_v42 = vld [vmem:[%s5434_s2] sm:$0xff]   ;;  %v4285_v44 = vld [vmem:[%s5434_s2 + $0xc8] sm:$0xff]  }
   0xf   :  { %v4284_v43 = vld [vmem:[%s5434_s2 + $0x90] sm:$0xff]   ;;  %v4286_v45 = vld [vmem:[%s5434_s2 + $0x178] sm:$0xff]   ;;  %v4287_v46 = vld [vmem:[%s5434_s2 + $0x88] sm:$0xff]  }
  0x10   :  { %3556 = vmatmul.mubr.msk.bf16.vlgmr.msra.gmra.mxu1 %vm44_vm0, %v3555_v9  ;;  %3565 = vmatmul.mubr.msk.bf16.vlgmr.msra.gmra.mxu0 %vm44_vm0, %v3564_v10  ;;  %v4289_v47 = vld [vmem:[%s5434_s2 + $0xc0] sm:$0xff]   ;;  %v4294_v49 = vld [vmem:[%s5434_s2 + $0x1f8] sm:$0xff]  }
  0x11   :  { %228 = vmatpush1.bf16.msra.mxu1 %v38_v6  ;;  %245 = vmatprep.mubr.bf16.mxu1 %v4503_v5  ;;  %v4291_v48 = vld [vmem:[%s5434_s2 + $0x80] sm:$0xff]  }
  0x12   :  { %337 = vmatprep.subr.bf16.mxu1 %v39_v3  ;;  %393 = vmatpush1.bf16.msra.mxu0 %v38_v6  ;;  %v835_v50 = vld [vmem:[%s5435_s3] sm:$0xff] }
  0x13   :  { %410 = vmatprep.mubr.bf16.mxu0 %v4503_v5  ;;  %502 = vmatprep.subr.bf16.mxu0 %v39_v3 }
  0x14   :  { %838 = vperm.xlu0 %4256, %v835_v50  }
  0x18   :  { %3562 = vmatmul.mubr.msk.bf16.vlgmr.msra.gmra.mxu1 %vm44_vm0, %v3561_v11  ;;  %3571 = vmatmul.mubr.msk.bf16.vlgmr.msra.gmra.mxu0 %vm44_vm0, %v3570_v12 }
  0x19   :  { %338 = vmatpush1.bf16.msra.mxu1 %v38_v6  ;;  %355 = vmatprep.mubr.bf16.mxu1 %v4503_v5 }
  0x1a   :  { %447 = vmatprep.subr.bf16.mxu1 %v39_v3  ;;  %503 = vmatpush1.bf16.msra.mxu0 %v38_v6 }
  0x1b   :  { %520 = vmatprep.mubr.bf16.mxu0 %v4503_v5  ;;  %3886 = vmatprep.subr.bf16.mxu0 %v4262_v13 }
  0x20   :  { %3568 = vmatmul.mubr.msk.bf16.vlgmr.msra.gmra.mxu1 %vm44_vm0, %v3567_v14  ;;  %3577 = vmatmul.mubr.msk.bf16.vlgmr.msra.gmra.mxu0 %vm44_vm0, %v3576_v15 }
  0x21   :  { %448 = vmatpush1.bf16.msra.mxu1 %v38_v6  ;;  %465 = vmatprep.mubr.bf16.mxu1 %v4503_v5 }
  0x22   :  { %3864 = vmatprep.subr.bf16.mxu1 %v4257_v16  ;;  %3887 = vmatpush3.bf16.msra.mxu0 %v4264_v17 }
  0x23   :  { %3888 = vmatprep.subr.bf16.mxu0 %v4266_v18 }
  0x26   :  { %3889 = vmatpush3.bf16.msra.mxu0 %v4268_v19 }
  0x27   :  { %3890 = vmatprep.subr.bf16.mxu0 %v4270_v20 }
  0x28   :  { %3574 = vmatmul.mubr.msk.bf16.vlgmr.msra.gmra.mxu1 %vm44_vm0, %v3573_v21 }
  0x29   :  { %3865 = vmatpush3.bf16.msra.mxu1 %v4258_v22 }
  0x2a   :  { %3866 = vmatprep.subr.bf16.mxu1 %v4259_v23  ;;  %3891 = vmatpush3.bf16.msra.mxu0 %v4272_v24 }
  0x2b   :  { %3892 = vmatprep.subr.bf16.mxu0 %v4274_v25 }
  0x2d   :  { %3867 = vmatpush3.bf16.msra.mxu1 %v4260_v26 }
  0x2e   :  { %3868 = vmatprep.subr.bf16.mxu1 %v4261_v27  ;;  %3893 = vmatpush3.bf16.msra.mxu0 %v4276_v28 }
  0x2f   :  { %3894 = vmatprep.subr.bf16.mxu0 %v4278_v29 }
  0x31   :  { %3869 = vmatpush3.bf16.msra.mxu1 %v4263_v30 }
  0x32   :  { %3870 = vmatprep.subr.bf16.mxu1 %v4265_v31  ;;  %3895 = vmatpush3.bf16.msra.mxu0 %v4280_v32 }
  0x33   :  { %3896 = vmatprep.subr.bf16.mxu0 %v4282_v41 }
  0x35   :  { %3871 = vmatpush3.bf16.msra.mxu1 %v4267_v33 }
  0x36   :  { %3872 = vmatprep.subr.bf16.mxu1 %v4269_v34  ;;  %3897 = vmatpush3.bf16.msra.mxu0 %v4284_v43 }
  0x37   :  { %3898 = vmatprep.subr.bf16.mxu0 %v4285_v44 }
  0x39   :  { %3873 = vmatpush3.bf16.msra.mxu1 %v4271_v35 }
  0x3a   :  { %3874 = vmatprep.subr.bf16.mxu1 %v4273_v36  ;;  %3899 = vmatpush3.bf16.msra.mxu0 %v4287_v46 }
  0x3b   :  { %3900 = vmatprep.subr.bf16.mxu0 %v4289_v47 }
  0x3d   :  { %3875 = vmatpush3.bf16.msra.mxu1 %v4275_v37 }
  0x3e   :  { %3876 = vmatprep.subr.bf16.mxu1 %v4277_v38  ;;  %3901 = vmatpush3.bf16.msra.mxu0 %v4291_v48 }
  0x3f   :  { %3930 = vmatprep.subr.bf16.mxu0 %v4294_v49 }
  0x41   :  { %3877 = vmatpush3.bf16.msra.mxu1 %v4279_v39 }
  0x42   :  { %3878 = vmatprep.subr.bf16.mxu1 %v4281_v40 }
  0x45   :  { %3879 = vmatpush3.bf16.msra.mxu1 %v4283_v42 }
  0x46   :  { %3908 = vmatprep.subr.bf16.mxu1 %v4286_v45 }
  0x47   :  { %14 = vsyncpa [#allocation5], 0  ;;  %v4288_v56 = vld [vmem:[%s5434_s2 + $0x138] sm:$0xff]   ;;  %v4290_v60 = vld [vmem:[%s5434_s2 + $0x170] sm:$0xff]   ;;  %vm4505_vm1 = vmmov 0   ;;  %vm2135_vm2 = vcmask 1043456  }
  0x48   :  { %v2705_v0 = vld [vmem:[%s5438_s6] sm:$0xf]  ;;  %v4292_v1 = vld [vmem:[%s5434_s2 + $0x130] sm:$0xff]   ;;  %v4293_v3 = vld [vmem:[%s5434_s2 + $0x168] sm:$0xff]   ;;  %vm2131_vm3 = vcmask 64512   ;;  %vm2180_vm4 = vcmask 517120  }
  0x49   :  { %2708 = vperm.xlu0 %4256, %v2705_v0   ;;  %v4295_v10 = vld [vmem:[%s5434_s2 + $0x128] sm:$0xff]   ;;  %v4296_v11 = vld [vmem:[%s5434_s2 + $0x1b8] sm:$0xff]   ;;  %v4297_v12 = vld [vmem:[%s5434_s2 + $0x160] sm:$0xff]  }
  0x4a   :  { %v4298_v13 = vld [vmem:[%s5434_s2 + $0x1f0] sm:$0xff]   ;;  %v4299_v18 = vld [vmem:[%s5434_s2 + $0x120] sm:$0xff]   ;;  %v4301_v20 = vld [vmem:[%s5434_s2 + $0x158] sm:$0xff]  }
  0x4b   :  { %v4300_v19 = vld [vmem:[%s5434_s2 + $0x1b0] sm:$0xff]   ;;  %v4302_v21 = vld [vmem:[%s5434_s2 + $0x1e8] sm:$0xff]   ;;  %v4303_v26 = vld [vmem:[%s5434_s2 + $0x118] sm:$0xff]  }
  0x4c   :  { %v4304_v27 = vld [vmem:[%s5434_s2 + $0x1a8] sm:$0xff]   ;;  %v4305_v29 = vld [vmem:[%s5434_s2 + $0x150] sm:$0xff]   ;;  %v4306_v30 = vld [vmem:[%s5434_s2 + $0x1e0] sm:$0xff]  }
  0x4d   :  { %v4307_v35 = vld [vmem:[%s5434_s2 + $0x110] sm:$0xff]   ;;  %v4308_v36 = vld [vmem:[%s5434_s2 + $0x1a0] sm:$0xff]   ;;  %v4309_v37 = vld [vmem:[%s5434_s2 + $0x148] sm:$0xff]  }
  0x4e   :  { %v4310_v38 = vld [vmem:[%s5434_s2 + $0x1d8] sm:$0xff]   ;;  %v4311_v43 = vld [vmem:[%s5434_s2 + $0x108] sm:$0xff]   ;;  %v4313_v45 = vld [vmem:[%s5434_s2 + $0x140] sm:$0xff]  }
  0x4f   :  { %v4312_v44 = vld [vmem:[%s5434_s2 + $0x198] sm:$0xff]   ;;  %v4314_v46 = vld [vmem:[%s5434_s2 + $0x1d0] sm:$0xff]  }
  0xc8   :  { %v82_v51 = vpop.f32.mrf.mxu1  ;;  %v4724_v52 = vpop.f32.mrf.mxu0 }
  0xc9   :  { %v3846_v58 = vpack.c.bf16 %v82_v51, %v82_v51  ;;  %v4315_v51 = vld [vmem:[%s5434_s2 + $0x100] sm:$0xff]  }
  0xca   :  { %v84_v53 = vpop.f32.mrf.mxu1  ;;  %v194_v54 = vpop.f32.mrf.mxu0 }
  0xcb   :  { %v3847_v55 = vpack.c.bf16 %v84_v53, %v84_v53  ;;  %v3851_v57 = vpack.c.bf16 %v194_v54, %v194_v54  ;;  %v4316_v53 = vld [vmem:[%s5434_s2 + $0x190] sm:$0xff]   ;;  %v4317_v54 = vld [vmem:[%s5434_s2 + $0x1c8] sm:$0xff]  }
  0xcc   :  { %v86_v59 = vpop.f32.mrf.mxu1  ;;  %v196_v61 = vpop.f32.mrf.mxu0 }
  0xcd   :  { %1800 = vmatprep.mubr.bf16.mxu1 %v3847_v55  ;;  %v4318_v55 = vld [vmem:[%s5434_s2 + $0x278] sm:$0xff]   ;;  %v4321_v61 = vld [vmem:[%s5434_s2 + $0x1c0] sm:$0xff]  }
  0xce   :  { %v87_v62 = vpop.f32.mrf.mxu1  ;;  %1801 = vmatmul.mubr.bf16.vlgmr.msra.gmra.mxu1 %v3846_v58  ;;  %v197_v63 = vpop.f32.mrf.mxu0  ;;  %v4319_v58 = vld [vmem:[%s5434_s2 + $0x188] sm:$0xff]   ;;  %v4320_v59 = vld [vmem:[%s5434_s2 + $0x238] sm:$0xff]  }
  0xcf   :  { %3909 = vmatpush3.bf16.msra.mxu1 %v4288_v56  ;;  %1880 = vmatprep.mubr.bf16.mxu1 %v3851_v57  ;;  %v4322_v62 = vld [vmem:[%s5434_s2 + $0x270] sm:$0xff]  }
  0xd0   :  { %v137_v2 = vpop.f32.mrf.mxu1  ;;  %3910 = vmatprep.subr.bf16.mxu1 %v4290_v60  ;;  %v4741_v4 = vpop.f32.mrf.mxu0  ;;  %v3850_v60 = vpack.c.bf16 %v4724_v52, %v4724_v52  ;;  %v4323_v52 = vld [vmem:[%s5434_s2 + $0x180] sm:$0xff]  }
  0xd1   :  { %v3848_v6 = vpack.c.bf16 %v137_v2, %v137_v2  ;;  %v4324_v2 = vld [vmem:[%s5434_s2 + $0x230] sm:$0xff]  }
  0xd2   :  { %v139_v7 = vpop.f32.mrf.mxu1  ;;  %v4743_v8 = vpop.f32.mrf.mxu0 }
  0xd3   :  { %v3849_v9 = vpack.c.bf16 %v139_v7, %v139_v7  ;;  %3911 = vmatpush3.bf16.msra.mxu1 %v4292_v1  ;;  %v3855_v0 = vpack.c.bf16 %v4743_v8, %v4743_v8  ;;  %v4327_v8 = vld [vmem:[%s5434_s2 + $0x228] sm:$0xff]  }
  0xd4   :  { %3912 = vmatprep.subr.bf16.mxu1 %v4293_v3  ;;  %v141_v14 = vpop.f32.mrf.mxu1  ;;  %v306_v15 = vpop.f32.mrf.mxu0  ;;  %v4325_v3 = vld [vmem:[%s5434_s2 + $0x268] sm:$0xff]  }
  0xd5   :  { %1840 = vmatprep.mubr.bf16.mxu0 %v3849_v9  ;;  %v4328_v9 = vld [vmem:[%s5434_s2 + $0x2b8] sm:$0xff]   ;;  %v4332_v14 = vld [vmem:[%s5434_s2 + $0x2b0] sm:$0xff]  }
  0xd6   :  { %1841 = vmatmul.mubr.bf16.vlgmr.msra.gmra.mxu0 %v3848_v6  ;;  %v142_v16 = vpop.f32.mrf.mxu1  ;;  %v307_v17 = vpop.f32.mrf.mxu0  ;;  %v4326_v6 = vld [vmem:[%s5434_s2 + $0x2f8] sm:$0xff]  }
  0xd7   :  { %3913 = vmatpush3.bf16.msra.mxu1 %v4295_v10  ;;  %3931 = vmatpush3.bf16.msra.mxu0 %v4296_v11  ;;  %v4329_v10 = vld [vmem:[%s5434_s2 + $0x260] sm:$0xff]   ;;  %v4330_v11 = vld [vmem:[%s5434_s2 + $0x2f0] sm:$0xff]   ;;  %v4333_v15 = vld [vmem:[%s5434_s2 + $0x258] sm:$0xff]  }
  0xd8   :  { %3914 = vmatprep.subr.bf16.mxu1 %v4297_v12  ;;  %3932 = vmatprep.subr.bf16.mxu0 %v4298_v13  ;;  %v4769_v22 = vpop.f32.mrf.mxu1  ;;  %v4771_v23 = vpop.f32.mrf.mxu0  ;;  %v4331_v13 = vld [vmem:[%s5434_s2 + $0x220] sm:$0xff]   ;;  %v4334_v16 = vld [vmem:[%s5434_s2 + $0x2e8] sm:$0xff]   ;;  %v4335_v17 = vld [vmem:[%s5434_s2 + $0x218] sm:$0xff]  }
  0xd9   :  { %v3852_v7 = vpack.c.bf16 %v4769_v22, %v4769_v22  ;;  %v4340_v22 = vld [vmem:[%s5434_s2 + $0x2a0] sm:$0xff]  }
  0xda   :  { %v249_v24 = vpop.f32.mrf.mxu1  ;;  %v4773_v25 = vpop.f32.mrf.mxu0 }
  0xdb   :  { %3915 = vmatpush3.bf16.msra.mxu1 %v4299_v18  ;;  %3933 = vmatpush3.bf16.msra.mxu0 %v4300_v19  ;;  %v3853_v28 = vpack.c.bf16 %v249_v24, %v249_v24  ;;  %v4336_v18 = vld [vmem:[%s5434_s2 + $0x2a8] sm:$0xff]   ;;  %v4337_v19 = vld [vmem:[%s5434_s2 + $0x250] sm:$0xff]  }
  0xdc   :  { %3916 = vmatprep.subr.bf16.mxu1 %v4301_v20  ;;  %3934 = vmatprep.subr.bf16.mxu0 %v4302_v21  ;;  %v251_v31 = vpop.f32.mrf.mxu1  ;;  %v416_v32 = vpop.f32.mrf.mxu0  ;;  %v4338_v20 = vld [vmem:[%s5434_s2 + $0x2e0] sm:$0xff]   ;;  %v4339_v21 = vld [vmem:[%s5434_s2 + $0x210] sm:$0xff]   ;;  %v4341_v24 = vld [vmem:[%s5434_s2 + $0x248] sm:$0xff]  }
  0xdd   :  { %1920 = vmatprep.mubr.bf16.mxu0 %v3853_v28  ;;  %v4344_v28 = vld [vmem:[%s5434_s2 + $0x298] sm:$0xff]   ;;  %v4347_v31 = vld [vmem:[%s5434_s2 + $0x200] sm:$0xff]   ;;  %v4348_v32 = vld [vmem:[%s5434_s2 + $0x290] sm:$0xff]  }
  0xde   :  { %v252_v33 = vpop.f32.mrf.mxu1  ;;  %v417_v34 = vpop.f32.mrf.mxu0 }
  0xdf   :  { %3917 = vmatpush3.bf16.msra.mxu1 %v4303_v26  ;;  %3935 = vmatpush3.bf16.msra.mxu0 %v4304_v27  ;;  %v4342_v26 = vld [vmem:[%s5434_s2 + $0x2d8] sm:$0xff]   ;;  %v4343_v27 = vld [vmem:[%s5434_s2 + $0x208] sm:$0xff]  }
  0xe0   :  { %3918 = vmatprep.subr.bf16.mxu1 %v4305_v29  ;;  %3936 = vmatprep.subr.bf16.mxu0 %v4306_v30  ;;  %v4799_v39 = vpop.f32.mrf.mxu1  ;;  %v4801_v40 = vpop.f32.mrf.mxu0  ;;  %v4345_v29 = vld [vmem:[%s5434_s2 + $0x240] sm:$0xff]   ;;  %v4346_v30 = vld [vmem:[%s5434_s2 + $0x2d0] sm:$0xff]   ;;  %v4349_v33 = vld [vmem:[%s5434_s2 + $0x2c8] sm:$0xff]  }
  0xe1   :  { %v4350_v34 = vld [vmem:[%s5434_s2 + $0x378] sm:$0xff]  }
  0xe2   :  { %v4803_v41 = vpop.f32.mrf.mxu1  ;;  %v4805_v42 = vpop.f32.mrf.mxu0 }
  0xe3   :  { %3919 = vmatpush3.bf16.msra.mxu1 %v4307_v35  ;;  %3937 = vmatpush3.bf16.msra.mxu0 %v4308_v36  ;;  %v3857_v12 = vpack.c.bf16 %v4803_v41, %v4803_v41  ;;  %v4351_v35 = vld [vmem:[%s5434_s2 + $0x288] sm:$0xff]   ;;  %v4352_v36 = vld [vmem:[%s5434_s2 + $0x338] sm:$0xff]   ;;  %v4354_v41 = vld [vmem:[%s5434_s2 + $0x370] sm:$0xff]  }
  0xe4   :  { %3920 = vmatprep.subr.bf16.mxu1 %v4309_v37  ;;  %3938 = vmatprep.subr.bf16.mxu0 %v4310_v38  ;;  %v361_v47 = vpop.f32.mrf.mxu1  ;;  %v526_v48 = vpop.f32.mrf.mxu0  ;;  %v3854_v37 = vpack.c.bf16 %v4741_v4, %v4741_v4  ;;  %v4353_v38 = vld [vmem:[%s5434_s2 + $0x2c0] sm:$0xff]  }
  0xe5   :  { %v4355_v4 = vld [vmem:[%s5434_s2 + $0x280] sm:$0xff]   ;;  %v4359_v47 = vld [vmem:[%s5434_s2 + $0x328] sm:$0xff]   ;;  %v4360_v48 = vld [vmem:[%s5434_s2 + $0x3b8] sm:$0xff]  }
  0xe6   :  { %v362_v49 = vpop.f32.mrf.mxu1  ;;  %v527_v50 = vpop.f32.mrf.mxu0 }
  0xe7   :  { %3921 = vmatpush3.bf16.msra.mxu1 %v4311_v43  ;;  %3939 = vmatpush3.bf16.msra.mxu0 %v4312_v44  ;;  %v3859_v43 = vpack.c.bf16 %v4773_v25, %v4773_v25  ;;  %v4356_v44 = vld [vmem:[%s5434_s2 + $0x330] sm:$0xff]   ;;  %v4358_v25 = vld [vmem:[%s5434_s2 + $0x3f8] sm:$0xff]   ;;  %v4361_v49 = vld [vmem:[%s5434_s2 + $0x360] sm:$0xff]  }
  0xe8   :  { %3922 = vmatprep.subr.bf16.mxu1 %v4313_v45  ;;  %3940 = vmatprep.subr.bf16.mxu0 %v4314_v46  ;;  %v4831_v56 = vpop.f32.mrf.mxu1  ;;  %v4357_v45 = vld [vmem:[%s5434_s2 + $0x368] sm:$0xff]   ;;  %v3856_v46 = vpack.c.bf16 %v4799_v39, %v4799_v39  ;;  %v4362_v39 = vld [vmem:[%s5434_s2 + $0x3f0] sm:$0xff]  }
  0xea   :  { %v4833_v57 = vpop.f32.mrf.mxu1 }
  0xeb   :  { %3923 = vmatpush3.bf16.msra.mxu1 %v4315_v51  ;;  %3941 = vmatpush3.bf16.msra.mxu0 %v4316_v53  ;;  %v3861_v50 = vpack.c.bf16 %v4833_v57, %v4833_v57  ;;  %v4363_v51 = vld [vmem:[%s5434_s2 + $0x320] sm:$0xff]   ;;  %v4364_v53 = vld [vmem:[%s5434_s2 + $0x3b0] sm:$0xff]   ;;  %v4367_v57 = vld [vmem:[%s5434_s2 + $0x318] sm:$0xff]  }
  0xec   :  { %3942 = vmatprep.subr.bf16.mxu0 %v4317_v54  ;;  %3952 = vmatprep.subr.bf16.mxu1 %v4318_v55  ;;  %v471_v63 = vpop.f32.mrf.mxu1  ;;  %v4365_v54 = vld [vmem:[%s5434_s2 + $0x358] sm:$0xff]   ;;  %v4366_v55 = vld [vmem:[%s5434_s2 + $0x3e8] sm:$0xff]  }
  0xed   :  { %v4373_v63 = vld [vmem:[%s5434_s2 + $0x348] sm:$0xff]  }
  0xee   :  { %1881 = vmatmul.mubr.bf16.vlgmr.msra.gmra.mxu1 %v3850_v60  ;;  %v472_v1 = vpop.f32.mrf.mxu1  ;;  %v4370_v60 = vld [vmem:[%s5434_s2 + $0x3e0] sm:$0xff]  }
  0xef   :  { %3943 = vmatpush3.bf16.msra.mxu0 %v4319_v58  ;;  %3953 = vmatpush3.bf16.msra.mxu1 %v4320_v59  ;;  %v4368_v58 = vld [vmem:[%s5434_s2 + $0x3a8] sm:$0xff]   ;;  %v4369_v59 = vld [vmem:[%s5434_s2 + $0x350] sm:$0xff]  }
  0xf0   :  { %3944 = vmatprep.subr.bf16.mxu0 %v4321_v61  ;;  %3954 = vmatprep.subr.bf16.mxu1 %v4322_v62  ;;  %v4371_v61 = vld [vmem:[%s5434_s2 + $0x310] sm:$0xff]   ;;  %v4372_v62 = vld [vmem:[%s5434_s2 + $0x3a0] sm:$0xff]   ;;  %v4375_v1 = vld [vmem:[%s5434_s2 + $0x308] sm:$0xff]  }
  0xf1   :  { %1960 = vmatprep.mubr.bf16.mxu1 %v3855_v0  ;;  %v4374_v0 = vld [vmem:[%s5434_s2 + $0x3d8] sm:$0xff]  }
  0xf3   :  { %3945 = vmatpush3.bf16.msra.mxu0 %v4323_v52  ;;  %3955 = vmatpush3.bf16.msra.mxu1 %v4324_v2  ;;  %v4376_v52 = vld [vmem:[%s5434_s2 + $0x398] sm:$0xff]   ;;  %v4377_v2 = vld [vmem:[%s5434_s2 + $0x340] sm:$0xff]  }
  0xf4   :  { %3956 = vmatprep.subr.bf16.mxu1 %v4325_v3  ;;  %3974 = vmatprep.subr.bf16.mxu0 %v4326_v6  ;;  %v4378_v3 = vld [vmem:[%s5434_s2 + $0x3d0] sm:$0xff]   ;;  %v4379_v6 = vld [vmem:[%s5434_s2 + $0x300] sm:$0xff]  }
  0xf6   :  { %1921 = vmatmul.mubr.bf16.vlgmr.msra.gmra.mxu0 %v3852_v7  ;;  %v4380_v7 = vld [vmem:[%s5434_s2 + $0x390] sm:$0xff]  }
  0xf7   :  { %3957 = vmatpush3.bf16.msra.mxu1 %v4327_v8  ;;  %3975 = vmatpush3.bf16.msra.mxu0 %v4328_v9  ;;  %v4381_v8 = vld [vmem:[%s5434_s2 + $0x3c8] sm:$0xff]   ;;  %v4382_v9 = vld [vmem:[%s5434_s2 + $0x478] sm:$0xff]  }
  0xf8   :  { %3958 = vmatprep.subr.bf16.mxu1 %v4329_v10  ;;  %3976 = vmatprep.subr.bf16.mxu0 %v4330_v11  ;;  %v4383_v10 = vld [vmem:[%s5434_s2 + $0x388] sm:$0xff]   ;;  %v4384_v11 = vld [vmem:[%s5434_s2 + $0x438] sm:$0xff]  }
  0xf9   :  { %2000 = vmatprep.mubr.bf16.mxu0 %v3857_v12  ;;  %v3858_v12 = vpack.c.bf16 %v4771_v23, %v4771_v23  ;;  %v4387_v23 = vld [vmem:[%s5434_s2 + $0x380] sm:$0xff]  }
  0xfb   :  { %3959 = vmatpush3.bf16.msra.mxu1 %v4331_v13  ;;  %3977 = vmatpush3.bf16.msra.mxu0 %v4332_v14  ;;  %v4385_v13 = vld [vmem:[%s5434_s2 + $0x3c0] sm:$0xff]   ;;  %v4386_v14 = vld [vmem:[%s5434_s2 + $0x470] sm:$0xff]  }
  0xfc   :  { %3960 = vmatprep.subr.bf16.mxu1 %v4333_v15  ;;  %3978 = vmatprep.subr.bf16.mxu0 %v4334_v16  ;;  %v3863_v15 = vpack.c.bf16 %v4805_v42, %v4805_v42  ;;  %v4388_v16 = vld [vmem:[%s5434_s2 + $0x430] sm:$0xff]   ;;  %v3860_v42 = vpack.c.bf16 %v4831_v56, %v4831_v56  ;;  %v4393_v56 = vld [vmem:[%s5434_s2 + $0x458] sm:$0xff]  }
  0xff   :  { %3961 = vmatpush3.bf16.msra.mxu1 %v4335_v17  ;;  %3979 = vmatpush3.bf16.msra.mxu0 %v4336_v18  ;;  %v4389_v17 = vld [vmem:[%s5434_s2 + $0x468] sm:$0xff]  }
 0x100   :  { %3962 = vmatprep.subr.bf16.mxu1 %v4337_v19  ;;  %3980 = vmatprep.subr.bf16.mxu0 %v4338_v20  ;;  %v4390_v18 = vld [vmem:[%s5434_s2 + $0x428] sm:$0xff]   ;;  %v4391_v19 = vld [vmem:[%s5434_s2 + $0x460] sm:$0xff]  }
 0x101   :  { %v4392_v20 = vld [vmem:[%s5434_s2 + $0x420] sm:$0xff]  }
 0x103   :  { %3963 = vmatpush3.bf16.msra.mxu1 %v4339_v21  ;;  %3981 = vmatpush3.bf16.msra.mxu0 %v4340_v22  ;;  %v4394_v21 = vld [vmem:[%s5434_s2 + $0x418] sm:$0xff]   ;;  %v4395_v22 = vld [vmem:[%s5434_s2 + $0x450] sm:$0xff]  }
 0x104   :  { %3964 = vmatprep.subr.bf16.mxu1 %v4341_v24  ;;  %3982 = vmatprep.subr.bf16.mxu0 %v4342_v26  ;;  %v4396_v24 = vld [vmem:[%s5434_s2 + $0x410] sm:$0xff]   ;;  %v4397_v26 = vld [vmem:[%s5434_s2 + $0x448] sm:$0xff]  }
 0x107   :  { %3965 = vmatpush3.bf16.msra.mxu1 %v4343_v27  ;;  %3983 = vmatpush3.bf16.msra.mxu0 %v4344_v28  ;;  %v4398_v27 = vld [vmem:[%s5434_s2 + $0x408] sm:$0xff]   ;;  %v4399_v28 = vld [vmem:[%s5434_s2 + $0x440] sm:$0xff]  }
 0x108   :  { %3966 = vmatprep.subr.bf16.mxu1 %v4345_v29  ;;  %3984 = vmatprep.subr.bf16.mxu0 %v4346_v30  ;;  %v4400_v29 = vld [vmem:[%s5434_s2 + $0x400] sm:$0xff]   ;;  %v3862_v30 = vpack.c.bf16 %v4801_v40, %v4801_v40 }
 0x10b   :  { %3967 = vmatpush3.bf16.msra.mxu1 %v4347_v31  ;;  %3985 = vmatpush3.bf16.msra.mxu0 %v4348_v32 }
 0x10c   :  { %3986 = vmatprep.subr.bf16.mxu0 %v4349_v33  ;;  %3996 = vmatprep.subr.bf16.mxu1 %v4350_v34 }
 0x10e   :  { %1961 = vmatmul.mubr.bf16.vlgmr.msra.gmra.mxu1 %v3854_v37 }
 0x10f   :  { %3987 = vmatpush3.bf16.msra.mxu0 %v4351_v35  ;;  %3997 = vmatpush3.bf16.msra.mxu1 %v4352_v36  ;;  %v839_v36 = vpop.permute.xlu0 %838 }
 0x110   :  { %3988 = vmatprep.subr.bf16.mxu0 %v4353_v38  ;;  %3998 = vmatprep.subr.bf16.mxu1 %v4354_v41 }
 0x111   :  { %2040 = vmatprep.mubr.bf16.mxu1 %v3859_v43 }
 0x113   :  { %3989 = vmatpush3.bf16.msra.mxu0 %v4355_v4  ;;  %3999 = vmatpush3.bf16.msra.mxu1 %v4356_v44  ;;  %v4504_v4 = vmov 0.0  }
 0x114   :  { %4000 = vmatprep.subr.bf16.mxu1 %v4357_v45  ;;  %4018 = vmatprep.subr.bf16.mxu0 %v4358_v25 }
 0x116   :  { %2001 = vmatmul.mubr.bf16.vlgmr.msra.gmra.mxu0 %v3856_v46 }
 0x117   :  { %4001 = vmatpush3.bf16.msra.mxu1 %v4359_v47  ;;  %4019 = vmatpush3.bf16.msra.mxu0 %v4360_v48 }
 0x118   :  { %4002 = vmatprep.subr.bf16.mxu1 %v4361_v49  ;;  %4020 = vmatprep.subr.bf16.mxu0 %v4362_v39 }
 0x119   :  { %2080 = vmatprep.mubr.bf16.mxu0 %v3861_v50 }
 0x11b   :  { %4003 = vmatpush3.bf16.msra.mxu1 %v4363_v51  ;;  %4021 = vmatpush3.bf16.msra.mxu0 %v4364_v53 }
 0x11c   :  { %4004 = vmatprep.subr.bf16.mxu1 %v4365_v54  ;;  %4022 = vmatprep.subr.bf16.mxu0 %v4366_v55 }
 0x11f   :  { %4005 = vmatpush3.bf16.msra.mxu1 %v4367_v57  ;;  %4023 = vmatpush3.bf16.msra.mxu0 %v4368_v58 }
 0x120   :  { %4006 = vmatprep.subr.bf16.mxu1 %v4369_v59  ;;  %4024 = vmatprep.subr.bf16.mxu0 %v4370_v60 }
 0x123   :  { %4007 = vmatpush3.bf16.msra.mxu1 %v4371_v61  ;;  %4025 = vmatpush3.bf16.msra.mxu0 %v4372_v62 }
 0x124   :  { %4008 = vmatprep.subr.bf16.mxu1 %v4373_v63  ;;  %4026 = vmatprep.subr.bf16.mxu0 %v4374_v0 }
 0x127   :  { %4009 = vmatpush3.bf16.msra.mxu1 %v4375_v1  ;;  %4027 = vmatpush3.bf16.msra.mxu0 %v4376_v52 }
 0x128   :  { %4010 = vmatprep.subr.bf16.mxu1 %v4377_v2  ;;  %4028 = vmatprep.subr.bf16.mxu0 %v4378_v3 }
 0x12b   :  { %4011 = vmatpush3.bf16.msra.mxu1 %v4379_v6  ;;  %4029 = vmatpush3.bf16.msra.mxu0 %v4380_v7 }
 0x12c   :  { %4030 = vmatprep.subr.bf16.mxu0 %v4381_v8  ;;  %4040 = vmatprep.subr.bf16.mxu1 %v4382_v9 }
 0x12e   :  { %2041 = vmatmul.mubr.bf16.vlgmr.msra.gmra.mxu1 %v3858_v12 }
 0x12f   :  { %4031 = vmatpush3.bf16.msra.mxu0 %v4383_v10  ;;  %4041 = vmatpush3.bf16.msra.mxu1 %v4384_v11 }
 0x130   :  { %4032 = vmatprep.subr.bf16.mxu0 %v4385_v13  ;;  %4042 = vmatprep.subr.bf16.mxu1 %v4386_v14 }
 0x131   :  { %2120 = vmatprep.mubr.bf16.mxu1 %v3863_v15 }
 0x133   :  { %4033 = vmatpush3.bf16.msra.mxu0 %v4387_v23  ;;  %4043 = vmatpush3.bf16.msra.mxu1 %v4388_v16 }
 0x134   :  { %4044 = vmatprep.subr.bf16.mxu1 %v4389_v17  ;;  %4177 = vmatprep.subr.bf16.mxu0 %v4504_v4 }
 0x136   :  { %2081 = vmatmul.mubr.bf16.vlgmr.msra.gmra.mxu0 %v3860_v42 }
 0x137   :  { %4045 = vmatpush3.bf16.msra.mxu1 %v4390_v18  ;;  %4179 = vmatprep.mubr.msk.bf16.mxu0 %vm4505_vm1, %v4504_v4 }
 0x138   :  { %4046 = vmatprep.subr.bf16.mxu1 %v4391_v19 }
 0x13b   :  { %4047 = vmatpush3.bf16.msra.mxu1 %v4392_v20 }
 0x13c   :  { %4048 = vmatprep.subr.bf16.mxu1 %v4393_v56 }
 0x13f   :  { %4049 = vmatpush3.bf16.msra.mxu1 %v4394_v21 }
 0x140   :  { %4050 = vmatprep.subr.bf16.mxu1 %v4395_v22 }
 0x143   :  { %4051 = vmatpush3.bf16.msra.mxu1 %v4396_v24 }
 0x144   :  { %4052 = vmatprep.subr.bf16.mxu1 %v4397_v26 }
 0x147   :  { %4053 = vmatpush3.bf16.msra.mxu1 %v4398_v27  ;;  %v2130_v27 = vld [vmem:[%s5436_s4] sm:$0x3] }
 0x148   :  { %4054 = vmatprep.subr.bf16.mxu1 %v4399_v28  ;;  %v3748_v28 = vld [vmem:[%s5436_s4 + $0x8] sm:$0x3] }
 0x14b   :  { %4055 = vmatpush3.bf16.msra.mxu1 %v4400_v29  ;;  %v3742_v29 = vld [vmem:[%s5436_s4 + $0x2] sm:$0x3] }
 0x14c   :  { %4201 = vmatprep.subr.bf16.mxu1 %v4504_v4 }
 0x14e   :  { %2121 = vmatmul.mubr.bf16.vlgmr.msra.gmra.mxu1 %v3862_v30  ;;  %v3752_v30 = vld [vmem:[%s5436_s4 + $0xc] sm:$0x3] }
 0x14f   :  { %4203 = vmatprep.mubr.msk.bf16.mxu1 %vm4505_vm1, %v4504_v4 }
 0x18e   :  { %v3880_v31 = vpop.f32.mrf.mxu1 }
 0x190   :  { %v3881_v32 = vpop.f32.mrf.mxu1 }
 0x191   :  { %v3882_v33 = vadd.f32 %v3881_v32, %v3880_v31  ;;  %v3744_v31 = vld [vmem:[%s5436_s4 + $0x4] sm:$0x3]  ;;  %v3756_v32 = vld [vmem:[%s5436_s4 + $0x10] sm:$0x3] }
 0x192   :  { %v3883_v34 = vpop.f32.mrf.mxu1 }
 0x193   :  { %v1803_v41 = vadd.f32 %v3882_v33, %v839_v36  ;;  %v3746_v33 = vld [vmem:[%s5436_s4 + $0x6] sm:$0x3]  ;;  %v3750_v34 = vld [vmem:[%s5436_s4 + $0xa] sm:$0x3]  ;;  %v4401_v36 = vld [vmem:[%s5437_s5 + $0x78] sm:$0xff]  }
 0x194   :  { %v3884_v35 = vpop.f32.mrf.mxu1 }
 0x195   :  { %v3754_v35 = vld [vmem:[%s5436_s4 + $0xe] sm:$0x3] }
 0x196   :  { %v3902_v37 = vpop.f32.mrf.mxu0 }
 0x198   :  { %v3903_v38 = vpop.f32.mrf.mxu0 }
 0x199   :  { %v3904_v43 = vadd.f32 %v3903_v38, %v3902_v37  ;;  %v4402_v37 = vld [vmem:[%s5437_s5 + $0x38] sm:$0xff]  }
 0x19a   :  { %v3905_v44 = vpop.f32.mrf.mxu0  ;;  %v4403_v38 = vld [vmem:[%s5437_s5 + $0xf8] sm:$0xff]  }
 0x19b   :  { %v1843_v45 = vadd.f32 %v3904_v43, %v1803_v41  ;;  %v4404_v41 = vld [vmem:[%s5437_s5 + $0xb8] sm:$0xff]   ;;  %v4405_v43 = vld [vmem:[%s5437_s5 + $0x70] sm:$0xff]  }
 0x19c   :  { %v3906_v40 = vpop.f32.mrf.mxu0  ;;  %v4406_v44 = vld [vmem:[%s5437_s5 + $0x30] sm:$0xff]  }
 0x19d   :  { %v4408_v40 = vld [vmem:[%s5437_s5 + $0xb0] sm:$0xff]  }
 0x1ae   :  { %v3924_v25 = vpop.f32.mrf.mxu1 }
 0x1b0   :  { %v3925_v46 = vpop.f32.mrf.mxu1 }
 0x1b1   :  { %v3926_v47 = vadd.f32 %v3925_v46, %v3924_v25  ;;  %v4409_v25 = vld [vmem:[%s5437_s5 + $0x68] sm:$0xff]  }
 0x1b2   :  { %v3927_v48 = vpop.f32.mrf.mxu1  ;;  %v4410_v46 = vld [vmem:[%s5437_s5 + $0x28] sm:$0xff]  }
 0x1b3   :  { %v1883_v49 = vadd.f32 %v3926_v47, %v1843_v45  ;;  %v4407_v45 = vld [vmem:[%s5437_s5 + $0xf0] sm:$0xff]   ;;  %v4411_v47 = vld [vmem:[%s5437_s5 + $0xe8] sm:$0xff]  }
 0x1b4   :  { %v3928_v39 = vpop.f32.mrf.mxu1  ;;  %v4412_v48 = vld [vmem:[%s5437_s5 + $0xa8] sm:$0xff]  }
 0x1b5   :  { %v4414_v39 = vld [vmem:[%s5437_s5 + $0x20] sm:$0xff]  }
 0x1b6   :  { %v3946_v50 = vpop.f32.mrf.mxu0 }
 0x1b8   :  { %v3947_v51 = vpop.f32.mrf.mxu0 }
 0x1b9   :  { %v3948_v53 = vadd.f32 %v3947_v51, %v3946_v50  ;;  %v4415_v50 = vld [vmem:[%s5437_s5 + $0xe0] sm:$0xff]  }
 0x1ba   :  { %v3949_v54 = vpop.f32.mrf.mxu0  ;;  %v4416_v51 = vld [vmem:[%s5437_s5 + $0xa0] sm:$0xff]  }
 0x1bb   :  { %v1923_v55 = vadd.f32 %v3948_v53, %v1883_v49  ;;  %v4413_v49 = vld [vmem:[%s5437_s5 + $0x60] sm:$0xff]   ;;  %v4417_v53 = vld [vmem:[%s5437_s5 + $0x58] sm:$0xff]  }
 0x1bc   :  { %v3950_v57 = vpop.f32.mrf.mxu0  ;;  %v4418_v54 = vld [vmem:[%s5437_s5 + $0x18] sm:$0xff]  }
 0x1bd   :  { %v4420_v57 = vld [vmem:[%s5437_s5 + $0x98] sm:$0xff]  }
 0x1ce   :  { %v3968_v58 = vpop.f32.mrf.mxu1 }
 0x1d0   :  { %v3969_v59 = vpop.f32.mrf.mxu1 }
 0x1d1   :  { %v3970_v11 = vadd.f32 %v3969_v59, %v3968_v58  ;;  %v4421_v58 = vld [vmem:[%s5437_s5 + $0x50] sm:$0xff]  }
 0x1d2   :  { %v3971_v60 = vpop.f32.mrf.mxu1  ;;  %v4422_v59 = vld [vmem:[%s5437_s5 + $0x10] sm:$0xff]  }
 0x1d3   :  { %v1963_v13 = vadd.f32 %v3970_v11, %v1923_v55  ;;  %v4419_v55 = vld [vmem:[%s5437_s5 + $0xd8] sm:$0xff]   ;;  %v4423_v60 = vld [vmem:[%s5437_s5 + $0xd0] sm:$0xff]  }
 0x1d4   :  { %v3972_v61 = vpop.f32.mrf.mxu1 }
 0x1d5   :  { %v4424_v61 = vld [vmem:[%s5437_s5 + $0x90] sm:$0xff]  }
 0x1d6   :  { %v3990_v62 = vpop.f32.mrf.mxu0 }
 0x1d8   :  { %v3991_v63 = vpop.f32.mrf.mxu0 }
 0x1d9   :  { %v3992_v12 = vadd.f32 %v3991_v63, %v3990_v62  ;;  %v4425_v62 = vld [vmem:[%s5437_s5 + $0x48] sm:$0xff]  }
 0x1da   :  { %v3993_v0 = vpop.f32.mrf.mxu0  ;;  %v4426_v63 = vld [vmem:[%s5437_s5 + $0x8] sm:$0xff]  }
 0x1db   :  { %v2003_v15 = vadd.f32 %v3992_v12, %v1963_v13  ;;  %v4427_v0 = vld [vmem:[%s5437_s5 + $0xc8] sm:$0xff]  }
 0x1dc   :  { %v3994_v1 = vpop.f32.mrf.mxu0 }
 0x1dd   :  { %v4428_v1 = vld [vmem:[%s5437_s5 + $0x88] sm:$0xff]  }
 0x1ee   :  { %v4012_v52 = vpop.f32.mrf.mxu1 }
 0x1f0   :  { %v4013_v2 = vpop.f32.mrf.mxu1 }
 0x1f1   :  { %v4014_v14 = vadd.f32 %v4013_v2, %v4012_v52  ;;  %v4429_v52 = vld [vmem:[%s5437_s5 + $0x40] sm:$0xff]  }
 0x1f2   :  { %v4015_v3 = vpop.f32.mrf.mxu1  ;;  %v4431_v2 = vld [vmem:[%s5437_s5 + $0xc0] sm:$0xff]  }
 0x1f3   :  { %v2043_v17 = vadd.f32 %v4014_v14, %v2003_v15  ;;  %v4430_v3 = vld [vmem:[%s5437_s5] sm:$0xff]  }
 0x1f4   :  { %v4016_v6 = vpop.f32.mrf.mxu1 }
 0x1f5   :  { %v4432_v6 = vld [vmem:[%s5437_s5 + $0x80] sm:$0xff]  }
 0x1f6   :  { %v4034_v7 = vpop.f32.mrf.mxu0 }
 0x1f8   :  { %v4035_v8 = vpop.f32.mrf.mxu0 }
 0x1f9   :  { %v4036_v23 = vadd.f32 %v4035_v8, %v4034_v7  ;;  %v4433_v7 = vld [vmem:[%s5437_s5 + $0x178] sm:$0xff]  }
 0x1fa   :  { %v4037_v9 = vpop.f32.mrf.mxu0  ;;  %v4436_v8 = vld [vmem:[%s5437_s5 + $0x1f8] sm:$0xff]  }
 0x1fb   :  { %v2083_v18 = vadd.f32 %v4036_v23, %v2043_v17 }
 0x1fc   :  { %v4038_v10 = vpop.f32.mrf.mxu0 }
 0x20e   :  { %v4056_v16 = vpop.f32.mrf.mxu1 }
 0x210   :  { %v4057_v42 = vpop.f32.mrf.mxu1 }
 0x211   :  { %v4058_v19 = vadd.f32 %v4057_v42, %v4056_v16 }
 0x212   :  { %v4059_v20 = vpop.f32.mrf.mxu1 }
 0x213   :  { %v2123_v56 = vadd.f32 %v4058_v19, %v2083_v18 }
 0x214   :  { %v4060_v21 = vpop.f32.mrf.mxu1 }
 0x215   :  { %v2128_v22 = vmax.f32 %v2123_v56, 0.0 }
 0x217   :  { %v2129_v24 = vpack.c.bf16 %v2128_v22, %v2128_v22 }
 0x219   :  { %v2137_v26 = vsel %vm2135_vm2, %v2129_v24, 0 }
 0x21a   :  { %4178 = vmatpush3.bf16.msra.mxu0 %v2137_v26  ;;  %4202 = vmatpush3.bf16.msra.mxu1 %v2137_v26 }
 0x21b   :  { %4183 = vmatprep.subr.bf16.mxu0 %v4504_v4  ;;  %4213 = vmatprep.subr.bf16.mxu1 %v4504_v4 }
 0x21d   :  { %4180 = vmatmul.mubr.msk.bf16.vlgmr.msra.gmra.mxu0 %vm2131_vm3, %v2130_v27  ;;  %4204 = vmatmul.mubr.msk.bf16.vlgmr.msra.gmra.mxu1 %vm2131_vm3, %v3748_v28 }
 0x21e   :  { %4184 = vmatpush3.bf16.msra.mxu0 %v2137_v26  ;;  %4214 = vmatpush3.bf16.msra.mxu1 %v2137_v26 }
 0x21f   :  { %4185 = vmatprep.mubr.msk.bf16.mxu0 %vm4505_vm1, %v4504_v4  ;;  %4189 = vmatprep.subr.bf16.mxu0 %v4504_v4 }
 0x220   :  { %4215 = vmatprep.mubr.msk.bf16.mxu1 %vm4505_vm1, %v4504_v4  ;;  %4225 = vmatprep.subr.bf16.mxu1 %v4504_v4 }
 0x225   :  { %4186 = vmatmul.mubr.msk.bf16.vlgmr.msra.gmra.mxu0 %vm2131_vm3, %v3742_v29  ;;  %4216 = vmatmul.mubr.msk.bf16.vlgmr.msra.gmra.mxu1 %vm2131_vm3, %v3752_v30 }
 0x226   :  { %4190 = vmatpush3.bf16.msra.mxu0 %v2137_v26  ;;  %4226 = vmatpush3.bf16.msra.mxu1 %v2137_v26 }
 0x227   :  { %4191 = vmatprep.mubr.msk.bf16.mxu0 %vm4505_vm1, %v4504_v4  ;;  %4195 = vmatprep.subr.bf16.mxu0 %v4504_v4 }
 0x228   :  { %4227 = vmatprep.mubr.msk.bf16.mxu1 %vm4505_vm1, %v4504_v4  ;;  %4102 = vmatprep.subr.bf16.mxu1 %v4403_v38  ;;  %v4506_v38 = vmov 1983009808  }
 0x22d   :  { %4192 = vmatmul.mubr.msk.bf16.vlgmr.msra.gmra.mxu0 %vm2131_vm3, %v3744_v31  ;;  %4228 = vmatmul.mubr.msk.bf16.vlgmr.msra.gmra.mxu1 %vm2131_vm3, %v3756_v32 }
 0x22e   :  { %4196 = vmatpush3.bf16.msra.mxu0 %v2137_v26  ;;  %4197 = vmatprep.mubr.msk.bf16.mxu0 %vm4505_vm1, %v4504_v4 }
 0x22f   :  { %4207 = vmatprep.subr.bf16.mxu0 %v4504_v4  ;;  %4103 = vmatpush3.bf16.msra.mxu1 %v4404_v41  ;;  %v2716_v41 = vunpack.c.l.s4 %v4506_v38  ;;  %v4465_v38 = vld [vmem:[%s5437_s5 + $0x180] sm:$0xff]  }
 0x230   :  { %4104 = vmatprep.subr.bf16.mxu1 %v4407_v45 }
 0x233   :  { %4105 = vmatpush3.bf16.msra.mxu1 %v4408_v40 }
 0x234   :  { %4106 = vmatprep.subr.bf16.mxu1 %v4411_v47 }
 0x235   :  { %4198 = vmatmul.mubr.msk.bf16.vlgmr.msra.gmra.mxu0 %vm2131_vm3, %v3746_v33 }
 0x236   :  { %4208 = vmatpush3.bf16.msra.mxu0 %v2137_v26  ;;  %4209 = vmatprep.mubr.msk.bf16.mxu0 %vm4505_vm1, %v4504_v4 }
 0x237   :  { %4219 = vmatprep.subr.bf16.mxu0 %v4504_v4  ;;  %4107 = vmatpush3.bf16.msra.mxu1 %v4412_v48 }
 0x238   :  { %4108 = vmatprep.subr.bf16.mxu1 %v4415_v50 }
 0x23b   :  { %4109 = vmatpush3.bf16.msra.mxu1 %v4416_v51 }
 0x23c   :  { %4110 = vmatprep.subr.bf16.mxu1 %v4419_v55 }
 0x23d   :  { %4210 = vmatmul.mubr.msk.bf16.vlgmr.msra.gmra.mxu0 %vm2131_vm3, %v3750_v34 }
 0x23e   :  { %4220 = vmatpush3.bf16.msra.mxu0 %v2137_v26  ;;  %4221 = vmatprep.mubr.msk.bf16.mxu0 %vm4505_vm1, %v4504_v4 }
 0x23f   :  { %4080 = vmatprep.subr.bf16.mxu0 %v4401_v36  ;;  %4111 = vmatpush3.bf16.msra.mxu1 %v4420_v57 }
 0x240   :  { %4112 = vmatprep.subr.bf16.mxu1 %v4423_v60 }
 0x243   :  { %4113 = vmatpush3.bf16.msra.mxu1 %v4424_v61  ;;  %v4438_v61 = vld [vmem:[%s5437_s5 + $0x170] sm:$0xff]  }
 0x244   :  { %4114 = vmatprep.subr.bf16.mxu1 %v4427_v0  ;;  %v4437_v0 = vld [vmem:[%s5437_s5 + $0x1b8] sm:$0xff]  }
 0x245   :  { %4222 = vmatmul.mubr.msk.bf16.vlgmr.msra.gmra.mxu0 %vm2131_vm3, %v3754_v35 }
 0x246   :  { %4081 = vmatpush3.bf16.msra.mxu0 %v4402_v37 }
 0x247   :  { %4082 = vmatprep.subr.bf16.mxu0 %v4405_v43  ;;  %4115 = vmatpush3.bf16.msra.mxu1 %v4428_v1  ;;  %v2718_v43 = vlaneseq  ;;  %v4440_v1 = vld [vmem:[%s5437_s5 + $0x1f0] sm:$0xff]  }
 0x248   :  { %4116 = vmatprep.subr.bf16.mxu1 %v4431_v2  ;;  %v4439_v2 = vld [vmem:[%s5437_s5 + $0x130] sm:$0xff]  }
 0x24a   :  { %4083 = vmatpush3.bf16.msra.mxu0 %v4406_v44 }
 0x24b   :  { %4084 = vmatprep.subr.bf16.mxu0 %v4409_v25  ;;  %4117 = vmatpush3.bf16.msra.mxu1 %v4432_v6  ;;  %v2717_v25 = vunpack.c.0.s8 %v2716_v41  ;;  %v4442_v6 = vld [vmem:[%s5437_s5 + $0x168] sm:$0xff]   ;;  %v4467_v41 = vld [vmem:[%s5437_s5 + $0x238] sm:$0xff]  }
 0x24c   :  { %4146 = vmatprep.subr.bf16.mxu1 %v4436_v8  ;;  %v4441_v8 = vld [vmem:[%s5437_s5 + $0x1b0] sm:$0xff]  }
 0x24e   :  { %4085 = vmatpush3.bf16.msra.mxu0 %v4410_v46  ;;  %v5277_v46 = vshrl.u32 %v2718_v43, 7  ;;  %v4468_v43 = vld [vmem:[%s5437_s5 + $0x230] sm:$0xff]  }
 0x24f   :  { %4086 = vmatprep.subr.bf16.mxu0 %v4413_v49 }
 0x250   :  { %v2720_v49 = vsub.s32 %v2717_v25, %v5277_v46  ;;  %v4472_v25 = vld [vmem:[%s5437_s5 + $0x210] sm:$0xff]  }
 0x252   :  { %4087 = vmatpush3.bf16.msra.mxu0 %v4414_v39 }
 0x253   :  { %4088 = vmatprep.subr.bf16.mxu0 %v4417_v53 }
 0x256   :  { %4089 = vmatpush3.bf16.msra.mxu0 %v4418_v54 }
 0x257   :  { %4090 = vmatprep.subr.bf16.mxu0 %v4421_v58 }
 0x25a   :  { %4091 = vmatpush3.bf16.msra.mxu0 %v4422_v59  ;;  %v4434_v59 = vld [vmem:[%s5437_s5 + $0x138] sm:$0xff]  }
 0x25b   :  { %4092 = vmatprep.subr.bf16.mxu0 %v4425_v62 }
 0x25e   :  { %4093 = vmatpush3.bf16.msra.mxu0 %v4426_v63 }
 0x25f   :  { %4094 = vmatprep.subr.bf16.mxu0 %v4429_v52 }
 0x262   :  { %4095 = vmatpush3.bf16.msra.mxu0 %v4430_v3 }
 0x263   :  { %4124 = vmatprep.subr.bf16.mxu0 %v4433_v7 }
 0x2dd   :  { %v2173_v9 = vpop.f32.mrf.mxu0  ;;  %v2362_v10 = vpop.f32.mrf.mxu1 }
 0x2de   :  { %v2179_v11 = vpack.c.bf16 %v2173_v9, %v2173_v9  ;;  %v2368_v12 = vpack.c.bf16 %v2362_v10, %v2362_v10  ;;  %v4444_v9 = vld [vmem:[%s5437_s5 + $0x1e8] sm:$0xff]  }
 0x2df   :  { %v4181_v13 = vpop.f32.mrf.mxu0  ;;  %v4205_v14 = vpop.f32.mrf.mxu1 }
 0x2e0   :  { %2181 = vst.msk [vmem:[#allocation3] sm:$0x3] %vm2180_vm4, %v2179_v11  ;;  %2369 = vst.msk [vmem:[#allocation3 + $0x8] sm:$0x3] %vm2180_vm4, %v2368_v12  ;;  %v4443_v11 = vld [vmem:[%s5437_s5 + $0x128] sm:$0xff]   ;;  %v4446_v12 = vld [vmem:[%s5437_s5 + $0x160] sm:$0xff]  }
 0x2e1   :  { %v2176_v15 = vpop.f32.mrf.mxu0  ;;  %v2365_v23 = vpop.f32.mrf.mxu1  ;;  %v4445_v14 = vld [vmem:[%s5437_s5 + $0x1a8] sm:$0xff]  }
 0x2e2   :  { %v4448_v15 = vld [vmem:[%s5437_s5 + $0x1e0] sm:$0xff]  }
 0x2e3   :  { %v4182_v16 = vpop.f32.mrf.mxu0  ;;  %v4206_v17 = vpop.f32.mrf.mxu1  ;;  %v4447_v23 = vld [vmem:[%s5437_s5 + $0x120] sm:$0xff]  }
 0x2e4   :  { %v4450_v16 = vld [vmem:[%s5437_s5 + $0x158] sm:$0xff]  }
 0x2e5   :  { %v2221_v42 = vpop.f32.mrf.mxu0  ;;  %v2456_v18 = vpop.f32.mrf.mxu1 }
 0x2e6   :  { %v2227_v19 = vpack.c.bf16 %v2221_v42, %v2221_v42  ;;  %v2462_v20 = vpack.c.bf16 %v2456_v18, %v2456_v18  ;;  %v4449_v42 = vld [vmem:[%s5437_s5 + $0x1a0] sm:$0xff]  }
 0x2e7   :  { %v4187_v56 = vpop.f32.mrf.mxu0  ;;  %v4217_v21 = vpop.f32.mrf.mxu1 }
 0x2e8   :  { %2228 = vst.msk [vmem:[#allocation3 + $0x2] sm:$0x3] %vm2180_vm4, %v2227_v19  ;;  %2463 = vst.msk [vmem:[#allocation3 + $0xc] sm:$0x3] %vm2180_vm4, %v2462_v20  ;;  %v4452_v20 = vld [vmem:[%s5437_s5 + $0x1d8] sm:$0xff]  }
 0x2e9   :  { %v2224_v22 = vpop.f32.mrf.mxu0  ;;  %v2459_v24 = vpop.f32.mrf.mxu1  ;;  %v4451_v56 = vld [vmem:[%s5437_s5 + $0x118] sm:$0xff]  }
 0x2ea   :  { %v4454_v24 = vld [vmem:[%s5437_s5 + $0x150] sm:$0xff]  }
 0x2eb   :  { %v4188_v26 = vpop.f32.mrf.mxu0  ;;  %v4218_v27 = vpop.f32.mrf.mxu1 }
 0x2ec   :  { %v4453_v26 = vld [vmem:[%s5437_s5 + $0x198] sm:$0xff]  }
 0x2ed   :  { %v2268_v28 = vpop.f32.mrf.mxu0  ;;  %v2550_v29 = vpop.f32.mrf.mxu1 }
 0x2ee   :  { %v2274_v30 = vpack.c.bf16 %v2268_v28, %v2268_v28  ;;  %v2556_v31 = vpack.c.bf16 %v2550_v29, %v2550_v29  ;;  %v4456_v28 = vld [vmem:[%s5437_s5 + $0x1d0] sm:$0xff]  }
 0x2ef   :  { %v4193_v32 = vpop.f32.mrf.mxu0  ;;  %v4229_v33 = vpop.f32.mrf.mxu1  ;;  %v4455_v29 = vld [vmem:[%s5437_s5 + $0x110] sm:$0xff]  }
 0x2f0   :  { %2275 = vst.msk [vmem:[#allocation3 + $0x4] sm:$0x3] %vm2180_vm4, %v2274_v30  ;;  %2557 = vst.msk [vmem:[#allocation3 + $0x10] sm:$0x3] %vm2180_vm4, %v2556_v31  ;;  %v4458_v30 = vld [vmem:[%s5437_s5 + $0x148] sm:$0xff]   ;;  %v4457_v31 = vld [vmem:[%s5437_s5 + $0x190] sm:$0xff]  }
 0x2f1   :  { %v2271_v34 = vpop.f32.mrf.mxu0  ;;  %v2553_v35 = vpop.f32.mrf.mxu1  ;;  %v4460_v32 = vld [vmem:[%s5437_s5 + $0x1c8] sm:$0xff]  }
 0x2f2   :  { %v4459_v33 = vld [vmem:[%s5437_s5 + $0x108] sm:$0xff]   ;;  %v4462_v34 = vld [vmem:[%s5437_s5 + $0x140] sm:$0xff]  }
 0x2f3   :  { %v4194_v36 = vpop.f32.mrf.mxu0  ;;  %v4230_v37 = vpop.f32.mrf.mxu1  ;;  %v4461_v35 = vld [vmem:[%s5437_s5 + $0x188] sm:$0xff]  }
 0x2f4   :  { %v4464_v36 = vld [vmem:[%s5437_s5 + $0x1c0] sm:$0xff]  }
 0x2f5   :  { %v2315_v44 = vpop.f32.mrf.mxu0  ;;  %v4463_v37 = vld [vmem:[%s5437_s5 + $0x100] sm:$0xff]  }
 0x2f6   :  { %v2321_v45 = vpack.c.bf16 %v2315_v44, %v2315_v44  ;;  %v4469_v44 = vld [vmem:[%s5437_s5 + $0x228] sm:$0xff]  }
 0x2f7   :  { %v4199_v40 = vpop.f32.mrf.mxu0 }
 0x2f8   :  { %2322 = vst.msk [vmem:[#allocation3 + $0x6] sm:$0x3] %vm2180_vm4, %v2321_v45  ;;  %v4470_v45 = vld [vmem:[%s5437_s5 + $0x220] sm:$0xff]   ;;  %v4471_v40 = vld [vmem:[%s5437_s5 + $0x218] sm:$0xff]  }
 0x2f9   :  { %v2318_v47 = vpop.f32.mrf.mxu0 }
 0x2fa   :  { %v4473_v47 = vld [vmem:[%s5437_s5 + $0x208] sm:$0xff]  }
 0x2fb   :  { %v4200_v48 = vpop.f32.mrf.mxu0 }
 0x2fc   :  { %v4474_v48 = vld [vmem:[%s5437_s5 + $0x200] sm:$0xff]  }
 0x2fd   :  { %v2409_v39 = vpop.f32.mrf.mxu0 }
 0x2fe   :  { %v2415_v50 = vpack.c.bf16 %v2409_v39, %v2409_v39  ;;  %v4477_v39 = vld [vmem:[%s5439_s7 + $0x4] ss:$16 sps:$4 sm:$0xff]  }
 0x2ff   :  { %v2558_v51 = vld [vmem:[#allocation3] sm:$0xff]  ;;  %v4211_v53 = vpop.f32.mrf.mxu0 }
 0x300   :  { %v2721_v54 = vrot.slane %v2558_v51, %v2720_v49  ;;  %v2714_v55 = vcombine.high %v2558_v51, %v2558_v51  ;;  %2416 = vst.msk [vmem:[#allocation3 + $0xa] sm:$0x3] %vm2180_vm4, %v2415_v50  ;;  %v4475_v50 = vld [vmem:[%s5439_s7] ss:$16 sps:$4 sm:$0xff]   ;;  %v4480_v51 = vld [vmem:[%s5439_s7 + $0xc] ss:$16 sps:$4 sm:$0xff]  }
 0x301   :  { %v2412_v57 = vpop.f32.mrf.mxu0 }
 0x302   :  { %v2729_v58 = vcombine.high %v2721_v54, %v2721_v54  ;;  %v2728_v60 = vrot.slane %v2714_v55, %v2720_v49 }
 0x303   :  { %v4212_v62 = vpop.f32.mrf.mxu0 }
 0x304   :  { %3228 = vmatprep.mubr.bf16.mxu0 %v2729_v58  ;;  %v2730_v63 = vcombine.high %v2728_v60, %v2728_v60 }
 0x305   :  { %3229 = vmatmul.mubr.bf16.vlgmr.msra.gmra.mxu0 %v2721_v54  ;;  %v2503_v52 = vpop.f32.mrf.mxu0 }
 0x306   :  { %4125 = vmatpush3.bf16.msra.mxu0 %v4434_v59  ;;  %3268 = vmatprep.mubr.bf16.mxu1 %v2730_v63  ;;  %v2509_v3 = vpack.c.bf16 %v2503_v52, %v2503_v52 }
 0x307   :  { %3269 = vmatmul.mubr.bf16.vlgmr.msra.gmra.mxu1 %v2728_v60  ;;  %4126 = vmatprep.subr.bf16.mxu0 %v4438_v61  ;;  %v4223_v7 = vpop.f32.mrf.mxu0 }
 0x308   :  { %4147 = vmatpush3.bf16.msra.mxu1 %v4437_v0  ;;  %2510 = vst.msk [vmem:[#allocation3 + $0xe] sm:$0x3] %vm2180_vm4, %v2509_v3  ;;  %v2709_v7 = vpop.permute.xlu0 %2708 }
 0x309   :  { %4148 = vmatprep.subr.bf16.mxu1 %v4440_v1  ;;  %v2506_v10 = vpop.f32.mrf.mxu0 }
 0x30a   :  { %4127 = vmatpush3.bf16.msra.mxu0 %v4439_v2 }
 0x30b   :  { %4128 = vmatprep.subr.bf16.mxu0 %v4442_v6  ;;  %v4224_v13 = vpop.f32.mrf.mxu0 }
 0x30c   :  { %4149 = vmatpush3.bf16.msra.mxu1 %v4441_v8 }
 0x30d   :  { %4150 = vmatprep.subr.bf16.mxu1 %v4444_v9 }
 0x30e   :  { %4129 = vmatpush3.bf16.msra.mxu0 %v4443_v11 }
 0x30f   :  { %4130 = vmatprep.subr.bf16.mxu0 %v4446_v12  ;;  %v2559_v17 = vld [vmem:[#allocation3 + $0x8] sm:$0xff] }
 0x310   :  { %4151 = vmatpush3.bf16.msra.mxu1 %v4445_v14  ;;  %v2738_v18 = vrot.slane %v2559_v17, %v2720_v49  ;;  %v2731_v19 = vcombine.high %v2559_v17, %v2559_v17 }
 0x311   :  { %4152 = vmatprep.subr.bf16.mxu1 %v4448_v15 }
 0x312   :  { %4131 = vmatpush3.bf16.msra.mxu0 %v4447_v23  ;;  %v2746_v21 = vcombine.high %v2738_v18, %v2738_v18  ;;  %v2745_v22 = vrot.slane %v2731_v19, %v2720_v49  ;;  %v3758_v49 = vld.sshfl [vmem:[#allocation3 + $0x10] sm:$0x3 pattern:$0x76325410] }
 0x313   :  { %4132 = vmatprep.subr.bf16.mxu0 %v4450_v16 }
 0x314   :  { %4153 = vmatpush3.bf16.msra.mxu1 %v4449_v42  ;;  %3308 = vmatprep.mubr.bf16.mxu0 %v2746_v21  ;;  %v2747_v27 = vcombine.high %v2745_v22, %v2745_v22  ;;  %v3410_v21 = vsub.s32 1, %v5277_v46 }
 0x315   :  { %4154 = vmatprep.subr.bf16.mxu1 %v4452_v20 }
 0x316   :  { %4133 = vmatpush3.bf16.msra.mxu0 %v4451_v56  ;;  %3348 = vmatprep.mubr.bf16.mxu1 %v2747_v27  ;;  %v3406_v56 = vsub.s32 0, %v5277_v46 }
 0x317   :  { %4134 = vmatprep.subr.bf16.mxu0 %v4454_v24 }
 0x318   :  { %4155 = vmatpush3.bf16.msra.mxu1 %v4453_v26 }
 0x319   :  { %4156 = vmatprep.subr.bf16.mxu1 %v4456_v28 }
 0x31a   :  { %4135 = vmatpush3.bf16.msra.mxu0 %v4455_v29 }
 0x31b   :  { %4136 = vmatprep.subr.bf16.mxu0 %v4458_v30 }
 0x31c   :  { %4157 = vmatpush3.bf16.msra.mxu1 %v4457_v31  ;;  %v3414_v31 = vsub.s32 2, %v5277_v46 }
 0x31d   :  { %4158 = vmatprep.subr.bf16.mxu1 %v4460_v32 }
 0x31e   :  { %4137 = vmatpush3.bf16.msra.mxu0 %v4459_v33 }
 0x31f   :  { %4138 = vmatprep.subr.bf16.mxu0 %v4462_v34 }
 0x320   :  { %4159 = vmatpush3.bf16.msra.mxu1 %v4461_v35 }
 0x321   :  { %4160 = vmatprep.subr.bf16.mxu1 %v4464_v36 }
 0x322   :  { %4139 = vmatpush3.bf16.msra.mxu0 %v4463_v37 }
 0x323   :  { %4231 = vmatprep.subr.bf16.mxu0 %v4504_v4 }
 0x324   :  { %4161 = vmatpush3.bf16.msra.mxu1 %v4465_v38 }
 0x325   :  { %3309 = vmatmul.mubr.bf16.vlgmr.msra.gmra.mxu0 %v2738_v18  ;;  %3461 = vmatprep.subr.bf16.mxu1 %v4477_v39  ;;  %v4478_v18 = vld [vmem:[%s5439_s7 + $0x8] ss:$16 sps:$4 sm:$0xff]   ;;  %s4507_s7 = smov [#allocation4]  }
 0x326   :  { %4232 = vmatpush3.bf16.msra.mxu0 %v4467_v41  ;;  %4247 = vmatprep.mubr.msk.bf16.mxu0 %vm4505_vm1, %v4504_v4 }
 0x327   :  { %3349 = vmatmul.mubr.bf16.vlgmr.msra.gmra.mxu1 %v2745_v22  ;;  %4233 = vmatprep.subr.bf16.mxu0 %v4504_v4  ;;  %v3402_v22 = vld [vmem:[%s5440_s8] sm:$0xf]  ;;  %s3545_s8 = sshll.u32 %s4507_s7, 4  ;;  %s3546_s8 = int_to_ptr.vmem [resolvable:$true] %s3545_s8 }
 0x328   :  { %3479 = vmatprep.mubr.bf16.mxu1 %v4503_v5  ;;  %3462 = vmatpush1.bf16.msra.mxu1 %v4475_v50  ;;  %v3407_v24 = vrot.slane %v3402_v22, %v3406_v56  ;;  %v3411_v26 = vrot.slane %v3402_v22, %v3410_v21  ;;  %v3415_v35 = vrot.slane %v3402_v22, %v3414_v31  ;;  %s4481_s18 = scalar_lea.vmem %s3546_s8, 256  ;;  %p4486_p1 = scmp.lt.s32.totalorder %s3546_s8, %s3546_s8 }
 0x329   :  { %3502 = vmatprep.subr.bf16.mxu1 %v4480_v51  ;;  %p4482_p0 = scmp.ne.s32.totalorder %s3546_s8, %s4481_s18  ;;  %p4487_p2 = scmp.lt.s32.totalorder %s4481_s18, %s4481_s18 }
 0x32a   :  { %4234 = vmatpush3.bf16.msra.mxu0 %v4468_v43 }
 0x32b   :  { %4235 = vmatprep.subr.bf16.mxu0 %v4504_v4  ;;  %p4488_p3 = por %p4487_p2, %p4486_p1 }
 0x32d   :  { %p4489_p4 = pnand %p4488_p3, %p4482_p0 }
 0x32e   :  { %4236 = vmatpush3.bf16.msra.mxu0 %v4469_v44 }
 0x32f   :  { %4237 = vmatprep.subr.bf16.mxu0 %v4504_v4 }
 0x332   :  { %4238 = vmatpush3.bf16.msra.mxu0 %v4470_v45 }
 0x333   :  { %4239 = vmatprep.subr.bf16.mxu0 %v4504_v4 }
 0x336   :  { %4240 = vmatpush3.bf16.msra.mxu0 %v4471_v40 }
 0x337   :  { %4241 = vmatprep.subr.bf16.mxu0 %v4504_v4 }
 0x33a   :  { %4242 = vmatpush3.bf16.msra.mxu0 %v4472_v25 }
 0x33b   :  { %4243 = vmatprep.subr.bf16.mxu0 %v4504_v4 }
 0x33e   :  { %4244 = vmatpush3.bf16.msra.mxu0 %v4473_v47 }
 0x33f   :  { %4245 = vmatprep.subr.bf16.mxu0 %v4504_v4 }
 0x342   :  { %4246 = vmatpush3.bf16.msra.mxu0 %v4474_v48 }
 0x345   :  { %4248 = vmatmul.mubr.bf16.vlgmr.msra.gmra.mxu0 %v3758_v49 }
 0x3c5   :  { %v4096_v53 = vpop.f32.mrf.mxu0 }
 0x3c7   :  { %v4097_v4 = vpop.f32.mrf.mxu0  ;;  %v4118_v54 = vpop.f32.mrf.mxu1 }
 0x3c8   :  { %v4098_v6 = vadd.f32 %v4097_v4, %v4096_v53 }
 0x3c9   :  { %v4099_v55 = vpop.f32.mrf.mxu0  ;;  %v4119_v57 = vpop.f32.mrf.mxu1 }
 0x3ca   :  { %v3231_v8 = vadd.f32 %v4098_v6, %v2709_v7  ;;  %v4120_v9 = vadd.f32 %v4119_v57, %v4118_v54 }
 0x3cb   :  { %v4100_v58 = vpop.f32.mrf.mxu0  ;;  %v4121_v59 = vpop.f32.mrf.mxu1 }
 0x3cc   :  { %v3271_v11 = vadd.f32 %v4120_v9, %v3231_v8 }
 0x3cd   :  { %v4122_v60 = vpop.f32.mrf.mxu1 }
 0x3e5   :  { %v4140_v61 = vpop.f32.mrf.mxu0 }
 0x3e7   :  { %v4141_v62 = vpop.f32.mrf.mxu0  ;;  %v4162_v63 = vpop.f32.mrf.mxu1 }
 0x3e8   :  { %v4142_v10 = vadd.f32 %v4141_v62, %v4140_v61 }
 0x3e9   :  { %v4143_v0 = vpop.f32.mrf.mxu0  ;;  %v4163_v1 = vpop.f32.mrf.mxu1 }
 0x3ea   :  { %v3311_v12 = vadd.f32 %v4142_v10, %v3271_v11  ;;  %v4164_v13 = vadd.f32 %v4163_v1, %v4162_v63 }
 0x3eb   :  { %v4144_v52 = vpop.f32.mrf.mxu0  ;;  %v4165_v2 = vpop.f32.mrf.mxu1 }
 0x3ec   :  { %v3351_v14 = vadd.f32 %v4164_v13, %v3311_v12 }
 0x3ed   :  { %v4166_v3 = vpop.f32.mrf.mxu1 }
 0x405   :  { %v3390_v15 = vpop.f32.mrf.mxu0 }
 0x406   :  { %v3391_v23 = vadd.f32 %v3390_v15, %v3351_v14 }
 0x407   :  { %v4249_v16 = vpop.f32.mrf.mxu0 }
 0x408   :  { %v3396_v17 = vmax.f32 %v3391_v23, 0.0 }
 0x409   :  { %v3393_v42 = vpop.f32.mrf.mxu0 }
 0x40a   :  { %v3397_v19 = vpack.c.bf16 %v3396_v17, %v3396_v17 }
 0x40b   :  { %v4250_v20 = vpop.f32.mrf.mxu0 }
 0x40c   :  { %3835 = vmatmul.mubr.msk.bf16.vlgmr.msra.gmra.mxu1 %vm44_vm0, %v3397_v19 }
 0x40d   :  { %3503 = vmatpush1.bf16.msra.mxu1 %v4478_v18  ;;  %3520 = vmatprep.mubr.bf16.mxu1 %v4503_v5  ;;  %v3418_v5 = vsub.s32 3, %v5277_v46 }
 0x40f   :  { %v3419_v36 = vrot.slane %v3402_v22, %v3418_v5 }
 0x414   :  { %3836 = vmatmul.mubr.msk.bf16.vlgmr.msra.gmra.mxu1 %vm44_vm0, %v3397_v19 }
 0x4cc   :  { %v3481_v27 = vpop.f32.mrf.mxu1 }
 0x4cd   :  { %v3482_v29 = vadd.f32 %v3481_v27, %v3407_v24 }
 0x4ce   :  { %v3483_v28 = vpop.f32.mrf.mxu1 }
 0x4cf   :  { %v3484_v30 = vadd.f32 %v3483_v28, %v3411_v26 }
 0x4d0   :  { %v3485_v32 = vpop.f32.mrf.mxu1 }
 0x4d1   :  { %v3533_v33 = vcombine.low %v3482_v29, %v3484_v30 }
 0x4d2   :  { %v3486_v34 = vpop.f32.mrf.mxu1 }
 0x4d3   :  { %3537 = vst [vmem:[#allocation4] sm:$0xff] %v3533_v33 }
 0x4d4   :  { %v3522_v37 = vpop.f32.mrf.mxu1 }
 0x4d5   :  { %v3523_v41 = vadd.f32 %v3522_v37, %v3415_v35 }
 0x4d6   :  { %v3524_v38 = vpop.f32.mrf.mxu1 }
 0x4d7   :  { %v3525_v43 = vadd.f32 %v3524_v38, %v3419_v36 }
 0x4d8   :  { %v3526_v44 = vpop.f32.mrf.mxu1 }
 0x4d9   :  { %v3534_v45 = vcombine.low %v3523_v41, %v3525_v43 }
 0x4da   :  { %v3527_v40 = vpop.f32.mrf.mxu1 }
 0x4db   :  { %3538 = vst [vmem:[#allocation4 + $0x8] sm:$0xff] %v3534_v45 }
 0x4dc   :  { %4492 = shalt.err (!%p4489_p4)
}
 0x4dd   :  { %3548 = dma.vmem_to_hbm [thread:$0]  %s3546_s8, 256, %s5441_s9, [#allocation5]  }
 0x4de   :  { %4501 = dma.done.wait [#allocation5], 256  }
 0x4df   :  { %4502 = vsyncadd [#allocation5], 4294967040 }
 0x4e0   :  { %3552 = vsyncpa [#allocation5], 1 }

// kernel: tpu_custom_call.1
= control target key start
LH: loop header
LB: loop body
LE: loop exit
PB: predicated region body
PF: predicated region fallthrough
CT: control target
= control target key end

     0   :  { %v4503_v5 = vmov 0   ;;  %vm44_vm0 = vcmask 130048   ;;  %s5432_s0 = inlined_call_operand.vmem [shape: f32[1,16,256], index: 0, kind: input, shape index: {}]   ;;  %s5433_s1 = inlined_call_operand.vmem [shape: bf16[9,8,16], index: 1, kind: input, shape index: {}]   ;;  %s5434_s2 = inlined_call_operand.vmem [shape: bf16[2304,64], index: 2, kind: input, shape index: {}]   ;;  %s5435_s3 = inlined_call_operand.vmem [shape: f32[8,1], index: 3, kind: input, shape index: {}]   ;;  %s5436_s4 = inlined_call_operand.vmem [shape: bf16[9,4,8], index: 4, kind: input, shape index: {}]   ;;  %s5437_s5 = inlined_call_operand.vmem [shape: bf16[1152,16], index: 5, kind: input, shape index: {}]   ;;  %s5438_s6 = inlined_call_operand.vmem [shape: f32[4,1], index: 6, kind: input, shape index: {}]   ;;  %s5439_s7 = inlined_call_operand.vmem [shape: bf16[16,512], index: 7, kind: input, shape index: {}]   ;;  %s5440_s8 = inlined_call_operand.vmem [shape: f32[1,512], index: 8, kind: input, shape index: {}]   ;;  %s5441_s9 = inlined_call_operand.hbm [shape: f32[1,4,512], index: 9, kind: output, shape index: {}]  }
   0x1   :  { %v35_v0 = vld [vmem:[%s5432_s0 + $0x8] sm:$0xff]  ;;  %v37_v1 = vld [vmem:[%s5432_s0 + $0x18] sm:$0xff]  ;;  %v34_v2 = vld [vmem:[%s5432_s0] sm:$0xff]  ;;  %80 = vmatprep.mubr.bf16.mxu1 %v4503_v5  ;;  %40 = vst [vmem:[#allocation3] sm:$0xff] %v4503_v5  ;;  %190 = vmatprep.mubr.bf16.mxu0 %v4503_v5 }
   0x2   :  { %v39_v3 = vpack.c.bf16 %v37_v1, %v35_v0  ;;  %v36_v4 = vld [vmem:[%s5432_s0 + $0x10] sm:$0xff]  ;;  %41 = vst [vmem:[#allocation3 + $0x8] sm:$0xff] %v4503_v5  ;;  %42 = vst [vmem:[#allocation3 + $0x10] sm:$0x3] %v4503_v5  ;;  %4256 = vset.pattern.permute.xlu0 %v4503_v5  ;;  %v43_v7 = vld [vmem:[%s5433_s1] sm:$0xf] }
   0x3   :  { %v38_v6 = vpack.c.bf16 %v36_v4, %v34_v2  ;;  %v3558_v8 = vld [vmem:[%s5433_s1 + $0x8] sm:$0xf]  ;;  %v3555_v9 = vld [vmem:[%s5433_s1 + $0x4] sm:$0xf]  ;;  %v3564_v10 = vld [vmem:[%s5433_s1 + $0x10] sm:$0xf] }
   0x4   :  { %62 = vmatprep.subr.bf16.mxu1 %v39_v3  ;;  %172 = vmatprep.subr.bf16.mxu0 %v39_v3  ;;  %v3561_v11 = vld [vmem:[%s5433_s1 + $0xc] sm:$0xf]  ;;  %v3570_v12 = vld [vmem:[%s5433_s1 + $0x18] sm:$0xf]  ;;  %v3567_v14 = vld [vmem:[%s5433_s1 + $0x14] sm:$0xf] }
   0x5   :  { %63 = vmatpush1.bf16.msra.mxu1 %v38_v6  ;;  %173 = vmatpush1.bf16.msra.mxu0 %v38_v6  ;;  %v4262_v13 = vld [vmem:[%s5434_s2 + $0xf8] sm:$0xff]   ;;  %v3576_v15 = vld [vmem:[%s5433_s1 + $0x20] sm:$0xf]  ;;  %v4266_v18 = vld [vmem:[%s5434_s2 + $0xf0] sm:$0xff]  }
   0x6   :  { %117 = vmatprep.subr.bf16.mxu1 %v39_v3  ;;  %282 = vmatprep.subr.bf16.mxu0 %v39_v3  ;;  %v4257_v16 = vld [vmem:[%s5434_s2 + $0x78] sm:$0xff]   ;;  %v4268_v19 = vld [vmem:[%s5434_s2 + $0xb0] sm:$0xff]   ;;  %v4270_v20 = vld [vmem:[%s5434_s2 + $0xe8] sm:$0xff]  }
   0x7   :  { %v4264_v17 = vld [vmem:[%s5434_s2 + $0xb8] sm:$0xff]   ;;  %v4259_v23 = vld [vmem:[%s5434_s2 + $0x70] sm:$0xff]   ;;  %v4272_v24 = vld [vmem:[%s5434_s2 + $0xa8] sm:$0xff]  }
   0x8   :  { %3553 = vmatmul.mubr.msk.bf16.vlgmr.msra.gmra.mxu1 %vm44_vm0, %v43_v7  ;;  %3559 = vmatmul.mubr.msk.bf16.vlgmr.msra.gmra.mxu0 %vm44_vm0, %v3558_v8  ;;  %v3573_v21 = vld [vmem:[%s5433_s1 + $0x1c] sm:$0xf]  ;;  %v4274_v25 = vld [vmem:[%s5434_s2 + $0xe0] sm:$0xff]   ;;  %v4260_v26 = vld [vmem:[%s5434_s2 + $0x30] sm:$0xff]  }
   0x9   :  { %118 = vmatpush1.bf16.msra.mxu1 %v38_v6  ;;  %135 = vmatprep.mubr.bf16.mxu1 %v4503_v5  ;;  %v4258_v22 = vld [vmem:[%s5434_s2 + $0x38] sm:$0xff]   ;;  %v4261_v27 = vld [vmem:[%s5434_s2 + $0x68] sm:$0xff]   ;;  %v4276_v28 = vld [vmem:[%s5434_s2 + $0xa0] sm:$0xff]  }
   0xa   :  { %227 = vmatprep.subr.bf16.mxu1 %v39_v3  ;;  %283 = vmatpush1.bf16.msra.mxu0 %v38_v6  ;;  %v4278_v29 = vld [vmem:[%s5434_s2 + $0xd8] sm:$0xff]   ;;  %v4263_v30 = vld [vmem:[%s5434_s2 + $0x28] sm:$0xff]   ;;  %v4265_v31 = vld [vmem:[%s5434_s2 + $0x60] sm:$0xff]  }
   0xb   :  { %300 = vmatprep.mubr.bf16.mxu0 %v4503_v5  ;;  %392 = vmatprep.subr.bf16.mxu0 %v39_v3  ;;  %v4280_v32 = vld [vmem:[%s5434_s2 + $0x98] sm:$0xff]   ;;  %v4267_v33 = vld [vmem:[%s5434_s2 + $0x20] sm:$0xff]   ;;  %v4273_v36 = vld [vmem:[%s5434_s2 + $0x50] sm:$0xff]  }
   0xc   :  { %v4269_v34 = vld [vmem:[%s5434_s2 + $0x58] sm:$0xff]   ;;  %v4275_v37 = vld [vmem:[%s5434_s2 + $0x10] sm:$0xff]   ;;  %v4277_v38 = vld [vmem:[%s5434_s2 + $0x48] sm:$0xff]  }
   0xd   :  { %v4271_v35 = vld [vmem:[%s5434_s2 + $0x18] sm:$0xff]   ;;  %v4279_v39 = vld [vmem:[%s5434_s2 + $0x8] sm:$0xff]   ;;  %v4281_v40 = vld [vmem:[%s5434_s2 + $0x40] sm:$0xff]  }
   0xe   :  { %v4282_v41 = vld [vmem:[%s5434_s2 + $0xd0] sm:$0xff]   ;;  %v4283_v42 = vld [vmem:[%s5434_s2] sm:$0xff]   ;;  %v4285_v44 = vld [vmem:[%s5434_s2 + $0xc8] sm:$0xff]  }
   0xf   :  { %v4284_v43 = vld [vmem:[%s5434_s2 + $0x90] sm:$0xff]   ;;  %v4286_v45 = vld [vmem:[%s5434_s2 + $0x178] sm:$0xff]   ;;  %v4287_v46 = vld [vmem:[%s5434_s2 + $0x88] sm:$0xff]  }
  0x10   :  { %3556 = vmatmul.mubr.msk.bf16.vlgmr.msra.gmra.mxu1 %vm44_vm0, %v3555_v9  ;;  %3565 = vmatmul.mubr.msk.bf16.vlgmr.msra.gmra.mxu0 %vm44_vm0, %v3564_v10  ;;  %v4289_v47 = vld [vmem:[%s5434_s2 + $0xc0] sm:$0xff]   ;;  %v4294_v49 = vld [vmem:[%s5434_s2 + $0x1f8] sm:$0xff]  }
  0x11   :  { %228 = vmatpush1.bf16.msra.mxu1 %v38_v6  ;;  %245 = vmatprep.mubr.bf16.mxu1 %v4503_v5  ;;  %v4291_v48 = vld [vmem:[%s5434_s2 + $0x80] sm:$0xff]  }
  0x12   :  { %337 = vmatprep.subr.bf16.mxu1 %v39_v3  ;;  %393 = vmatpush1.bf16.msra.mxu0 %v38_v6  ;;  %v835_v50 = vld [vmem:[%s5435_s3] sm:$0xff] }
  0x13   :  { %410 = vmatprep.mubr.bf16.mxu0 %v4503_v5  ;;  %502 = vmatprep.subr.bf16.mxu0 %v39_v3 }
  0x14   :  { %838 = vperm.xlu0 %4256, %v835_v50  }
  0x18   :  { %3562 = vmatmul.mubr.msk.bf16.vlgmr.msra.gmra.mxu1 %vm44_vm0, %v3561_v11  ;;  %3571 = vmatmul.mubr.msk.bf16.vlgmr.msra.gmra.mxu0 %vm44_vm0, %v3570_v12 }
  0x19   :  { %338 = vmatpush1.bf16.msra.mxu1 %v38_v6  ;;  %355 = vmatprep.mubr.bf16.mxu1 %v4503_v5 }
  0x1a   :  { %447 = vmatprep.subr.bf16.mxu1 %v39_v3  ;;  %503 = vmatpush1.bf16.msra.mxu0 %v38_v6 }
  0x1b   :  { %520 = vmatprep.mubr.bf16.mxu0 %v4503_v5  ;;  %3886 = vmatprep.subr.bf16.mxu0 %v4262_v13 }
  0x20   :  { %3568 = vmatmul.mubr.msk.bf16.vlgmr.msra.gmra.mxu1 %vm44_vm0, %v3567_v14  ;;  %3577 = vmatmul.mubr.msk.bf16.vlgmr.msra.gmra.mxu0 %vm44_vm0, %v3576_v15 }
  0x21   :  { %448 = vmatpush1.bf16.msra.mxu1 %v38_v6  ;;  %465 = vmatprep.mubr.bf16.mxu1 %v4503_v5 }
  0x22   :  { %3864 = vmatprep.subr.bf16.mxu1 %v4257_v16  ;;  %3887 = vmatpush3.bf16.msra.mxu0 %v4264_v17 }
  0x23   :  { %3888 = vmatprep.subr.bf16.mxu0 %v4266_v18 }
  0x26   :  { %3889 = vmatpush3.bf16.msra.mxu0 %v4268_v19 }
  0x27   :  { %3890 = vmatprep.subr.bf16.mxu0 %v4270_v20 }
  0x28   :  { %3574 = vmatmul.mubr.msk.bf16.vlgmr.msra.gmra.mxu1 %vm44_vm0, %v3573_v21 }
  0x29   :  { %3865 = vmatpush3.bf16.msra.mxu1 %v4258_v22 }
  0x2a   :  { %3866 = vmatprep.subr.bf16.mxu1 %v4259_v23  ;;  %3891 = vmatpush3.bf16.msra.mxu0 %v4272_v24 }
  0x2b   :  { %3892 = vmatprep.subr.bf16.mxu0 %v4274_v25 }
  0x2d   :  { %3867 = vmatpush3.bf16.msra.mxu1 %v4260_v26 }
  0x2e   :  { %3868 = vmatprep.subr.bf16.mxu1 %v4261_v27  ;;  %3893 = vmatpush3.bf16.msra.mxu0 %v4276_v28 }
  0x2f   :  { %3894 = vmatprep.subr.bf16.mxu0 %v4278_v29 }
  0x31   :  { %3869 = vmatpush3.bf16.msra.mxu1 %v4263_v30 }
  0x32   :  { %3870 = vmatprep.subr.bf16.mxu1 %v4265_v31  ;;  %3895 = vmatpush3.bf16.msra.mxu0 %v4280_v32 }
  0x33   :  { %3896 = vmatprep.subr.bf16.mxu0 %v4282_v41 }
  0x35   :  { %3871 = vmatpush3.bf16.msra.mxu1 %v4267_v33 }
  0x36   :  { %3872 = vmatprep.subr.bf16.mxu1 %v4269_v34  ;;  %3897 = vmatpush3.bf16.msra.mxu0 %v4284_v43 }
  0x37   :  { %3898 = vmatprep.subr.bf16.mxu0 %v4285_v44 }
  0x39   :  { %3873 = vmatpush3.bf16.msra.mxu1 %v4271_v35 }
  0x3a   :  { %3874 = vmatprep.subr.bf16.mxu1 %v4273_v36  ;;  %3899 = vmatpush3.bf16.msra.mxu0 %v4287_v46 }
  0x3b   :  { %3900 = vmatprep.subr.bf16.mxu0 %v4289_v47 }
  0x3d   :  { %3875 = vmatpush3.bf16.msra.mxu1 %v4275_v37 }
  0x3e   :  { %3876 = vmatprep.subr.bf16.mxu1 %v4277_v38  ;;  %3901 = vmatpush3.bf16.msra.mxu0 %v4291_v48 }
  0x3f   :  { %3930 = vmatprep.subr.bf16.mxu0 %v4294_v49 }
  0x41   :  { %3877 = vmatpush3.bf16.msra.mxu1 %v4279_v39 }
  0x42   :  { %3878 = vmatprep.subr.bf16.mxu1 %v4281_v40 }
  0x45   :  { %3879 = vmatpush3.bf16.msra.mxu1 %v4283_v42 }
  0x46   :  { %3908 = vmatprep.subr.bf16.mxu1 %v4286_v45 }
  0x47   :  { %14 = vsyncpa [#allocation5], 0  ;;  %v4288_v56 = vld [vmem:[%s5434_s2 + $0x138] sm:$0xff]   ;;  %v4290_v60 = vld [vmem:[%s5434_s2 + $0x170] sm:$0xff]   ;;  %vm4505_vm1 = vmmov 0   ;;  %vm2135_vm2 = vcmask 1043456  }
  0x48   :  { %v2705_v0 = vld [vmem:[%s5438_s6] sm:$0xf]  ;;  %v4292_v1 = vld [vmem:[%s5434_s2 + $0x130] sm:$0xff]   ;;  %v4293_v3 = vld [vmem:[%s5434_s2 + $0x168] sm:$0xff]   ;;  %vm2131_vm3 = vcmask 64512   ;;  %vm2180_vm4 = vcmask 517120  }
  0x49   :  { %2708 = vperm.xlu0 %4256, %v2705_v0   ;;  %v4295_v10 = vld [vmem:[%s5434_s2 + $0x128] sm:$0xff]   ;;  %v4296_v11 = vld [vmem:[%s5434_s2 + $0x1b8] sm:$0xff]   ;;  %v4297_v12 = vld [vmem:[%s5434_s2 + $0x160] sm:$0xff]  }
  0x4a   :  { %v4298_v13 = vld [vmem:[%s5434_s2 + $0x1f0] sm:$0xff]   ;;  %v4299_v18 = vld [vmem:[%s5434_s2 + $0x120] sm:$0xff]   ;;  %v4301_v20 = vld [vmem:[%s5434_s2 + $0x158] sm:$0xff]  }
  0x4b   :  { %v4300_v19 = vld [vmem:[%s5434_s2 + $0x1b0] sm:$0xff]   ;;  %v4302_v21 = vld [vmem:[%s5434_s2 + $0x1e8] sm:$0xff]   ;;  %v4303_v26 = vld [vmem:[%s5434_s2 + $0x118] sm:$0xff]  }
  0x4c   :  { %v4304_v27 = vld [vmem:[%s5434_s2 + $0x1a8] sm:$0xff]   ;;  %v4305_v29 = vld [vmem:[%s5434_s2 + $0x150] sm:$0xff]   ;;  %v4306_v30 = vld [vmem:[%s5434_s2 + $0x1e0] sm:$0xff]  }
  0x4d   :  { %v4307_v35 = vld [vmem:[%s5434_s2 + $0x110] sm:$0xff]   ;;  %v4308_v36 = vld [vmem:[%s5434_s2 + $0x1a0] sm:$0xff]   ;;  %v4309_v37 = vld [vmem:[%s5434_s2 + $0x148] sm:$0xff]  }
  0x4e   :  { %v4310_v38 = vld [vmem:[%s5434_s2 + $0x1d8] sm:$0xff]   ;;  %v4311_v43 = vld [vmem:[%s5434_s2 + $0x108] sm:$0xff]   ;;  %v4313_v45 = vld [vmem:[%s5434_s2 + $0x140] sm:$0xff]  }
  0x4f   :  { %v4312_v44 = vld [vmem:[%s5434_s2 + $0x198] sm:$0xff]   ;;  %v4314_v46 = vld [vmem:[%s5434_s2 + $0x1d0] sm:$0xff]  }
  0xc8   :  { %v82_v51 = vpop.f32.mrf.mxu1  ;;  %v4724_v52 = vpop.f32.mrf.mxu0 }
  0xc9   :  { %v3846_v58 = vpack.c.bf16 %v82_v51, %v82_v51  ;;  %v4315_v51 = vld [vmem:[%s5434_s2 + $0x100] sm:$0xff]  }
  0xca   :  { %v84_v53 = vpop.f32.mrf.mxu1  ;;  %v194_v54 = vpop.f32.mrf.mxu0 }
  0xcb   :  { %v3847_v55 = vpack.c.bf16 %v84_v53, %v84_v53  ;;  %v3851_v57 = vpack.c.bf16 %v194_v54, %v194_v54  ;;  %v4316_v53 = vld [vmem:[%s5434_s2 + $0x190] sm:$0xff]   ;;  %v4317_v54 = vld [vmem:[%s5434_s2 + $0x1c8] sm:$0xff]  }
  0xcc   :  { %v86_v59 = vpop.f32.mrf.mxu1  ;;  %v196_v61 = vpop.f32.mrf.mxu0 }
  0xcd   :  { %1800 = vmatprep.mubr.bf16.mxu1 %v3847_v55  ;;  %v4318_v55 = vld [vmem:[%s5434_s2 + $0x278] sm:$0xff]   ;;  %v4321_v61 = vld [vmem:[%s5434_s2 + $0x1c0] sm:$0xff]  }
  0xce   :  { %v87_v62 = vpop.f32.mrf.mxu1  ;;  %1801 = vmatmul.mubr.bf16.vlgmr.msra.gmra.mxu1 %v3846_v58  ;;  %v197_v63 = vpop.f32.mrf.mxu0  ;;  %v4319_v58 = vld [vmem:[%s5434_s2 + $0x188] sm:$0xff]   ;;  %v4320_v59 = vld [vmem:[%s5434_s2 + $0x238] sm:$0xff]  }
  0xcf   :  { %3909 = vmatpush3.bf16.msra.mxu1 %v4288_v56  ;;  %1880 = vmatprep.mubr.bf16.mxu1 %v3851_v57  ;;  %v4322_v62 = vld [vmem:[%s5434_s2 + $0x270] sm:$0xff]  }
  0xd0   :  { %v137_v2 = vpop.f32.mrf.mxu1  ;;  %3910 = vmatprep.subr.bf16.mxu1 %v4290_v60  ;;  %v4741_v4 = vpop.f32.mrf.mxu0  ;;  %v3850_v60 = vpack.c.bf16 %v4724_v52, %v4724_v52  ;;  %v4323_v52 = vld [vmem:[%s5434_s2 + $0x180] sm:$0xff]  }
  0xd1   :  { %v3848_v6 = vpack.c.bf16 %v137_v2, %v137_v2  ;;  %v4324_v2 = vld [vmem:[%s5434_s2 + $0x230] sm:$0xff]  }
  0xd2   :  { %v139_v7 = vpop.f32.mrf.mxu1  ;;  %v4743_v8 = vpop.f32.mrf.mxu0 }
  0xd3   :  { %v3849_v9 = vpack.c.bf16 %v139_v7, %v139_v7  ;;  %3911 = vmatpush3.bf16.msra.mxu1 %v4292_v1  ;;  %v3855_v0 = vpack.c.bf16 %v4743_v8, %v4743_v8  ;;  %v4327_v8 = vld [vmem:[%s5434_s2 + $0x228] sm:$0xff]  }
  0xd4   :  { %3912 = vmatprep.subr.bf16.mxu1 %v4293_v3  ;;  %v141_v14 = vpop.f32.mrf.mxu1  ;;  %v306_v15 = vpop.f32.mrf.mxu0  ;;  %v4325_v3 = vld [vmem:[%s5434_s2 + $0x268] sm:$0xff]  }
  0xd5   :  { %1840 = vmatprep.mubr.bf16.mxu0 %v3849_v9  ;;  %v4328_v9 = vld [vmem:[%s5434_s2 + $0x2b8] sm:$0xff]   ;;  %v4332_v14 = vld [vmem:[%s5434_s2 + $0x2b0] sm:$0xff]  }
  0xd6   :  { %1841 = vmatmul.mubr.bf16.vlgmr.msra.gmra.mxu0 %v3848_v6  ;;  %v142_v16 = vpop.f32.mrf.mxu1  ;;  %v307_v17 = vpop.f32.mrf.mxu0  ;;  %v4326_v6 = vld [vmem:[%s5434_s2 + $0x2f8] sm:$0xff]  }
  0xd7   :  { %3913 = vmatpush3.bf16.msra.mxu1 %v4295_v10  ;;  %3931 = vmatpush3.bf16.msra.mxu0 %v4296_v11  ;;  %v4329_v10 = vld [vmem:[%s5434_s2 + $0x260] sm:$0xff]   ;;  %v4330_v11 = vld [vmem:[%s5434_s2 + $0x2f0] sm:$0xff]   ;;  %v4333_v15 = vld [vmem:[%s5434_s2 + $0x258] sm:$0xff]  }
  0xd8   :  { %3914 = vmatprep.subr.bf16.mxu1 %v4297_v12  ;;  %3932 = vmatprep.subr.bf16.mxu0 %v4298_v13  ;;  %v4769_v22 = vpop.f32.mrf.mxu1  ;;  %v4771_v23 = vpop.f32.mrf.mxu0  ;;  %v4331_v13 = vld [vmem:[%s5434_s2 + $0x220] sm:$0xff]   ;;  %v4334_v16 = vld [vmem:[%s5434_s2 + $0x2e8] sm:$0xff]   ;;  %v4335_v17 = vld [vmem:[%s5434_s2 + $0x218] sm:$0xff]  }
  0xd9   :  { %v3852_v7 = vpack.c.bf16 %v4769_v22, %v4769_v22  ;;  %v4340_v22 = vld [vmem:[%s5434_s2 + $0x2a0] sm:$0xff]  }
  0xda   :  { %v249_v24 = vpop.f32.mrf.mxu1  ;;  %v4773_v25 = vpop.f32.mrf.mxu0 }
  0xdb   :  { %3915 = vmatpush3.bf16.msra.mxu1 %v4299_v18  ;;  %3933 = vmatpush3.bf16.msra.mxu0 %v4300_v19  ;;  %v3853_v28 = vpack.c.bf16 %v249_v24, %v249_v24  ;;  %v4336_v18 = vld [vmem:[%s5434_s2 + $0x2a8] sm:$0xff]   ;;  %v4337_v19 = vld [vmem:[%s5434_s2 + $0x250] sm:$0xff]  }
  0xdc   :  { %3916 = vmatprep.subr.bf16.mxu1 %v4301_v20  ;;  %3934 = vmatprep.subr.bf16.mxu0 %v4302_v21  ;;  %v251_v31 = vpop.f32.mrf.mxu1  ;;  %v416_v32 = vpop.f32.mrf.mxu0  ;;  %v4338_v20 = vld [vmem:[%s5434_s2 + $0x2e0] sm:$0xff]   ;;  %v4339_v21 = vld [vmem:[%s5434_s2 + $0x210] sm:$0xff]   ;;  %v4341_v24 = vld [vmem:[%s5434_s2 + $0x248] sm:$0xff]  }
  0xdd   :  { %1920 = vmatprep.mubr.bf16.mxu0 %v3853_v28  ;;  %v4344_v28 = vld [vmem:[%s5434_s2 + $0x298] sm:$0xff]   ;;  %v4347_v31 = vld [vmem:[%s5434_s2 + $0x200] sm:$0xff]   ;;  %v4348_v32 = vld [vmem:[%s5434_s2 + $0x290] sm:$0xff]  }
  0xde   :  { %v252_v33 = vpop.f32.mrf.mxu1  ;;  %v417_v34 = vpop.f32.mrf.mxu0 }
  0xdf   :  { %3917 = vmatpush3.bf16.msra.mxu1 %v4303_v26  ;;  %3935 = vmatpush3.bf16.msra.mxu0 %v4304_v27  ;;  %v4342_v26 = vld [vmem:[%s5434_s2 + $0x2d8] sm:$0xff]   ;;  %v4343_v27 = vld [vmem:[%s5434_s2 + $0x208] sm:$0xff]  }
  0xe0   :  { %3918 = vmatprep.subr.bf16.mxu1 %v4305_v29  ;;  %3936 = vmatprep.subr.bf16.mxu0 %v4306_v30  ;;  %v4799_v39 = vpop.f32.mrf.mxu1  ;;  %v4801_v40 = vpop.f32.mrf.mxu0  ;;  %v4345_v29 = vld [vmem:[%s5434_s2 + $0x240] sm:$0xff]   ;;  %v4346_v30 = vld [vmem:[%s5434_s2 + $0x2d0] sm:$0xff]   ;;  %v4349_v33 = vld [vmem:[%s5434_s2 + $0x2c8] sm:$0xff]  }
  0xe1   :  { %v4350_v34 = vld [vmem:[%s5434_s2 + $0x378] sm:$0xff]  }
  0xe2   :  { %v4803_v41 = vpop.f32.mrf.mxu1  ;;  %v4805_v42 = vpop.f32.mrf.mxu0 }
  0xe3   :  { %3919 = vmatpush3.bf16.msra.mxu1 %v4307_v35  ;;  %3937 = vmatpush3.bf16.msra.mxu0 %v4308_v36  ;;  %v3857_v12 = vpack.c.bf16 %v4803_v41, %v4803_v41  ;;  %v4351_v35 = vld [vmem:[%s5434_s2 + $0x288] sm:$0xff]   ;;  %v4352_v36 = vld [vmem:[%s5434_s2 + $0x338] sm:$0xff]   ;;  %v4354_v41 = vld [vmem:[%s5434_s2 + $0x370] sm:$0xff]  }
  0xe4   :  { %3920 = vmatprep.subr.bf16.mxu1 %v4309_v37  ;;  %3938 = vmatprep.subr.bf16.mxu0 %v4310_v38  ;;  %v361_v47 = vpop.f32.mrf.mxu1  ;;  %v526_v48 = vpop.f32.mrf.mxu0  ;;  %v3854_v37 = vpack.c.bf16 %v4741_v4, %v4741_v4  ;;  %v4353_v38 = vld [vmem:[%s5434_s2 + $0x2c0] sm:$0xff]  }
  0xe5   :  { %v4355_v4 = vld [vmem:[%s5434_s2 + $0x280] sm:$0xff]   ;;  %v4359_v47 = vld [vmem:[%s5434_s2 + $0x328] sm:$0xff]   ;;  %v4360_v48 = vld [vmem:[%s5434_s2 + $0x3b8] sm:$0xff]  }
  0xe6   :  { %v362_v49 = vpop.f32.mrf.mxu1  ;;  %v527_v50 = vpop.f32.mrf.mxu0 }
  0xe7   :  { %3921 = vmatpush3.bf16.msra.mxu1 %v4311_v43  ;;  %3939 = vmatpush3.bf16.msra.mxu0 %v4312_v44  ;;  %v3859_v43 = vpack.c.bf16 %v4773_v25, %v4773_v25  ;;  %v4356_v44 = vld [vmem:[%s5434_s2 + $0x330] sm:$0xff]   ;;  %v4358_v25 = vld [vmem:[%s5434_s2 + $0x3f8] sm:$0xff]   ;;  %v4361_v49 = vld [vmem:[%s5434_s2 + $0x360] sm:$0xff]  }
  0xe8   :  { %3922 = vmatprep.subr.bf16.mxu1 %v4313_v45  ;;  %3940 = vmatprep.subr.bf16.mxu0 %v4314_v46  ;;  %v4831_v56 = vpop.f32.mrf.mxu1  ;;  %v4357_v45 = vld [vmem:[%s5434_s2 + $0x368] sm:$0xff]   ;;  %v3856_v46 = vpack.c.bf16 %v4799_v39, %v4799_v39  ;;  %v4362_v39 = vld [vmem:[%s5434_s2 + $0x3f0] sm:$0xff]  }
  0xea   :  { %v4833_v57 = vpop.f32.mrf.mxu1 }
  0xeb   :  { %3923 = vmatpush3.bf16.msra.mxu1 %v4315_v51  ;;  %3941 = vmatpush3.bf16.msra.mxu0 %v4316_v53  ;;  %v3861_v50 = vpack.c.bf16 %v4833_v57, %v4833_v57  ;;  %v4363_v51 = vld [vmem:[%s5434_s2 + $0x320] sm:$0xff]   ;;  %v4364_v53 = vld [vmem:[%s5434_s2 + $0x3b0] sm:$0xff]   ;;  %v4367_v57 = vld [vmem:[%s5434_s2 + $0x318] sm:$0xff]  }
  0xec   :  { %3942 = vmatprep.subr.bf16.mxu0 %v4317_v54  ;;  %3952 = vmatprep.subr.bf16.mxu1 %v4318_v55  ;;  %v471_v63 = vpop.f32.mrf.mxu1  ;;  %v4365_v54 = vld [vmem:[%s5434_s2 + $0x358] sm:$0xff]   ;;  %v4366_v55 = vld [vmem:[%s5434_s2 + $0x3e8] sm:$0xff]  }
  0xed   :  { %v4373_v63 = vld [vmem:[%s5434_s2 + $0x348] sm:$0xff]  }
  0xee   :  { %1881 = vmatmul.mubr.bf16.vlgmr.msra.gmra.mxu1 %v3850_v60  ;;  %v472_v1 = vpop.f32.mrf.mxu1  ;;  %v4370_v60 = vld [vmem:[%s5434_s2 + $0x3e0] sm:$0xff]  }
  0xef   :  { %3943 = vmatpush3.bf16.msra.mxu0 %v4319_v58  ;;  %3953 = vmatpush3.bf16.msra.mxu1 %v4320_v59  ;;  %v4368_v58 = vld [vmem:[%s5434_s2 + $0x3a8] sm:$0xff]   ;;  %v4369_v59 = vld [vmem:[%s5434_s2 + $0x350] sm:$0xff]  }
  0xf0   :  { %3944 = vmatprep.subr.bf16.mxu0 %v4321_v61  ;;  %3954 = vmatprep.subr.bf16.mxu1 %v4322_v62  ;;  %v4371_v61 = vld [vmem:[%s5434_s2 + $0x310] sm:$0xff]   ;;  %v4372_v62 = vld [vmem:[%s5434_s2 + $0x3a0] sm:$0xff]   ;;  %v4375_v1 = vld [vmem:[%s5434_s2 + $0x308] sm:$0xff]  }
  0xf1   :  { %1960 = vmatprep.mubr.bf16.mxu1 %v3855_v0  ;;  %v4374_v0 = vld [vmem:[%s5434_s2 + $0x3d8] sm:$0xff]  }
  0xf3   :  { %3945 = vmatpush3.bf16.msra.mxu0 %v4323_v52  ;;  %3955 = vmatpush3.bf16.msra.mxu1 %v4324_v2  ;;  %v4376_v52 = vld [vmem:[%s5434_s2 + $0x398] sm:$0xff]   ;;  %v4377_v2 = vld [vmem:[%s5434_s2 + $0x340] sm:$0xff]  }
  0xf4   :  { %3956 = vmatprep.subr.bf16.mxu1 %v4325_v3  ;;  %3974 = vmatprep.subr.bf16.mxu0 %v4326_v6  ;;  %v4378_v3 = vld [vmem:[%s5434_s2 + $0x3d0] sm:$0xff]   ;;  %v4379_v6 = vld [vmem:[%s5434_s2 + $0x300] sm:$0xff]  }
  0xf6   :  { %1921 = vmatmul.mubr.bf16.vlgmr.msra.gmra.mxu0 %v3852_v7  ;;  %v4380_v7 = vld [vmem:[%s5434_s2 + $0x390] sm:$0xff]  }
  0xf7   :  { %3957 = vmatpush3.bf16.msra.mxu1 %v4327_v8  ;;  %3975 = vmatpush3.bf16.msra.mxu0 %v4328_v9  ;;  %v4381_v8 = vld [vmem:[%s5434_s2 + $0x3c8] sm:$0xff]   ;;  %v4382_v9 = vld [vmem:[%s5434_s2 + $0x478] sm:$0xff]  }
  0xf8   :  { %3958 = vmatprep.subr.bf16.mxu1 %v4329_v10  ;;  %3976 = vmatprep.subr.bf16.mxu0 %v4330_v11  ;;  %v4383_v10 = vld [vmem:[%s5434_s2 + $0x388] sm:$0xff]   ;;  %v4384_v11 = vld [vmem:[%s5434_s2 + $0x438] sm:$0xff]  }
  0xf9   :  { %2000 = vmatprep.mubr.bf16.mxu0 %v3857_v12  ;;  %v3858_v12 = vpack.c.bf16 %v4771_v23, %v4771_v23  ;;  %v4387_v23 = vld [vmem:[%s5434_s2 + $0x380] sm:$0xff]  }
  0xfb   :  { %3959 = vmatpush3.bf16.msra.mxu1 %v4331_v13  ;;  %3977 = vmatpush3.bf16.msra.mxu0 %v4332_v14  ;;  %v4385_v13 = vld [vmem:[%s5434_s2 + $0x3c0] sm:$0xff]   ;;  %v4386_v14 = vld [vmem:[%s5434_s2 + $0x470] sm:$0xff]  }
  0xfc   :  { %3960 = vmatprep.subr.bf16.mxu1 %v4333_v15  ;;  %3978 = vmatprep.subr.bf16.mxu0 %v4334_v16  ;;  %v3863_v15 = vpack.c.bf16 %v4805_v42, %v4805_v42  ;;  %v4388_v16 = vld [vmem:[%s5434_s2 + $0x430] sm:$0xff]   ;;  %v3860_v42 = vpack.c.bf16 %v4831_v56, %v4831_v56  ;;  %v4393_v56 = vld [vmem:[%s5434_s2 + $0x458] sm:$0xff]  }
  0xff   :  { %3961 = vmatpush3.bf16.msra.mxu1 %v4335_v17  ;;  %3979 = vmatpush3.bf16.msra.mxu0 %v4336_v18  ;;  %v4389_v17 = vld [vmem:[%s5434_s2 + $0x468] sm:$0xff]  }
 0x100   :  { %3962 = vmatprep.subr.bf16.mxu1 %v4337_v19  ;;  %3980 = vmatprep.subr.bf16.mxu0 %v4338_v20  ;;  %v4390_v18 = vld [vmem:[%s5434_s2 + $0x428] sm:$0xff]   ;;  %v4391_v19 = vld [vmem:[%s5434_s2 + $0x460] sm:$0xff]  }
 0x101   :  { %v4392_v20 = vld [vmem:[%s5434_s2 + $0x420] sm:$0xff]  }
 0x103   :  { %3963 = vmatpush3.bf16.msra.mxu1 %v4339_v21  ;;  %3981 = vmatpush3.bf16.msra.mxu0 %v4340_v22  ;;  %v4394_v21 = vld [vmem:[%s5434_s2 + $0x418] sm:$0xff]   ;;  %v4395_v22 = vld [vmem:[%s5434_s2 + $0x450] sm:$0xff]  }
 0x104   :  { %3964 = vmatprep.subr.bf16.mxu1 %v4341_v24  ;;  %3982 = vmatprep.subr.bf16.mxu0 %v4342_v26  ;;  %v4396_v24 = vld [vmem:[%s5434_s2 + $0x410] sm:$0xff]   ;;  %v4397_v26 = vld [vmem:[%s5434_s2 + $0x448] sm:$0xff]  }
 0x107   :  { %3965 = vmatpush3.bf16.msra.mxu1 %v4343_v27  ;;  %3983 = vmatpush3.bf16.msra.mxu0 %v4344_v28  ;;  %v4398_v27 = vld [vmem:[%s5434_s2 + $0x408] sm:$0xff]   ;;  %v4399_v28 = vld [vmem:[%s5434_s2 + $0x440] sm:$0xff]  }
 0x108   :  { %3966 = vmatprep.subr.bf16.mxu1 %v4345_v29  ;;  %3984 = vmatprep.subr.bf16.mxu0 %v4346_v30  ;;  %v4400_v29 = vld [vmem:[%s5434_s2 + $0x400] sm:$0xff]   ;;  %v3862_v30 = vpack.c.bf16 %v4801_v40, %v4801_v40 }
 0x10b   :  { %3967 = vmatpush3.bf16.msra.mxu1 %v4347_v31  ;;  %3985 = vmatpush3.bf16.msra.mxu0 %v4348_v32 }
 0x10c   :  { %3986 = vmatprep.subr.bf16.mxu0 %v4349_v33  ;;  %3996 = vmatprep.subr.bf16.mxu1 %v4350_v34 }
 0x10e   :  { %1961 = vmatmul.mubr.bf16.vlgmr.msra.gmra.mxu1 %v3854_v37 }
 0x10f   :  { %3987 = vmatpush3.bf16.msra.mxu0 %v4351_v35  ;;  %3997 = vmatpush3.bf16.msra.mxu1 %v4352_v36  ;;  %v839_v36 = vpop.permute.xlu0 %838 }
 0x110   :  { %3988 = vmatprep.subr.bf16.mxu0 %v4353_v38  ;;  %3998 = vmatprep.subr.bf16.mxu1 %v4354_v41 }
 0x111   :  { %2040 = vmatprep.mubr.bf16.mxu1 %v3859_v43 }
 0x113   :  { %3989 = vmatpush3.bf16.msra.mxu0 %v4355_v4  ;;  %3999 = vmatpush3.bf16.msra.mxu1 %v4356_v44  ;;  %v4504_v4 = vmov 0.0  }
 0x114   :  { %4000 = vmatprep.subr.bf16.mxu1 %v4357_v45  ;;  %4018 = vmatprep.subr.bf16.mxu0 %v4358_v25 }
 0x116   :  { %2001 = vmatmul.mubr.bf16.vlgmr.msra.gmra.mxu0 %v3856_v46 }
 0x117   :  { %4001 = vmatpush3.bf16.msra.mxu1 %v4359_v47  ;;  %4019 = vmatpush3.bf16.msra.mxu0 %v4360_v48 }
 0x118   :  { %4002 = vmatprep.subr.bf16.mxu1 %v4361_v49  ;;  %4020 = vmatprep.subr.bf16.mxu0 %v4362_v39 }
 0x119   :  { %2080 = vmatprep.mubr.bf16.mxu0 %v3861_v50 }
 0x11b   :  { %4003 = vmatpush3.bf16.msra.mxu1 %v4363_v51  ;;  %4021 = vmatpush3.bf16.msra.mxu0 %v4364_v53 }
 0x11c   :  { %4004 = vmatprep.subr.bf16.mxu1 %v4365_v54  ;;  %4022 = vmatprep.subr.bf16.mxu0 %v4366_v55 }
 0x11f   :  { %4005 = vmatpush3.bf16.msra.mxu1 %v4367_v57  ;;  %4023 = vmatpush3.bf16.msra.mxu0 %v4368_v58 }
 0x120   :  { %4006 = vmatprep.subr.bf16.mxu1 %v4369_v59  ;;  %4024 = vmatprep.subr.bf16.mxu0 %v4370_v60 }
 0x123   :  { %4007 = vmatpush3.bf16.msra.mxu1 %v4371_v61  ;;  %4025 = vmatpush3.bf16.msra.mxu0 %v4372_v62 }
 0x124   :  { %4008 = vmatprep.subr.bf16.mxu1 %v4373_v63  ;;  %4026 = vmatprep.subr.bf16.mxu0 %v4374_v0 }
 0x127   :  { %4009 = vmatpush3.bf16.msra.mxu1 %v4375_v1  ;;  %4027 = vmatpush3.bf16.msra.mxu0 %v4376_v52 }
 0x128   :  { %4010 = vmatprep.subr.bf16.mxu1 %v4377_v2  ;;  %4028 = vmatprep.subr.bf16.mxu0 %v4378_v3 }
 0x12b   :  { %4011 = vmatpush3.bf16.msra.mxu1 %v4379_v6  ;;  %4029 = vmatpush3.bf16.msra.mxu0 %v4380_v7 }
 0x12c   :  { %4030 = vmatprep.subr.bf16.mxu0 %v4381_v8  ;;  %4040 = vmatprep.subr.bf16.mxu1 %v4382_v9 }
 0x12e   :  { %2041 = vmatmul.mubr.bf16.vlgmr.msra.gmra.mxu1 %v3858_v12 }
 0x12f   :  { %4031 = vmatpush3.bf16.msra.mxu0 %v4383_v10  ;;  %4041 = vmatpush3.bf16.msra.mxu1 %v4384_v11 }
 0x130   :  { %4032 = vmatprep.subr.bf16.mxu0 %v4385_v13  ;;  %4042 = vmatprep.subr.bf16.mxu1 %v4386_v14 }
 0x131   :  { %2120 = vmatprep.mubr.bf16.mxu1 %v3863_v15 }
 0x133   :  { %4033 = vmatpush3.bf16.msra.mxu0 %v4387_v23  ;;  %4043 = vmatpush3.bf16.msra.mxu1 %v4388_v16 }
 0x134   :  { %4044 = vmatprep.subr.bf16.mxu1 %v4389_v17  ;;  %4177 = vmatprep.subr.bf16.mxu0 %v4504_v4 }
 0x136   :  { %2081 = vmatmul.mubr.bf16.vlgmr.msra.gmra.mxu0 %v3860_v42 }
 0x137   :  { %4045 = vmatpush3.bf16.msra.mxu1 %v4390_v18  ;;  %4179 = vmatprep.mubr.msk.bf16.mxu0 %vm4505_vm1, %v4504_v4 }
 0x138   :  { %4046 = vmatprep.subr.bf16.mxu1 %v4391_v19 }
 0x13b   :  { %4047 = vmatpush3.bf16.msra.mxu1 %v4392_v20 }
 0x13c   :  { %4048 = vmatprep.subr.bf16.mxu1 %v4393_v56 }
 0x13f   :  { %4049 = vmatpush3.bf16.msra.mxu1 %v4394_v21 }
 0x140   :  { %4050 = vmatprep.subr.bf16.mxu1 %v4395_v22 }
 0x143   :  { %4051 = vmatpush3.bf16.msra.mxu1 %v4396_v24 }
 0x144   :  { %4052 = vmatprep.subr.bf16.mxu1 %v4397_v26 }
 0x147   :  { %4053 = vmatpush3.bf16.msra.mxu1 %v4398_v27  ;;  %v2130_v27 = vld [vmem:[%s5436_s4] sm:$0x3] }
 0x148   :  { %4054 = vmatprep.subr.bf16.mxu1 %v4399_v28  ;;  %v3748_v28 = vld [vmem:[%s5436_s4 + $0x8] sm:$0x3] }
 0x14b   :  { %4055 = vmatpush3.bf16.msra.mxu1 %v4400_v29  ;;  %v3742_v29 = vld [vmem:[%s5436_s4 + $0x2] sm:$0x3] }
 0x14c   :  { %4201 = vmatprep.subr.bf16.mxu1 %v4504_v4 }
 0x14e   :  { %2121 = vmatmul.mubr.bf16.vlgmr.msra.gmra.mxu1 %v3862_v30  ;;  %v3752_v30 = vld [vmem:[%s5436_s4 + $0xc] sm:$0x3] }
 0x14f   :  { %4203 = vmatprep.mubr.msk.bf16.mxu1 %vm4505_vm1, %v4504_v4 }
 0x18e   :  { %v3880_v31 = vpop.f32.mrf.mxu1 }
 0x190   :  { %v3881_v32 = vpop.f32.mrf.mxu1 }
 0x191   :  { %v3882_v33 = vadd.f32 %v3881_v32, %v3880_v31  ;;  %v3744_v31 = vld [vmem:[%s5436_s4 + $0x4] sm:$0x3]  ;;  %v3756_v32 = vld [vmem:[%s5436_s4 + $0x10] sm:$0x3] }
 0x192   :  { %v3883_v34 = vpop.f32.mrf.mxu1 }
 0x193   :  { %v1803_v41 = vadd.f32 %v3882_v33, %v839_v36  ;;  %v3746_v33 = vld [vmem:[%s5436_s4 + $0x6] sm:$0x3]  ;;  %v3750_v34 = vld [vmem:[%s5436_s4 + $0xa] sm:$0x3]  ;;  %v4401_v36 = vld [vmem:[%s5437_s5 + $0x78] sm:$0xff]  }
 0x194   :  { %v3884_v35 = vpop.f32.mrf.mxu1 }
 0x195   :  { %v3754_v35 = vld [vmem:[%s5436_s4 + $0xe] sm:$0x3] }
 0x196   :  { %v3902_v37 = vpop.f32.mrf.mxu0 }
 0x198   :  { %v3903_v38 = vpop.f32.mrf.mxu0 }
 0x199   :  { %v3904_v43 = vadd.f32 %v3903_v38, %v3902_v37  ;;  %v4402_v37 = vld [vmem:[%s5437_s5 + $0x38] sm:$0xff]  }
 0x19a   :  { %v3905_v44 = vpop.f32.mrf.mxu0  ;;  %v4403_v38 = vld [vmem:[%s5437_s5 + $0xf8] sm:$0xff]  }
 0x19b   :  { %v1843_v45 = vadd.f32 %v3904_v43, %v1803_v41  ;;  %v4404_v41 = vld [vmem:[%s5437_s5 + $0xb8] sm:$0xff]   ;;  %v4405_v43 = vld [vmem:[%s5437_s5 + $0x70] sm:$0xff]  }
 0x19c   :  { %v3906_v40 = vpop.f32.mrf.mxu0  ;;  %v4406_v44 = vld [vmem:[%s5437_s5 + $0x30] sm:$0xff]  }
 0x19d   :  { %v4408_v40 = vld [vmem:[%s5437_s5 + $0xb0] sm:$0xff]  }
 0x1ae   :  { %v3924_v25 = vpop.f32.mrf.mxu1 }
 0x1b0   :  { %v3925_v46 = vpop.f32.mrf.mxu1 }
 0x1b1   :  { %v3926_v47 = vadd.f32 %v3925_v46, %v3924_v25  ;;  %v4409_v25 = vld [vmem:[%s5437_s5 + $0x68] sm:$0xff]  }
 0x1b2   :  { %v3927_v48 = vpop.f32.mrf.mxu1  ;;  %v4410_v46 = vld [vmem:[%s5437_s5 + $0x28] sm:$0xff]  }
 0x1b3   :  { %v1883_v49 = vadd.f32 %v3926_v47, %v1843_v45  ;;  %v4407_v45 = vld [vmem:[%s5437_s5 + $0xf0] sm:$0xff]   ;;  %v4411_v47 = vld [vmem:[%s5437_s5 + $0xe8] sm:$0xff]  }
 0x1b4   :  { %v3928_v39 = vpop.f32.mrf.mxu1  ;;  %v4412_v48 = vld [vmem:[%s5437_s5 + $0xa8] sm:$0xff]  }
 0x1b5   :  { %v4414_v39 = vld [vmem:[%s5437_s5 + $0x20] sm:$0xff]  }
 0x1b6   :  { %v3946_v50 = vpop.f32.mrf.mxu0 }
 0x1b8   :  { %v3947_v51 = vpop.f32.mrf.mxu0 }
 0x1b9   :  { %v3948_v53 = vadd.f32 %v3947_v51, %v3946_v50  ;;  %v4415_v50 = vld [vmem:[%s5437_s5 + $0xe0] sm:$0xff]  }
 0x1ba   :  { %v3949_v54 = vpop.f32.mrf.mxu0  ;;  %v4416_v51 = vld [vmem:[%s5437_s5 + $0xa0] sm:$0xff]  }
 0x1bb   :  { %v1923_v55 = vadd.f32 %v3948_v53, %v1883_v49  ;;  %v4413_v49 = vld [vmem:[%s5437_s5 + $0x60] sm:$0xff]   ;;  %v4417_v53 = vld [vmem:[%s5437_s5 + $0x58] sm:$0xff]  }
 0x1bc   :  { %v3950_v57 = vpop.f32.mrf.mxu0  ;;  %v4418_v54 = vld [vmem:[%s5437_s5 + $0x18] sm:$0xff]  }
 0x1bd   :  { %v4420_v57 = vld [vmem:[%s5437_s5 + $0x98] sm:$0xff]  }
 0x1ce   :  { %v3968_v58 = vpop.f32.mrf.mxu1 }
 0x1d0   :  { %v3969_v59 = vpop.f32.mrf.mxu1 }
 0x1d1   :  { %v3970_v11 = vadd.f32 %v3969_v59, %v3968_v58  ;;  %v4421_v58 = vld [vmem:[%s5437_s5 + $0x50] sm:$0xff]  }
 0x1d2   :  { %v3971_v60 = vpop.f32.mrf.mxu1  ;;  %v4422_v59 = vld [vmem:[%s5437_s5 + $0x10] sm:$0xff]  }
 0x1d3   :  { %v1963_v13 = vadd.f32 %v3970_v11, %v1923_v55  ;;  %v4419_v55 = vld [vmem:[%s5437_s5 + $0xd8] sm:$0xff]   ;;  %v4423_v60 = vld [vmem:[%s5437_s5 + $0xd0] sm:$0xff]  }
 0x1d4   :  { %v3972_v61 = vpop.f32.mrf.mxu1 }
 0x1d5   :  { %v4424_v61 = vld [vmem:[%s5437_s5 + $0x90] sm:$0xff]  }
 0x1d6   :  { %v3990_v62 = vpop.f32.mrf.mxu0 }
 0x1d8   :  { %v3991_v63 = vpop.f32.mrf.mxu0 }
 0x1d9   :  { %v3992_v12 = vadd.f32 %v3991_v63, %v3990_v62  ;;  %v4425_v62 = vld [vmem:[%s5437_s5 + $0x48] sm:$0xff]  }
 0x1da   :  { %v3993_v0 = vpop.f32.mrf.mxu0  ;;  %v4426_v63 = vld [vmem:[%s5437_s5 + $0x8] sm:$0xff]  }
 0x1db   :  { %v2003_v15 = vadd.f32 %v3992_v12, %v1963_v13  ;;  %v4427_v0 = vld [vmem:[%s5437_s5 + $0xc8] sm:$0xff]  }
 0x1dc   :  { %v3994_v1 = vpop.f32.mrf.mxu0 }
 0x1dd   :  { %v4428_v1 = vld [vmem:[%s5437_s5 + $0x88] sm:$0xff]  }
 0x1ee   :  { %v4012_v52 = vpop.f32.mrf.mxu1 }
 0x1f0   :  { %v4013_v2 = vpop.f32.mrf.mxu1 }
 0x1f1   :  { %v4014_v14 = vadd.f32 %v4013_v2, %v4012_v52  ;;  %v4429_v52 = vld [vmem:[%s5437_s5 + $0x40] sm:$0xff]  }
 0x1f2   :  { %v4015_v3 = vpop.f32.mrf.mxu1  ;;  %v4431_v2 = vld [vmem:[%s5437_s5 + $0xc0] sm:$0xff]  }
 0x1f3   :  { %v2043_v17 = vadd.f32 %v4014_v14, %v2003_v15  ;;  %v4430_v3 = vld [vmem:[%s5437_s5] sm:$0xff]  }
 0x1f4   :  { %v4016_v6 = vpop.f32.mrf.mxu1 }
 0x1f5   :  { %v4432_v6 = vld [vmem:[%s5437_s5 + $0x80] sm:$0xff]  }
 0x1f6   :  { %v4034_v7 = vpop.f32.mrf.mxu0 }
 0x1f8   :  { %v4035_v8 = vpop.f32.mrf.mxu0 }
 0x1f9   :  { %v4036_v23 = vadd.f32 %v4035_v8, %v4034_v7  ;;  %v4433_v7 = vld [vmem:[%s5437_s5 + $0x178] sm:$0xff]  }
 0x1fa   :  { %v4037_v9 = vpop.f32.mrf.mxu0  ;;  %v4436_v8 = vld [vmem:[%s5437_s5 + $0x1f8] sm:$0xff]  }
 0x1fb   :  { %v2083_v18 = vadd.f32 %v4036_v23, %v2043_v17 }
 0x1fc   :  { %v4038_v10 = vpop.f32.mrf.mxu0 }
 0x20e   :  { %v4056_v16 = vpop.f32.mrf.mxu1 }
 0x210   :  { %v4057_v42 = vpop.f32.mrf.mxu1 }
 0x211   :  { %v4058_v19 = vadd.f32 %v4057_v42, %v4056_v16 }
 0x212   :  { %v4059_v20 = vpop.f32.mrf.mxu1 }
 0x213   :  { %v2123_v56 = vadd.f32 %v4058_v19, %v2083_v18 }
 0x214   :  { %v4060_v21 = vpop.f32.mrf.mxu1 }
 0x215   :  { %v2128_v22 = vmax.f32 %v2123_v56, 0.0 }
 0x217   :  { %v2129_v24 = vpack.c.bf16 %v2128_v22, %v2128_v22 }
 0x219   :  { %v2137_v26 = vsel %vm2135_vm2, %v2129_v24, 0 }
 0x21a   :  { %4178 = vmatpush3.bf16.msra.mxu0 %v2137_v26  ;;  %4202 = vmatpush3.bf16.msra.mxu1 %v2137_v26 }
 0x21b   :  { %4183 = vmatprep.subr.bf16.mxu0 %v4504_v4  ;;  %4213 = vmatprep.subr.bf16.mxu1 %v4504_v4 }
 0x21d   :  { %4180 = vmatmul.mubr.msk.bf16.vlgmr.msra.gmra.mxu0 %vm2131_vm3, %v2130_v27  ;;  %4204 = vmatmul.mubr.msk.bf16.vlgmr.msra.gmra.mxu1 %vm2131_vm3, %v3748_v28 }
 0x21e   :  { %4184 = vmatpush3.bf16.msra.mxu0 %v2137_v26  ;;  %4214 = vmatpush3.bf16.msra.mxu1 %v2137_v26 }
 0x21f   :  { %4185 = vmatprep.mubr.msk.bf16.mxu0 %vm4505_vm1, %v4504_v4  ;;  %4189 = vmatprep.subr.bf16.mxu0 %v4504_v4 }
 0x220   :  { %4215 = vmatprep.mubr.msk.bf16.mxu1 %vm4505_vm1, %v4504_v4  ;;  %4225 = vmatprep.subr.bf16.mxu1 %v4504_v4 }
 0x225   :  { %4186 = vmatmul.mubr.msk.bf16.vlgmr.msra.gmra.mxu0 %vm2131_vm3, %v3742_v29  ;;  %4216 = vmatmul.mubr.msk.bf16.vlgmr.msra.gmra.mxu1 %vm2131_vm3, %v3752_v30 }
 0x226   :  { %4190 = vmatpush3.bf16.msra.mxu0 %v2137_v26  ;;  %4226 = vmatpush3.bf16.msra.mxu1 %v2137_v26 }
 0x227   :  { %4191 = vmatprep.mubr.msk.bf16.mxu0 %vm4505_vm1, %v4504_v4  ;;  %4195 = vmatprep.subr.bf16.mxu0 %v4504_v4 }
 0x228   :  { %4227 = vmatprep.mubr.msk.bf16.mxu1 %vm4505_vm1, %v4504_v4  ;;  %4102 = vmatprep.subr.bf16.mxu1 %v4403_v38  ;;  %v4506_v38 = vmov 1983009808  }
 0x22d   :  { %4192 = vmatmul.mubr.msk.bf16.vlgmr.msra.gmra.mxu0 %vm2131_vm3, %v3744_v31  ;;  %4228 = vmatmul.mubr.msk.bf16.vlgmr.msra.gmra.mxu1 %vm2131_vm3, %v3756_v32 }
 0x22e   :  { %4196 = vmatpush3.bf16.msra.mxu0 %v2137_v26  ;;  %4197 = vmatprep.mubr.msk.bf16.mxu0 %vm4505_vm1, %v4504_v4 }
 0x22f   :  { %4207 = vmatprep.subr.bf16.mxu0 %v4504_v4  ;;  %4103 = vmatpush3.bf16.msra.mxu1 %v4404_v41  ;;  %v2716_v41 = vunpack.c.l.s4 %v4506_v38  ;;  %v4465_v38 = vld [vmem:[%s5437_s5 + $0x180] sm:$0xff]  }
 0x230   :  { %4104 = vmatprep.subr.bf16.mxu1 %v4407_v45 }
 0x233   :  { %4105 = vmatpush3.bf16.msra.mxu1 %v4408_v40 }
 0x234   :  { %4106 = vmatprep.subr.bf16.mxu1 %v4411_v47 }
 0x235   :  { %4198 = vmatmul.mubr.msk.bf16.vlgmr.msra.gmra.mxu0 %vm2131_vm3, %v3746_v33 }
 0x236   :  { %4208 = vmatpush3.bf16.msra.mxu0 %v2137_v26  ;;  %4209 = vmatprep.mubr.msk.bf16.mxu0 %vm4505_vm1, %v4504_v4 }
 0x237   :  { %4219 = vmatprep.subr.bf16.mxu0 %v4504_v4  ;;  %4107 = vmatpush3.bf16.msra.mxu1 %v4412_v48 }
 0x238   :  { %4108 = vmatprep.subr.bf16.mxu1 %v4415_v50 }
 0x23b   :  { %4109 = vmatpush3.bf16.msra.mxu1 %v4416_v51 }
 0x23c   :  { %4110 = vmatprep.subr.bf16.mxu1 %v4419_v55 }
 0x23d   :  { %4210 = vmatmul.mubr.msk.bf16.vlgmr.msra.gmra.mxu0 %vm2131_vm3, %v3750_v34 }
 0x23e   :  { %4220 = vmatpush3.bf16.msra.mxu0 %v2137_v26  ;;  %4221 = vmatprep.mubr.msk.bf16.mxu0 %vm4505_vm1, %v4504_v4 }
 0x23f   :  { %4080 = vmatprep.subr.bf16.mxu0 %v4401_v36  ;;  %4111 = vmatpush3.bf16.msra.mxu1 %v4420_v57 }
 0x240   :  { %4112 = vmatprep.subr.bf16.mxu1 %v4423_v60 }
 0x243   :  { %4113 = vmatpush3.bf16.msra.mxu1 %v4424_v61  ;;  %v4438_v61 = vld [vmem:[%s5437_s5 + $0x170] sm:$0xff]  }
 0x244   :  { %4114 = vmatprep.subr.bf16.mxu1 %v4427_v0  ;;  %v4437_v0 = vld [vmem:[%s5437_s5 + $0x1b8] sm:$0xff]  }
 0x245   :  { %4222 = vmatmul.mubr.msk.bf16.vlgmr.msra.gmra.mxu0 %vm2131_vm3, %v3754_v35 }
 0x246   :  { %4081 = vmatpush3.bf16.msra.mxu0 %v4402_v37 }
 0x247   :  { %4082 = vmatprep.subr.bf16.mxu0 %v4405_v43  ;;  %4115 = vmatpush3.bf16.msra.mxu1 %v4428_v1  ;;  %v2718_v43 = vlaneseq  ;;  %v4440_v1 = vld [vmem:[%s5437_s5 + $0x1f0] sm:$0xff]  }
 0x248   :  { %4116 = vmatprep.subr.bf16.mxu1 %v4431_v2  ;;  %v4439_v2 = vld [vmem:[%s5437_s5 + $0x130] sm:$0xff]  }
 0x24a   :  { %4083 = vmatpush3.bf16.msra.mxu0 %v4406_v44 }
 0x24b   :  { %4084 = vmatprep.subr.bf16.mxu0 %v4409_v25  ;;  %4117 = vmatpush3.bf16.msra.mxu1 %v4432_v6  ;;  %v2717_v25 = vunpack.c.0.s8 %v2716_v41  ;;  %v4442_v6 = vld [vmem:[%s5437_s5 + $0x168] sm:$0xff]   ;;  %v4467_v41 = vld [vmem:[%s5437_s5 + $0x238] sm:$0xff]  }
 0x24c   :  { %4146 = vmatprep.subr.bf16.mxu1 %v4436_v8  ;;  %v4441_v8 = vld [vmem:[%s5437_s5 + $0x1b0] sm:$0xff]  }
 0x24e   :  { %4085 = vmatpush3.bf16.msra.mxu0 %v4410_v46  ;;  %v5277_v46 = vshrl.u32 %v2718_v43, 7  ;;  %v4468_v43 = vld [vmem:[%s5437_s5 + $0x230] sm:$0xff]  }
 0x24f   :  { %4086 = vmatprep.subr.bf16.mxu0 %v4413_v49 }
 0x250   :  { %v2720_v49 = vsub.s32 %v2717_v25, %v5277_v46  ;;  %v4472_v25 = vld [vmem:[%s5437_s5 + $0x210] sm:$0xff]  }
 0x252   :  { %4087 = vmatpush3.bf16.msra.mxu0 %v4414_v39 }
 0x253   :  { %4088 = vmatprep.subr.bf16.mxu0 %v4417_v53 }
 0x256   :  { %4089 = vmatpush3.bf16.msra.mxu0 %v4418_v54 }
 0x257   :  { %4090 = vmatprep.subr.bf16.mxu0 %v4421_v58 }
 0x25a   :  { %4091 = vmatpush3.bf16.msra.mxu0 %v4422_v59  ;;  %v4434_v59 = vld [vmem:[%s5437_s5 + $0x138] sm:$0xff]  }
 0x25b   :  { %4092 = vmatprep.subr.bf16.mxu0 %v4425_v62 }
 0x25e   :  { %4093 = vmatpush3.bf16.msra.mxu0 %v4426_v63 }
 0x25f   :  { %4094 = vmatprep.subr.bf16.mxu0 %v4429_v52 }
 0x262   :  { %4095 = vmatpush3.bf16.msra.mxu0 %v4430_v3 }
 0x263   :  { %4124 = vmatprep.subr.bf16.mxu0 %v4433_v7 }
 0x2dd   :  { %v2173_v9 = vpop.f32.mrf.mxu0  ;;  %v2362_v10 = vpop.f32.mrf.mxu1 }
 0x2de   :  { %v2179_v11 = vpack.c.bf16 %v2173_v9, %v2173_v9  ;;  %v2368_v12 = vpack.c.bf16 %v2362_v10, %v2362_v10  ;;  %v4444_v9 = vld [vmem:[%s5437_s5 + $0x1e8] sm:$0xff]  }
 0x2df   :  { %v4181_v13 = vpop.f32.mrf.mxu0  ;;  %v4205_v14 = vpop.f32.mrf.mxu1 }
 0x2e0   :  { %2181 = vst.msk [vmem:[#allocation3] sm:$0x3] %vm2180_vm4, %v2179_v11  ;;  %2369 = vst.msk [vmem:[#allocation3 + $0x8] sm:$0x3] %vm2180_vm4, %v2368_v12  ;;  %v4443_v11 = vld [vmem:[%s5437_s5 + $0x128] sm:$0xff]   ;;  %v4446_v12 = vld [vmem:[%s5437_s5 + $0x160] sm:$0xff]  }
 0x2e1   :  { %v2176_v15 = vpop.f32.mrf.mxu0  ;;  %v2365_v23 = vpop.f32.mrf.mxu1  ;;  %v4445_v14 = vld [vmem:[%s5437_s5 + $0x1a8] sm:$0xff]  }
 0x2e2   :  { %v4448_v15 = vld [vmem:[%s5437_s5 + $0x1e0] sm:$0xff]  }
 0x2e3   :  { %v4182_v16 = vpop.f32.mrf.mxu0  ;;  %v4206_v17 = vpop.f32.mrf.mxu1  ;;  %v4447_v23 = vld [vmem:[%s5437_s5 + $0x120] sm:$0xff]  }
 0x2e4   :  { %v4450_v16 = vld [vmem:[%s5437_s5 + $0x158] sm:$0xff]  }
 0x2e5   :  { %v2221_v42 = vpop.f32.mrf.mxu0  ;;  %v2456_v18 = vpop.f32.mrf.mxu1 }
 0x2e6   :  { %v2227_v19 = vpack.c.bf16 %v2221_v42, %v2221_v42  ;;  %v2462_v20 = vpack.c.bf16 %v2456_v18, %v2456_v18  ;;  %v4449_v42 = vld [vmem:[%s5437_s5 + $0x1a0] sm:$0xff]  }
 0x2e7   :  { %v4187_v56 = vpop.f32.mrf.mxu0  ;;  %v4217_v21 = vpop.f32.mrf.mxu1 }
 0x2e8   :  { %2228 = vst.msk [vmem:[#allocation3 + $0x2] sm:$0x3] %vm2180_vm4, %v2227_v19  ;;  %2463 = vst.msk [vmem:[#allocation3 + $0xc] sm:$0x3] %vm2180_vm4, %v2462_v20  ;;  %v4452_v20 = vld [vmem:[%s5437_s5 + $0x1d8] sm:$0xff]  }
 0x2e9   :  { %v2224_v22 = vpop.f32.mrf.mxu0  ;;  %v2459_v24 = vpop.f32.mrf.mxu1  ;;  %v4451_v56 = vld [vmem:[%s5437_s5 + $0x118] sm:$0xff]  }
 0x2ea   :  { %v4454_v24 = vld [vmem:[%s5437_s5 + $0x150] sm:$0xff]  }
 0x2eb   :  { %v4188_v26 = vpop.f32.mrf.mxu0  ;;  %v4218_v27 = vpop.f32.mrf.mxu1 }
 0x2ec   :  { %v4453_v26 = vld [vmem:[%s5437_s5 + $0x198] sm:$0xff]  }
 0x2ed   :  { %v2268_v28 = vpop.f32.mrf.mxu0  ;;  %v2550_v29 = vpop.f32.mrf.mxu1 }
 0x2ee   :  { %v2274_v30 = vpack.c.bf16 %v2268_v28, %v2268_v28  ;;  %v2556_v31 = vpack.c.bf16 %v2550_v29, %v2550_v29  ;;  %v4456_v28 = vld [vmem:[%s5437_s5 + $0x1d0] sm:$0xff]  }
 0x2ef   :  { %v4193_v32 = vpop.f32.mrf.mxu0  ;;  %v4229_v33 = vpop.f32.mrf.mxu1  ;;  %v4455_v29 = vld [vmem:[%s5437_s5 + $0x110] sm:$0xff]  }
 0x2f0   :  { %2275 = vst.msk [vmem:[#allocation3 + $0x4] sm:$0x3] %vm2180_vm4, %v2274_v30  ;;  %2557 = vst.msk [vmem:[#allocation3 + $0x10] sm:$0x3] %vm2180_vm4, %v2556_v31  ;;  %v4458_v30 = vld [vmem:[%s5437_s5 + $0x148] sm:$0xff]   ;;  %v4457_v31 = vld [vmem:[%s5437_s5 + $0x190] sm:$0xff]  }
 0x2f1   :  { %v2271_v34 = vpop.f32.mrf.mxu0  ;;  %v2553_v35 = vpop.f32.mrf.mxu1  ;;  %v4460_v32 = vld [vmem:[%s5437_s5 + $0x1c8] sm:$0xff]  }
 0x2f2   :  { %v4459_v33 = vld [vmem:[%s5437_s5 + $0x108] sm:$0xff]   ;;  %v4462_v34 = vld [vmem:[%s5437_s5 + $0x140] sm:$0xff]  }
 0x2f3   :  { %v4194_v36 = vpop.f32.mrf.mxu0  ;;  %v4230_v37 = vpop.f32.mrf.mxu1  ;;  %v4461_v35 = vld [vmem:[%s5437_s5 + $0x188] sm:$0xff]  }
 0x2f4   :  { %v4464_v36 = vld [vmem:[%s5437_s5 + $0x1c0] sm:$0xff]  }
 0x2f5   :  { %v2315_v44 = vpop.f32.mrf.mxu0  ;;  %v4463_v37 = vld [vmem:[%s5437_s5 + $0x100] sm:$0xff]  }
 0x2f6   :  { %v2321_v45 = vpack.c.bf16 %v2315_v44, %v2315_v44  ;;  %v4469_v44 = vld [vmem:[%s5437_s5 + $0x228] sm:$0xff]  }
 0x2f7   :  { %v4199_v40 = vpop.f32.mrf.mxu0 }
 0x2f8   :  { %2322 = vst.msk [vmem:[#allocation3 + $0x6] sm:$0x3] %vm2180_vm4, %v2321_v45  ;;  %v4470_v45 = vld [vmem:[%s5437_s5 + $0x220] sm:$0xff]   ;;  %v4471_v40 = vld [vmem:[%s5437_s5 + $0x218] sm:$0xff]  }
 0x2f9   :  { %v2318_v47 = vpop.f32.mrf.mxu0 }
 0x2fa   :  { %v4473_v47 = vld [vmem:[%s5437_s5 + $0x208] sm:$0xff]  }
 0x2fb   :  { %v4200_v48 = vpop.f32.mrf.mxu0 }
 0x2fc   :  { %v4474_v48 = vld [vmem:[%s5437_s5 + $0x200] sm:$0xff]  }
 0x2fd   :  { %v2409_v39 = vpop.f32.mrf.mxu0 }
 0x2fe   :  { %v2415_v50 = vpack.c.bf16 %v2409_v39, %v2409_v39  ;;  %v4477_v39 = vld [vmem:[%s5439_s7 + $0x4] ss:$16 sps:$4 sm:$0xff]  }
 0x2ff   :  { %v2558_v51 = vld [vmem:[#allocation3] sm:$0xff]  ;;  %v4211_v53 = vpop.f32.mrf.mxu0 }
 0x300   :  { %v2721_v54 = vrot.slane %v2558_v51, %v2720_v49  ;;  %v2714_v55 = vcombine.high %v2558_v51, %v2558_v51  ;;  %2416 = vst.msk [vmem:[#allocation3 + $0xa] sm:$0x3] %vm2180_vm4, %v2415_v50  ;;  %v4475_v50 = vld [vmem:[%s5439_s7] ss:$16 sps:$4 sm:$0xff]   ;;  %v4480_v51 = vld [vmem:[%s5439_s7 + $0xc] ss:$16 sps:$4 sm:$0xff]  }
 0x301   :  { %v2412_v57 = vpop.f32.mrf.mxu0 }
 0x302   :  { %v2729_v58 = vcombine.high %v2721_v54, %v2721_v54  ;;  %v2728_v60 = vrot.slane %v2714_v55, %v2720_v49 }
 0x303   :  { %v4212_v62 = vpop.f32.mrf.mxu0 }
 0x304   :  { %3228 = vmatprep.mubr.bf16.mxu0 %v2729_v58  ;;  %v2730_v63 = vcombine.high %v2728_v60, %v2728_v60 }
 0x305   :  { %3229 = vmatmul.mubr.bf16.vlgmr.msra.gmra.mxu0 %v2721_v54  ;;  %v2503_v52 = vpop.f32.mrf.mxu0 }
 0x306   :  { %4125 = vmatpush3.bf16.msra.mxu0 %v4434_v59  ;;  %3268 = vmatprep.mubr.bf16.mxu1 %v2730_v63  ;;  %v2509_v3 = vpack.c.bf16 %v2503_v52, %v2503_v52 }
 0x307   :  { %3269 = vmatmul.mubr.bf16.vlgmr.msra.gmra.mxu1 %v2728_v60  ;;  %4126 = vmatprep.subr.bf16.mxu0 %v4438_v61  ;;  %v4223_v7 = vpop.f32.mrf.mxu0 }
 0x308   :  { %4147 = vmatpush3.bf16.msra.mxu1 %v4437_v0  ;;  %2510 = vst.msk [vmem:[#allocation3 + $0xe] sm:$0x3] %vm2180_vm4, %v2509_v3  ;;  %v2709_v7 = vpop.permute.xlu0 %2708 }
 0x309   :  { %4148 = vmatprep.subr.bf16.mxu1 %v4440_v1  ;;  %v2506_v10 = vpop.f32.mrf.mxu0 }
 0x30a   :  { %4127 = vmatpush3.bf16.msra.mxu0 %v4439_v2 }
 0x30b   :  { %4128 = vmatprep.subr.bf16.mxu0 %v4442_v6  ;;  %v4224_v13 = vpop.f32.mrf.mxu0 }
 0x30c   :  { %4149 = vmatpush3.bf16.msra.mxu1 %v4441_v8 }
 0x30d   :  { %4150 = vmatprep.subr.bf16.mxu1 %v4444_v9 }
 0x30e   :  { %4129 = vmatpush3.bf16.msra.mxu0 %v4443_v11 }
 0x30f   :  { %4130 = vmatprep.subr.bf16.mxu0 %v4446_v12  ;;  %v2559_v17 = vld [vmem:[#allocation3 + $0x8] sm:$0xff] }
 0x310   :  { %4151 = vmatpush3.bf16.msra.mxu1 %v4445_v14  ;;  %v2738_v18 = vrot.slane %v2559_v17, %v2720_v49  ;;  %v2731_v19 = vcombine.high %v2559_v17, %v2559_v17 }
 0x311   :  { %4152 = vmatprep.subr.bf16.mxu1 %v4448_v15 }
 0x312   :  { %4131 = vmatpush3.bf16.msra.mxu0 %v4447_v23  ;;  %v2746_v21 = vcombine.high %v2738_v18, %v2738_v18  ;;  %v2745_v22 = vrot.slane %v2731_v19, %v2720_v49  ;;  %v3758_v49 = vld.sshfl [vmem:[#allocation3 + $0x10] sm:$0x3 pattern:$0x76325410] }
 0x313   :  { %4132 = vmatprep.subr.bf16.mxu0 %v4450_v16 }
 0x314   :  { %4153 = vmatpush3.bf16.msra.mxu1 %v4449_v42  ;;  %3308 = vmatprep.mubr.bf16.mxu0 %v2746_v21  ;;  %v2747_v27 = vcombine.high %v2745_v22, %v2745_v22  ;;  %v3410_v21 = vsub.s32 1, %v5277_v46 }
 0x315   :  { %4154 = vmatprep.subr.bf16.mxu1 %v4452_v20 }
 0x316   :  { %4133 = vmatpush3.bf16.msra.mxu0 %v4451_v56  ;;  %3348 = vmatprep.mubr.bf16.mxu1 %v2747_v27  ;;  %v3406_v56 = vsub.s32 0, %v5277_v46 }
 0x317   :  { %4134 = vmatprep.subr.bf16.mxu0 %v4454_v24 }
 0x318   :  { %4155 = vmatpush3.bf16.msra.mxu1 %v4453_v26 }
 0x319   :  { %4156 = vmatprep.subr.bf16.mxu1 %v4456_v28 }
 0x31a   :  { %4135 = vmatpush3.bf16.msra.mxu0 %v4455_v29 }
 0x31b   :  { %4136 = vmatprep.subr.bf16.mxu0 %v4458_v30 }
 0x31c   :  { %4157 = vmatpush3.bf16.msra.mxu1 %v4457_v31  ;;  %v3414_v31 = vsub.s32 2, %v5277_v46 }
 0x31d   :  { %4158 = vmatprep.subr.bf16.mxu1 %v4460_v32 }
 0x31e   :  { %4137 = vmatpush3.bf16.msra.mxu0 %v4459_v33 }
 0x31f   :  { %4138 = vmatprep.subr.bf16.mxu0 %v4462_v34 }
 0x320   :  { %4159 = vmatpush3.bf16.msra.mxu1 %v4461_v35 }
 0x321   :  { %4160 = vmatprep.subr.bf16.mxu1 %v4464_v36 }
 0x322   :  { %4139 = vmatpush3.bf16.msra.mxu0 %v4463_v37 }
 0x323   :  { %4231 = vmatprep.subr.bf16.mxu0 %v4504_v4 }
 0x324   :  { %4161 = vmatpush3.bf16.msra.mxu1 %v4465_v38 }
 0x325   :  { %3309 = vmatmul.mubr.bf16.vlgmr.msra.gmra.mxu0 %v2738_v18  ;;  %3461 = vmatprep.subr.bf16.mxu1 %v4477_v39  ;;  %v4478_v18 = vld [vmem:[%s5439_s7 + $0x8] ss:$16 sps:$4 sm:$0xff]   ;;  %s4507_s7 = smov [#allocation4]  }
 0x326   :  { %4232 = vmatpush3.bf16.msra.mxu0 %v4467_v41  ;;  %4247 = vmatprep.mubr.msk.bf16.mxu0 %vm4505_vm1, %v4504_v4 }
 0x327   :  { %3349 = vmatmul.mubr.bf16.vlgmr.msra.gmra.mxu1 %v2745_v22  ;;  %4233 = vmatprep.subr.bf16.mxu0 %v4504_v4  ;;  %v3402_v22 = vld [vmem:[%s5440_s8] sm:$0xf]  ;;  %s3545_s8 = sshll.u32 %s4507_s7, 4  ;;  %s3546_s8 = int_to_ptr.vmem [resolvable:$true] %s3545_s8 }
 0x328   :  { %3479 = vmatprep.mubr.bf16.mxu1 %v4503_v5  ;;  %3462 = vmatpush1.bf16.msra.mxu1 %v4475_v50  ;;  %v3407_v24 = vrot.slane %v3402_v22, %v3406_v56  ;;  %v3411_v26 = vrot.slane %v3402_v22, %v3410_v21  ;;  %v3415_v35 = vrot.slane %v3402_v22, %v3414_v31  ;;  %s4481_s18 = scalar_lea.vmem %s3546_s8, 256  ;;  %p4486_p1 = scmp.lt.s32.totalorder %s3546_s8, %s3546_s8 }
 0x329   :  { %3502 = vmatprep.subr.bf16.mxu1 %v4480_v51  ;;  %p4482_p0 = scmp.ne.s32.totalorder %s3546_s8, %s4481_s18  ;;  %p4487_p2 = scmp.lt.s32.totalorder %s4481_s18, %s4481_s18 }
 0x32a   :  { %4234 = vmatpush3.bf16.msra.mxu0 %v4468_v43 }
 0x32b   :  { %4235 = vmatprep.subr.bf16.mxu0 %v4504_v4  ;;  %p4488_p3 = por %p4487_p2, %p4486_p1 }
 0x32d   :  { %p4489_p4 = pnand %p4488_p3, %p4482_p0 }
 0x32e   :  { %4236 = vmatpush3.bf16.msra.mxu0 %v4469_v44 }
 0x32f   :  { %4237 = vmatprep.subr.bf16.mxu0 %v4504_v4 }
 0x332   :  { %4238 = vmatpush3.bf16.msra.mxu0 %v4470_v45 }
 0x333   :  { %4239 = vmatprep.subr.bf16.mxu0 %v4504_v4 }
 0x336   :  { %4240 = vmatpush3.bf16.msra.mxu0 %v4471_v40 }
 0x337   :  { %4241 = vmatprep.subr.bf16.mxu0 %v4504_v4 }
 0x33a   :  { %4242 = vmatpush3.bf16.msra.mxu0 %v4472_v25 }
 0x33b   :  { %4243 = vmatprep.subr.bf16.mxu0 %v4504_v4 }
 0x33e   :  { %4244 = vmatpush3.bf16.msra.mxu0 %v4473_v47 }
 0x33f   :  { %4245 = vmatprep.subr.bf16.mxu0 %v4504_v4 }
 0x342   :  { %4246 = vmatpush3.bf16.msra.mxu0 %v4474_v48 }
 0x345   :  { %4248 = vmatmul.mubr.bf16.vlgmr.msra.gmra.mxu0 %v3758_v49 }
 0x3c5   :  { %v4096_v53 = vpop.f32.mrf.mxu0 }
 0x3c7   :  { %v4097_v4 = vpop.f32.mrf.mxu0  ;;  %v4118_v54 = vpop.f32.mrf.mxu1 }
 0x3c8   :  { %v4098_v6 = vadd.f32 %v4097_v4, %v4096_v53 }
 0x3c9   :  { %v4099_v55 = vpop.f32.mrf.mxu0  ;;  %v4119_v57 = vpop.f32.mrf.mxu1 }
 0x3ca   :  { %v3231_v8 = vadd.f32 %v4098_v6, %v2709_v7  ;;  %v4120_v9 = vadd.f32 %v4119_v57, %v4118_v54 }
 0x3cb   :  { %v4100_v58 = vpop.f32.mrf.mxu0  ;;  %v4121_v59 = vpop.f32.mrf.mxu1 }
 0x3cc   :  { %v3271_v11 = vadd.f32 %v4120_v9, %v3231_v8 }
 0x3cd   :  { %v4122_v60 = vpop.f32.mrf.mxu1 }
 0x3e5   :  { %v4140_v61 = vpop.f32.mrf.mxu0 }
 0x3e7   :  { %v4141_v62 = vpop.f32.mrf.mxu0  ;;  %v4162_v63 = vpop.f32.mrf.mxu1 }
 0x3e8   :  { %v4142_v10 = vadd.f32 %v4141_v62, %v4140_v61 }
 0x3e9   :  { %v4143_v0 = vpop.f32.mrf.mxu0  ;;  %v4163_v1 = vpop.f32.mrf.mxu1 }
 0x3ea   :  { %v3311_v12 = vadd.f32 %v4142_v10, %v3271_v11  ;;  %v4164_v13 = vadd.f32 %v4163_v1, %v4162_v63 }
 0x3eb   :  { %v4144_v52 = vpop.f32.mrf.mxu0  ;;  %v4165_v2 = vpop.f32.mrf.mxu1 }
 0x3ec   :  { %v3351_v14 = vadd.f32 %v4164_v13, %v3311_v12 }
 0x3ed   :  { %v4166_v3 = vpop.f32.mrf.mxu1 }
 0x405   :  { %v3390_v15 = vpop.f32.mrf.mxu0 }
 0x406   :  { %v3391_v23 = vadd.f32 %v3390_v15, %v3351_v14 }
 0x407   :  { %v4249_v16 = vpop.f32.mrf.mxu0 }
 0x408   :  { %v3396_v17 = vmax.f32 %v3391_v23, 0.0 }
 0x409   :  { %v3393_v42 = vpop.f32.mrf.mxu0 }
 0x40a   :  { %v3397_v19 = vpack.c.bf16 %v3396_v17, %v3396_v17 }
 0x40b   :  { %v4250_v20 = vpop.f32.mrf.mxu0 }
 0x40c   :  { %3835 = vmatmul.mubr.msk.bf16.vlgmr.msra.gmra.mxu1 %vm44_vm0, %v3397_v19 }
 0x40d   :  { %3503 = vmatpush1.bf16.msra.mxu1 %v4478_v18  ;;  %3520 = vmatprep.mubr.bf16.mxu1 %v4503_v5  ;;  %v3418_v5 = vsub.s32 3, %v5277_v46 }
 0x40f   :  { %v3419_v36 = vrot.slane %v3402_v22, %v3418_v5 }
 0x414   :  { %3836 = vmatmul.mubr.msk.bf16.vlgmr.msra.gmra.mxu1 %vm44_vm0, %v3397_v19 }
 0x4cc   :  { %v3481_v27 = vpop.f32.mrf.mxu1 }
 0x4cd   :  { %v3482_v29 = vadd.f32 %v3481_v27, %v3407_v24 }
 0x4ce   :  { %v3483_v28 = vpop.f32.mrf.mxu1 }
 0x4cf   :  { %v3484_v30 = vadd.f32 %v3483_v28, %v3411_v26 }
 0x4d0   :  { %v3485_v32 = vpop.f32.mrf.mxu1 }
 0x4d1   :  { %v3533_v33 = vcombine.low %v3482_v29, %v3484_v30 }
 0x4d2   :  { %v3486_v34 = vpop.f32.mrf.mxu1 }
 0x4d3   :  { %3537 = vst [vmem:[#allocation4] sm:$0xff] %v3533_v33 }
 0x4d4   :  { %v3522_v37 = vpop.f32.mrf.mxu1 }
 0x4d5   :  { %v3523_v41 = vadd.f32 %v3522_v37, %v3415_v35 }
 0x4d6   :  { %v3524_v38 = vpop.f32.mrf.mxu1 }
 0x4d7   :  { %v3525_v43 = vadd.f32 %v3524_v38, %v3419_v36 }
 0x4d8   :  { %v3526_v44 = vpop.f32.mrf.mxu1 }
 0x4d9   :  { %v3534_v45 = vcombine.low %v3523_v41, %v3525_v43 }
 0x4da   :  { %v3527_v40 = vpop.f32.mrf.mxu1 }
 0x4db   :  { %3538 = vst [vmem:[#allocation4 + $0x8] sm:$0xff] %v3534_v45 }
 0x4dc   :  { %4492 = shalt.err (!%p4489_p4)
}
 0x4dd   :  { %3548 = dma.vmem_to_hbm [thread:$0]  %s3546_s8, 256, %s5441_s9, [#allocation5]  }
 0x4de   :  { %4501 = dma.done.wait [#allocation5], 256  }
 0x4df   :  { %4502 = vsyncadd [#allocation5], 4294967040 }
 0x4e0   :  { %3552 = vsyncpa [#allocation5], 1 }

</bundles_post_ra>
